<compile_context>
chip_gen: v7x
topology: tpu7x:2x2x1
jax: 0.10.0
libtpu: 0.0.40
codegen_flags: <defaults>
</compile_context>

<pallas_src>
import functools

import jax
import jax.numpy as jnp
from jax.experimental import pallas as pl
from jax.experimental.pallas import tpu as pltpu

F32 = jnp.float32
BF16 = jnp.bfloat16

# ----------------------------- config constants -----------------------------
RESNET_EPS = 1e-6          # resnet_eps
TRANS_GN_EPS = 1e-6        # GroupNorm eps inside Transformer1DModel
LN_EPS = 1e-5              # torch.nn.LayerNorm default
OUTPUT_SCALE_FACTOR = 1.0  # output_scale_factor
# dropout = 0.0 -> identity everywhere

VMEM_LIMIT_BYTES = 48 * 1024 * 1024   # below physical VMEM on v5e/v6e/v7x


def _cparams():
    return pltpu.CompilerParams(
        dimension_semantics=("parallel",),
        vmem_limit_bytes=VMEM_LIMIT_BYTES,
    )


# ========================= in-kernel helper functions ========================
def _silu(x):
    return x * jax.nn.sigmoid(x)


def _group_norm(x, gmat, gamma, beta, *, inv_n, eps):
    """GroupNorm on a (L, C) tile; group stats via group-membership matmul."""
    s1 = jnp.sum(x, axis=0, keepdims=True)                    # (1, C)
    s2 = jnp.sum(x * x, axis=0, keepdims=True)                # (1, C)
    mean = jnp.dot(s1, gmat, preferred_element_type=jnp.float32) * inv_n
    ex2 = jnp.dot(s2, gmat, preferred_element_type=jnp.float32) * inv_n
    var = jnp.maximum(ex2 - mean * mean, 0.0)
    return (x - mean) * jax.lax.rsqrt(var + eps) * gamma + beta


def _layer_norm(x, gamma, beta, *, eps=LN_EPS):
    mean = jnp.mean(x, axis=-1, keepdims=True)
    var = jnp.mean(jnp.square(x - mean), axis=-1, keepdims=True)
    return (x - mean) * jax.lax.rsqrt(var + eps) * gamma + beta


def _conv3(h, w_taps_ref, bias):
    """'same' k=3 conv on a (L, C) tile: three shifted bf16 dots, f32 accum."""
    L, C = h.shape
    row = jax.lax.broadcasted_iota(jnp.int32, (L, C), 0)
    hb = h.astype(BF16)
    h_prev = jnp.where(row == 0, 0.0, pltpu.roll(h, 1, axis=0)).astype(BF16)
    h_next = jnp.where(row == L - 1, 0.0, pltpu.roll(h, L - 1, axis=0)).astype(BF16)
    y = jnp.dot(h_prev, w_taps_ref[0], preferred_element_type=jnp.float32)
    y = y + jnp.dot(hb, w_taps_ref[1], preferred_element_type=jnp.float32)
    y = y + jnp.dot(h_next, w_taps_ref[2], preferred_element_type=jnp.float32)
    return y + bias


def _attn_body(xq, ctx, wq_ref, wk_ref, wv_ref, wo_ref, bo, *, heads, dh):
    """Multi-head attention on one batch: xq (L, C) queries, ctx (S, D) k/v src.

    Per-head weights are pre-split refs (H, D_in, dh) / (H, dh, C); the output
    projection is folded into the per-head accumulation (no concat needed)."""
    xqb = xq.astype(BF16)
    ctxb = ctx.astype(BF16)
    scale = float(dh) ** -0.5
    acc = None
    for h in range(heads):
        qh = jnp.dot(xqb, wq_ref[h], preferred_element_type=jnp.float32)   # (L, dh)
        kh = jnp.dot(ctxb, wk_ref[h], preferred_element_type=jnp.float32)  # (S, dh)
        vh = jnp.dot(ctxb, wv_ref[h], preferred_element_type=jnp.float32)  # (S, dh)
        s = jax.lax.dot_general(
            qh.astype(BF16), kh.astype(BF16),
            (((1,), (1,)), ((), ())),
            preferred_element_type=jnp.float32) * scale                    # (L, S)
        s = s - jnp.max(s, axis=-1, keepdims=True)
        p = jnp.exp(s)
        p = p * pl.reciprocal(jnp.sum(p, axis=-1, keepdims=True), approx=True)
        oh = jnp.dot(p.astype(BF16), vh.astype(BF16),
                     preferred_element_type=jnp.float32)                   # (L, dh)
        contrib = jnp.dot(oh.astype(BF16), wo_ref[h],
                          preferred_element_type=jnp.float32)              # (L, C)
        acc = contrib if acc is None else acc + contrib
    return acc + bo


# ================================ Pallas kernels =============================
def _resnet_part1_kernel(x_ref, g1_ref, b1_ref, gmat_ref, w1_ref, cb1_ref,
                         temb_ref, tw_ref, tb_ref, o_ref, *, inv_n, eps):
    """h = conv3(silu(GN(x))) + time_proj(silu(temb))  (per batch)."""
    x = x_ref[0]                                                   # (L, C)
    h = _silu(_group_norm(x, gmat_ref[...], g1_ref[...], b1_ref[...],
                          inv_n=inv_n, eps=eps))
    y = _conv3(h, w1_ref, cb1_ref[...])
    t = _silu(temb_ref[0])                                         # (1, T)
    tp = jnp.dot(t.astype(BF16), tw_ref[...],
                 preferred_element_type=jnp.float32) + tb_ref[...]  # (1, C)
    o_ref[0] = y + tp


def _resnet_part2_kernel(h_ref, g2_ref, b2_ref, gmat_ref, w2_ref, cb2_ref,
                         res_ref, o_ref, *, inv_n, eps, inv_scale):
    """out = (residual + conv3(silu(GN(h)))) / output_scale_factor."""
    h = h_ref[0]
    hn = _silu(_group_norm(h, gmat_ref[...], g2_ref[...], b2_ref[...],
                           inv_n=inv_n, eps=eps))
    y = _conv3(hn, w2_ref, cb2_ref[...])
    o_ref[0] = (res_ref[0] + y) * inv_scale


def _selfattn_kernel(x_ref, gn_g_ref, gn_b_ref, gmat_ref, pin_w_ref, pin_b_ref,
                     ln_g_ref, ln_b_ref, wq_ref, wk_ref, wv_ref, wo_ref, bo_ref,
                     o_ref, *, inv_n, eps, heads, dh):
    """rows = proj_in(GN(x)); out = self_attn(LN(rows)) + rows."""
    x = x_ref[0]
    gx = _group_norm(x, gmat_ref[...], gn_g_ref[...], gn_b_ref[...],
                     inv_n=inv_n, eps=eps)
    rows = jnp.dot(gx.astype(BF16), pin_w_ref[...],
                   preferred_element_type=jnp.float32) + pin_b_ref[...]
    xn = _layer_norm(rows, ln_g_ref[...], ln_b_ref[...])
    attn = _attn_body(xn, xn, wq_ref, wk_ref, wv_ref, wo_ref, bo_ref[...],
                      heads=heads, dh=dh)
    o_ref[0] = attn + rows


def _crossattn_kernel(x_ref, ln_g_ref, ln_b_ref, ctx_ref, wq_ref, wk_ref, wv_ref,
                      wo_ref, bo_ref, o_ref, *, heads, dh):
    """out = cross_attn(LN(x), ctx) + x."""
    x = x_ref[0]
    xn = _layer_norm(x, ln_g_ref[...], ln_b_ref[...])
    attn = _attn_body(xn, ctx_ref[0], wq_ref, wk_ref, wv_ref, wo_ref, bo_ref[...],
                      heads=heads, dh=dh)
    o_ref[0] = attn + x


def _ff_projout_kernel(x_ref, ln_g_ref, ln_b_ref, w1v_ref, b1v_ref, w1g_ref,
                       b1g_ref, w2_ref, b2_ref, pout_w_ref, pout_b_ref,
                       res_ref, o_ref):
    """GEGLU FF (+res) then proj_out (+ transformer residual), all fused."""
    x = x_ref[0]
    xn = _layer_norm(x, ln_g_ref[...], ln_b_ref[...]).astype(BF16)
    val = jnp.dot(xn, w1v_ref[...], preferred_element_type=jnp.float32) + b1v_ref[...]
    gate = jnp.dot(xn, w1g_ref[...], preferred_element_type=jnp.float32) + b1g_ref[...]
    # TODO(synk): PyTorch F.gelu is the exact erf GELU; tanh approximation used
    # here for Mosaic-friendly lowering.
    g = val * jax.nn.gelu(gate, approximate=True)
    ff = jnp.dot(g.astype(BF16), w2_ref[...],
                 preferred_element_type=jnp.float32) + b2_ref[...]
    h = ff + x
    out = jnp.dot(h.astype(BF16), pout_w_ref[...],
                  preferred_element_type=jnp.float32) + pout_b_ref[...]
    o_ref[0] = out + res_ref[0]


# ============================ pallas_call plumbing ===========================
def _bspec(arr, batched):
    """Full-extent block; batched arrays get a per-batch (1, ...) block."""
    nd = arr.ndim
    if batched:
        blk = (1,) + tuple(arr.shape[1:])

        def imap(b, _nd=nd):
            return (b,) + (0,) * (_nd - 1)
    else:
        blk = tuple(arr.shape)

        def imap(b, _nd=nd):
            return (0,) * _nd
    return pl.BlockSpec(blk, imap)


def _call(kernel, args, batched, out_block, B):
    in_specs = [_bspec(a, bf) for a, bf in zip(args, batched)]
    out_specs = pl.BlockSpec((1,) + tuple(out_block), lambda b: (b, 0, 0))
    return pl.pallas_call(
        kernel,
        out_shape=jax.ShapeDtypeStruct((B,) + tuple(out_block), F32),
        grid=(B,),
        in_specs=in_specs,
        out_specs=out_specs,
        compiler_params=_cparams(),
    )(*args)


def _group_matrix(C, groups):
    Cg = C // groups
    idx = jnp.arange(C) // Cg
    return (idx[:, None] == idx[None, :]).astype(F32)      # (C, C)


def _heads_w(w, heads):
    """PyTorch Linear weight (inner, d_in) -> per-head (H, d_in, dh) bf16."""
    inner, din = w.shape
    dh = inner // heads
    return w.T.reshape(din, heads, dh).transpose(1, 0, 2).astype(BF16)


def _heads_wo(w, heads):
    """to_out weight (C, inner) -> per-head (H, dh, C) bf16."""
    C, inner = w.shape
    dh = inner // heads
    return w.T.reshape(heads, dh, C).astype(BF16)


# ============================== module blocks ================================
def resnet_block_1d(p, x_blc, temb_b1t, gmat, *, groups):
    B, L, C = x_blc.shape
    Cg = C // groups
    inv_n = 1.0 / float(L * Cg)

    g1 = p["norm1_g"].reshape(1, C).astype(F32)
    b1 = p["norm1_b"].reshape(1, C).astype(F32)
    w1 = jnp.transpose(p["conv1_w"], (2, 1, 0)).astype(BF16)   # (3, Cin, Cout)
    cb1 = p["conv1_b"].reshape(1, C).astype(F32)
    tw = p["time_w"].T.astype(BF16)                            # (T, C)
    tb = p["time_b"].reshape(1, C).astype(F32)
    g2 = p["norm2_g"].reshape(1, C).astype(F32)
    b2 = p["norm2_b"].reshape(1, C).astype(F32)
    w2 = jnp.transpose(p["conv2_w"], (2, 1, 0)).astype(BF16)
    cb2 = p["conv2_b"].reshape(1, C).astype(F32)

    k1 = functools.partial(_resnet_part1_kernel, inv_n=inv_n, eps=RESNET_EPS)
    h = _call(k1,
              [x_blc, g1, b1, gmat, w1, cb1, temb_b1t, tw, tb],
              [True, False, False, False, False, False, True, False, False],
              (L, C), B)

    k2 = functools.partial(_resnet_part2_kernel, inv_n=inv_n, eps=RESNET_EPS,
                           inv_scale=1.0 / OUTPUT_SCALE_FACTOR)
    return _call(k2,
                 [h, g2, b2, gmat, w2, cb2, x_blc],
                 [True, False, False, False, False, False, True],
                 (L, C), B)


def transformer_1d(p, x_blc, ctx, gmat, *, groups, heads):
    B, L, C = x_blc.shape
    dh = C // heads
    Cg = C // groups
    inv_n = 1.0 / float(L * Cg)
    blk = p["block"]

    gn_g = p["gn_g"].reshape(1, C).astype(F32)
    gn_b = p["gn_b"].reshape(1, C).astype(F32)
    pin_w = p["proj_in_w"][:, :, 0].T.astype(BF16)
    pin_b = p["proj_in_b"].reshape(1, C).astype(F32)
    pout_w = p["proj_out_w"][:, :, 0].T.astype(BF16)
    pout_b = p["proj_out_b"].reshape(1, C).astype(F32)

    ln1_g = blk["ln1_g"].reshape(1, C).astype(F32)
    ln1_b = blk["ln1_b"].reshape(1, C).astype(F32)
    ln2_g = blk["ln2_g"].reshape(1, C).astype(F32)
    ln2_b = blk["ln2_b"].reshape(1, C).astype(F32)
    ln3_g = blk["ln3_g"].reshape(1, C).astype(F32)
    ln3_b = blk["ln3_b"].reshape(1, C).astype(F32)

    a1 = blk["attn1"]
    wq1, wk1, wv1 = (_heads_w(a1["to_q"], heads), _heads_w(a1["to_k"], heads),
                     _heads_w(a1["to_v"], heads))
    wo1 = _heads_wo(a1["to_out_w"], heads)
    bo1 = a1["to_out_b"].reshape(1, C).astype(F32)

    a2 = blk["attn2"]
    wq2, wk2, wv2 = (_heads_w(a2["to_q"], heads), _heads_w(a2["to_k"], heads),
                     _heads_w(a2["to_v"], heads))
    wo2 = _heads_wo(a2["to_out_w"], heads)
    bo2 = a2["to_out_b"].reshape(1, C).astype(F32)

    dff = 4 * C
    w1_all = blk["ff1_w"].T                                    # (C, 8C)
    w1v = w1_all[:, :dff].astype(BF16)
    w1g = w1_all[:, dff:].astype(BF16)
    b1v = blk["ff1_b"][:dff].reshape(1, dff).astype(F32)
    b1g = blk["ff1_b"][dff:].reshape(1, dff).astype(F32)
    w2 = blk["ff2_w"].T.astype(BF16)                           # (4C, C)
    b2 = blk["ff2_b"].reshape(1, C).astype(F32)

    k1 = functools.partial(_selfattn_kernel, inv_n=inv_n, eps=TRANS_GN_EPS,
                           heads=heads, dh=dh)
    h1 = _call(k1,
               [x_blc, gn_g, gn_b, gmat, pin_w, pin_b, ln1_g, ln1_b,
                wq1, wk1, wv1, wo1, bo1],
               [True] + [False] * 12,
               (L, C), B)

    k2 = functools.partial(_crossattn_kernel, heads=heads, dh=dh)
    h2 = _call(k2,
               [h1, ln2_g, ln2_b, ctx, wq2, wk2, wv2, wo2, bo2],
               [True, False, False, True, False, False, False, False, False],
               (L, C), B)

    return _call(_ff_projout_kernel,
                 [h2, ln3_g, ln3_b, w1v, b1v, w1g, b1g, w2, b2,
                  pout_w, pout_b, x_blc],
                 [True] + [False] * 10 + [True],
                 (L, C), B)


@functools.partial(jax.jit, static_argnames=("groups", "heads"))
def unet_mid_block_1d_cross_attn(params, hidden_states_ncl, temb,
                                 encoder_hidden_states, *, groups, heads):
    """Forward matching UNetMidBlock1DCrossAttn: resnet0 -> [attn, resnet]*."""
    B, C, L = hidden_states_ncl.shape
    x = jnp.transpose(hidden_states_ncl, (0, 2, 1)).astype(F32)   # NCL -> (B, L, C)
    temb_b1t = temb.astype(F32)[:, None, :]                       # (B, 1, T)
    ctx = encoder_hidden_states.astype(F32)                       # (B, S, Dctx)
    gmat = _group_matrix(C, groups)

    x = resnet_block_1d(params["resnets"][0], x, temb_b1t, gmat, groups=groups)
    for attn_p, res_p in zip(params["attentions"], params["resnets"][1:]):
        x = transformer_1d(attn_p, x, ctx, gmat, groups=groups, heads=heads)
        x = resnet_block_1d(res_p, x, temb_b1t, gmat, groups=groups)
    return jnp.transpose(x, (0, 2, 1))                            # back to NCL


# ============================== parameter init ===============================
def init_unet_mid_block_params(key, *, C, temb_ch, cross_dim, num_layers):
    kit = iter(jax.random.split(key, 512))

    def w(*shape, scale=0.05):
        return scale * jax.random.normal(next(kit), shape, dtype=F32)

    ones = lambda *s: jnp.ones(s, F32)
    zeros = lambda *s: jnp.zeros(s, F32)

    def resnet_params():
        return dict(
            norm1_g=ones(C), norm1_b=zeros(C),
            conv1_w=w(C, C, 3), conv1_b=w(C, scale=0.01),
            time_w=w(C, temb_ch), time_b=w(C, scale=0.01),
            norm2_g=ones(C), norm2_b=zeros(C),
            conv2_w=w(C, C, 3), conv2_b=w(C, scale=0.01),
        )

    def attn_params(kv_dim):
        return dict(
            to_q=w(C, C), to_k=w(C, kv_dim), to_v=w(C, kv_dim),
            to_out_w=w(C, C), to_out_b=w(C, scale=0.01),
        )

    def transformer_params():
        return dict(
            gn_g=ones(C), gn_b=zeros(C),
            proj_in_w=w(C, C, 1), proj_in_b=w(C, scale=0.01),
            block=dict(
                ln1_g=ones(C), ln1_b=zeros(C),
                attn1=attn_params(C),
                ln2_g=ones(C), ln2_b=zeros(C),
                attn2=attn_params(cross_dim),
                ln3_g=ones(C), ln3_b=zeros(C),
                ff1_w=w(8 * C, C), ff1_b=w(8 * C, scale=0.01),   # GEGLU: dim -> 2*(4*dim)
                ff2_w=w(C, 4 * C), ff2_b=w(C, scale=0.01),
            ),
            proj_out_w=w(C, C, 1), proj_out_b=w(C, scale=0.01),
        )

    return dict(
        resnets=[resnet_params() for _ in range(num_layers + 1)],
        attentions=[transformer_params() for _ in range(num_layers)],
    )


# ==================================== main ===================================
if __name__ == "__main__":
    # Small, self-consistent shapes:
    B, C, L = 2, 32, 16          # batch, in_channels, sequence length
    TEMB = 64                    # temb_channels
    CROSS, S = 64, 8             # cross_attention_dim, encoder sequence length
    GROUPS = 8                   # resnet_groups (divides C)
    HEADS = 4                    # attn_num_head_channels -> head_dim = C // HEADS = 8
    NUM_LAYERS = 1

    key = jax.random.PRNGKey(0)
    k_x, k_t, k_e, k_p = jax.random.split(key, 4)

    params = init_unet_mid_block_params(k_p, C=C, temb_ch=TEMB,
                                        cross_dim=CROSS, num_layers=NUM_LAYERS)
    hidden_states = jax.random.normal(k_x, (B, C, L), dtype=F32)        # NCL like PyTorch
    temb = jax.random.normal(k_t, (B, TEMB), dtype=F32)
    encoder_hidden_states = jax.random.normal(k_e, (B, S, CROSS), dtype=F32)

    out = unet_mid_block_1d_cross_attn(params, hidden_states, temb,
                                       encoder_hidden_states,
                                       groups=GROUPS, heads=HEADS)
    out = jax.block_until_ready(out)
    assert out.shape == (B, C, L), out.shape
    assert bool(jnp.all(jnp.isfinite(out)))
    print("KERNEL_OK")
</pallas_src>

<mosaic_0001>
module attributes {stable_mosaic.version = 11 : i64} {
  func.func @_resnet_part2_kernel(%arg0: i32, %arg1: memref<1x16x32xf32, #tpu.memory_space<vmem>>, %arg2: memref<1x32xf32, #tpu.memory_space<vmem>>, %arg3: memref<1x32xf32, #tpu.memory_space<vmem>>, %arg4: memref<32x32xf32, #tpu.memory_space<vmem>>, %arg5: memref<3x32x32xbf16, #tpu.memory_space<vmem>>, %arg6: memref<1x32xf32, #tpu.memory_space<vmem>>, %arg7: memref<1x16x32xf32, #tpu.memory_space<vmem>>, %arg8: memref<1x16x32xf32, #tpu.memory_space<vmem>>) attributes {dimension_semantics = [#tpu.dimension_semantics<parallel>], iteration_bounds = array<i64: 2>, scalar_prefetch = 0 : i64, scratch_operands = 0 : i64, tpu.core_type = #tpu.core_type<tc>, window_params = [{transform_indices = @transform_0, window_bounds = array<i64: 1, 16, 32>}, {pipeline_mode = #tpu.pipeline_mode<synchronous>, transform_indices = @transform_1, window_bounds = array<i64: 1, 32>}, {pipeline_mode = #tpu.pipeline_mode<synchronous>, transform_indices = @transform_2, window_bounds = array<i64: 1, 32>}, {pipeline_mode = #tpu.pipeline_mode<synchronous>, transform_indices = @transform_3, window_bounds = array<i64: 32, 32>}, {pipeline_mode = #tpu.pipeline_mode<synchronous>, transform_indices = @transform_4, window_bounds = array<i64: 3, 32, 32>}, {pipeline_mode = #tpu.pipeline_mode<synchronous>, transform_indices = @transform_5, window_bounds = array<i64: 1, 32>}, {transform_indices = @transform_6, window_bounds = array<i64: 1, 16, 32>}, {transform_indices = @transform_7, window_bounds = array<i64: 1, 16, 32>}]} {
    %c0 = arith.constant 0 : index
    %c0_0 = arith.constant 0 : index
    %c0_1 = arith.constant 0 : index
    %0 = vector.load %arg1[%c0, %c0_0, %c0_1] : memref<1x16x32xf32, #tpu.memory_space<vmem>>, vector<1x16x32xf32>
    %1 = vector.shape_cast %0 : vector<1x16x32xf32> to vector<16x32xf32>
    %c0_2 = arith.constant 0 : index
    %c0_3 = arith.constant 0 : index
    %2 = vector.load %arg4[%c0_2, %c0_3] : memref<32x32xf32, #tpu.memory_space<vmem>>, vector<32x32xf32>
    %c0_4 = arith.constant 0 : index
    %c0_5 = arith.constant 0 : index
    %3 = vector.load %arg2[%c0_4, %c0_5] : memref<1x32xf32, #tpu.memory_space<vmem>>, vector<1x32xf32>
    %c0_6 = arith.constant 0 : index
    %c0_7 = arith.constant 0 : index
    %4 = vector.load %arg3[%c0_6, %c0_7] : memref<1x32xf32, #tpu.memory_space<vmem>>, vector<1x32xf32>
    %cst = arith.constant dense<0.000000e+00> : vector<32xf32>
    %5 = vector.multi_reduction <add>, %1, %cst [0] : vector<16x32xf32> to vector<32xf32>
    %6 = vector.shape_cast %5 : vector<32xf32> to vector<1x32xf32>
    %7 = arith.mulf %1, %1 : vector<16x32xf32>
    %cst_8 = arith.constant dense<0.000000e+00> : vector<32xf32>
    %8 = vector.multi_reduction <add>, %7, %cst_8 [0] : vector<16x32xf32> to vector<32xf32>
    %9 = vector.shape_cast %8 : vector<32xf32> to vector<1x32xf32>
    %cst_9 = arith.constant dense<0.000000e+00> : vector<1x32xf32>
    %10 = tpu.matmul %6, %2, %cst_9 {dimension_numbers = #tpu.dot_dimension_numbers<[1], [0], [0], [1], [0, 0, 1, 1], [], []>} : vector<1x32xf32>, vector<32x32xf32>, vector<1x32xf32> -> vector<1x32xf32>
    %cst_10 = arith.constant 1.562500e-02 : f32
    %11 = vector.broadcast %cst_10 : f32 to vector<1x32xf32>
    %12 = arith.mulf %10, %11 : vector<1x32xf32>
    %cst_11 = arith.constant dense<0.000000e+00> : vector<1x32xf32>
    %13 = tpu.matmul %9, %2, %cst_11 {dimension_numbers = #tpu.dot_dimension_numbers<[1], [0], [0], [1], [0, 0, 1, 1], [], []>} : vector<1x32xf32>, vector<32x32xf32>, vector<1x32xf32> -> vector<1x32xf32>
    %cst_12 = arith.constant 1.562500e-02 : f32
    %14 = vector.broadcast %cst_12 : f32 to vector<1x32xf32>
    %15 = arith.mulf %13, %14 : vector<1x32xf32>
    %16 = arith.mulf %12, %12 : vector<1x32xf32>
    %17 = arith.subf %15, %16 : vector<1x32xf32>
    %cst_13 = arith.constant 0.000000e+00 : f32
    %18 = vector.broadcast %cst_13 : f32 to vector<1x32xf32>
    %19 = arith.maximumf %17, %18 : vector<1x32xf32>
    %20 = vector.broadcast %12 : vector<1x32xf32> to vector<16x32xf32>
    %21 = arith.subf %1, %20 : vector<16x32xf32>
    %cst_14 = arith.constant 9.99999997E-7 : f32
    %22 = vector.broadcast %cst_14 : f32 to vector<1x32xf32>
    %23 = arith.addf %19, %22 : vector<1x32xf32>
    %24 = math.rsqrt %23 : vector<1x32xf32>
    %25 = vector.broadcast %24 : vector<1x32xf32> to vector<16x32xf32>
    %26 = arith.mulf %21, %25 : vector<16x32xf32>
    %27 = vector.broadcast %3 : vector<1x32xf32> to vector<16x32xf32>
    %28 = arith.mulf %26, %27 : vector<16x32xf32>
    %29 = vector.broadcast %4 : vector<1x32xf32> to vector<16x32xf32>
    %30 = arith.addf %28, %29 : vector<16x32xf32>
    %31 = arith.negf %30 : vector<16x32xf32>
    %32 = math.exp %31 : vector<16x32xf32>
    %cst_15 = arith.constant 1.000000e+00 : f32
    %33 = vector.broadcast %cst_15 : f32 to vector<16x32xf32>
    %34 = arith.addf %33, %32 : vector<16x32xf32>
    %35 = arith.divf %33, %34 : vector<16x32xf32>
    %36 = arith.mulf %30, %35 : vector<16x32xf32>
    %c0_16 = arith.constant 0 : index
    %c0_17 = arith.constant 0 : index
    %37 = vector.load %arg6[%c0_16, %c0_17] : memref<1x32xf32, #tpu.memory_space<vmem>>, vector<1x32xf32>
    %38 = tpu.iota {dimensions = array<i32: 0>} : vector<16x32xi32>
    %39 = arith.truncf %36 : vector<16x32xf32> to vector<16x32xbf16>
    %c0_i32 = arith.constant 0 : i32
    %40 = vector.broadcast %c0_i32 : i32 to vector<16x32xi32>
    %41 = arith.cmpi eq, %38, %40 : vector<16x32xi32>
    %c1_i32 = arith.constant 1 : i32
    %42 = tpu.dynamic_rotate %36 by %c1_i32 dim 0 : vector<16x32xf32>, i32 -> vector<16x32xf32>
    %cst_18 = arith.constant 0.000000e+00 : f32
    %43 = vector.broadcast %cst_18 : f32 to vector<16x32xf32>
    %44 = arith.select %41, %43, %42 : vector<16x32xi1>, vector<16x32xf32>
    %45 = arith.truncf %44 : vector<16x32xf32> to vector<16x32xbf16>
    %c15_i32 = arith.constant 15 : i32
    %46 = vector.broadcast %c15_i32 : i32 to vector<16x32xi32>
    %47 = arith.cmpi eq, %38, %46 : vector<16x32xi32>
    %c15_i32_19 = arith.constant 15 : i32
    %48 = tpu.dynamic_rotate %36 by %c15_i32_19 dim 0 : vector<16x32xf32>, i32 -> vector<16x32xf32>
    %cst_20 = arith.constant 0.000000e+00 : f32
    %49 = vector.broadcast %cst_20 : f32 to vector<16x32xf32>
    %50 = arith.select %47, %49, %48 : vector<16x32xi1>, vector<16x32xf32>
    %51 = arith.truncf %50 : vector<16x32xf32> to vector<16x32xbf16>
    %c0_21 = arith.constant 0 : index
    %c0_22 = arith.constant 0 : index
    %c0_23 = arith.constant 0 : index
    %52 = vector.load %arg5[%c0_21, %c0_22, %c0_23] : memref<3x32x32xbf16, #tpu.memory_space<vmem>>, vector<1x32x32xbf16>
    %53 = vector.shape_cast %52 : vector<1x32x32xbf16> to vector<32x32xbf16>
    %cst_24 = arith.constant dense<0.000000e+00> : vector<16x32xf32>
    %54 = tpu.matmul %45, %53, %cst_24 {dimension_numbers = #tpu.dot_dimension_numbers<[1], [0], [0], [1], [0, 0, 1, 1], [], []>} : vector<16x32xbf16>, vector<32x32xbf16>, vector<16x32xf32> -> vector<16x32xf32>
    %c1 = arith.constant 1 : index
    %c0_25 = arith.constant 0 : index
    %c0_26 = arith.constant 0 : index
    %55 = vector.load %arg5[%c1, %c0_25, %c0_26] : memref<3x32x32xbf16, #tpu.memory_space<vmem>>, vector<1x32x32xbf16>
    %56 = vector.shape_cast %55 : vector<1x32x32xbf16> to vector<32x32xbf16>
    %cst_27 = arith.constant dense<0.000000e+00> : vector<16x32xf32>
    %57 = tpu.matmul %39, %56, %cst_27 {dimension_numbers = #tpu.dot_dimension_numbers<[1], [0], [0], [1], [0, 0, 1, 1], [], []>} : vector<16x32xbf16>, vector<32x32xbf16>, vector<16x32xf32> -> vector<16x32xf32>
    %58 = arith.addf %54, %57 : vector<16x32xf32>
    %c2 = arith.constant 2 : index
    %c0_28 = arith.constant 0 : index
    %c0_29 = arith.constant 0 : index
    %59 = vector.load %arg5[%c2, %c0_28, %c0_29] : memref<3x32x32xbf16, #tpu.memory_space<vmem>>, vector<1x32x32xbf16>
    %60 = vector.shape_cast %59 : vector<1x32x32xbf16> to vector<32x32xbf16>
    %cst_30 = arith.constant dense<0.000000e+00> : vector<16x32xf32>
    %61 = tpu.matmul %51, %60, %cst_30 {dimension_numbers = #tpu.dot_dimension_numbers<[1], [0], [0], [1], [0, 0, 1, 1], [], []>} : vector<16x32xbf16>, vector<32x32xbf16>, vector<16x32xf32> -> vector<16x32xf32>
    %62 = arith.addf %58, %61 : vector<16x32xf32>
    %63 = vector.broadcast %37 : vector<1x32xf32> to vector<16x32xf32>
    %64 = arith.addf %62, %63 : vector<16x32xf32>
    %c0_31 = arith.constant 0 : index
    %c0_32 = arith.constant 0 : index
    %c0_33 = arith.constant 0 : index
    %65 = vector.load %arg7[%c0_31, %c0_32, %c0_33] : memref<1x16x32xf32, #tpu.memory_space<vmem>>, vector<1x16x32xf32>
    %66 = vector.shape_cast %65 : vector<1x16x32xf32> to vector<16x32xf32>
    %67 = arith.addf %66, %64 : vector<16x32xf32>
    %cst_34 = arith.constant 1.000000e+00 : f32
    %68 = vector.broadcast %cst_34 : f32 to vector<16x32xf32>
    %69 = arith.mulf %67, %68 : vector<16x32xf32>
    %c0_35 = arith.constant 0 : index
    %c0_36 = arith.constant 0 : index
    %c0_37 = arith.constant 0 : index
    %70 = vector.load %arg8[%c0_35, %c0_36, %c0_37] : memref<1x16x32xf32, #tpu.memory_space<vmem>>, vector<1x16x32xf32>
    %71 = vector.shape_cast %70 : vector<1x16x32xf32> to vector<16x32xf32>
    %72 = vector.shape_cast %69 : vector<16x32xf32> to vector<1x16x32xf32>
    tpu.vector_store %arg8[%c0_35, %c0_36, %c0_37], %72 {strides = array<i32>} : memref<1x16x32xf32, #tpu.memory_space<vmem>>, vector<1x16x32xf32>,
    return
  }
  func.func @transform_0(%arg0: i32) -> (i32, i32, i32) {
    %c0_i32 = arith.constant 0 : i32
    %c0_i32_0 = arith.constant 0 : i32
    %c0_i32_1 = arith.constant 0 : i32
    return %arg0, %c0_i32, %c0_i32_0 : i32, i32, i32
  }
  func.func @transform_1(%arg0: i32) -> (i32, i32) {
    %c0_i32 = arith.constant 0 : i32
    %c0_i32_0 = arith.constant 0 : i32
    %c0_i32_1 = arith.constant 0 : i32
    return %c0_i32, %c0_i32_0 : i32, i32
  }
  func.func @transform_2(%arg0: i32) -> (i32, i32) {
    %c0_i32 = arith.constant 0 : i32
    %c0_i32_0 = arith.constant 0 : i32
    %c0_i32_1 = arith.constant 0 : i32
    return %c0_i32, %c0_i32_0 : i32, i32
  }
  func.func @transform_3(%arg0: i32) -> (i32, i32) {
    %c0_i32 = arith.constant 0 : i32
    %c0_i32_0 = arith.constant 0 : i32
    %c0_i32_1 = arith.constant 0 : i32
    return %c0_i32, %c0_i32_0 : i32, i32
  }
  func.func @transform_4(%arg0: i32) -> (i32, i32, i32) {
    %c0_i32 = arith.constant 0 : i32
    %c0_i32_0 = arith.constant 0 : i32
    %c0_i32_1 = arith.constant 0 : i32
    %c0_i32_2 = arith.constant 0 : i32
    return %c0_i32, %c0_i32_0, %c0_i32_1 : i32, i32, i32
  }
  func.func @transform_5(%arg0: i32) -> (i32, i32) {
    %c0_i32 = arith.constant 0 : i32
    %c0_i32_0 = arith.constant 0 : i32
    %c0_i32_1 = arith.constant 0 : i32
    return %c0_i32, %c0_i32_0 : i32, i32
  }
  func.func @transform_6(%arg0: i32) -> (i32, i32, i32) {
    %c0_i32 = arith.constant 0 : i32
    %c0_i32_0 = arith.constant 0 : i32
    %c0_i32_1 = arith.constant 0 : i32
    return %arg0, %c0_i32, %c0_i32_0 : i32, i32, i32
  }
  func.func @transform_7(%arg0: i32) -> (i32, i32, i32) {
    %c0_i32 = arith.constant 0 : i32
    %c0_i32_0 = arith.constant 0 : i32
    %c0_i32_1 = arith.constant 0 : i32
    return %arg0, %c0_i32, %c0_i32_0 : i32, i32, i32
  }
}

module attributes {stable_mosaic.version = 11 : i64} {
  func.func @_resnet_part1_kernel(%arg0: i32, %arg1: memref<1x16x32xf32, #tpu.memory_space<vmem>>, %arg2: memref<1x32xf32, #tpu.memory_space<vmem>>, %arg3: memref<1x32xf32, #tpu.memory_space<vmem>>, %arg4: memref<32x32xf32, #tpu.memory_space<vmem>>, %arg5: memref<3x32x32xbf16, #tpu.memory_space<vmem>>, %arg6: memref<1x32xf32, #tpu.memory_space<vmem>>, %arg7: memref<1x1x64xf32, #tpu.memory_space<vmem>>, %arg8: memref<64x32xbf16, #tpu.memory_space<vmem>>, %arg9: memref<1x32xf32, #tpu.memory_space<vmem>>, %arg10: memref<1x16x32xf32, #tpu.memory_space<vmem>>) attributes {dimension_semantics = [#tpu.dimension_semantics<parallel>], iteration_bounds = array<i64: 2>, scalar_prefetch = 0 : i64, scratch_operands = 0 : i64, tpu.core_type = #tpu.core_type<tc>, window_params = [{transform_indices = @transform_0, window_bounds = array<i64: 1, 16, 32>}, {pipeline_mode = #tpu.pipeline_mode<synchronous>, transform_indices = @transform_1, window_bounds = array<i64: 1, 32>}, {pipeline_mode = #tpu.pipeline_mode<synchronous>, transform_indices = @transform_2, window_bounds = array<i64: 1, 32>}, {pipeline_mode = #tpu.pipeline_mode<synchronous>, transform_indices = @transform_3, window_bounds = array<i64: 32, 32>}, {pipeline_mode = #tpu.pipeline_mode<synchronous>, transform_indices = @transform_4, window_bounds = array<i64: 3, 32, 32>}, {pipeline_mode = #tpu.pipeline_mode<synchronous>, transform_indices = @transform_5, window_bounds = array<i64: 1, 32>}, {transform_indices = @transform_6, window_bounds = array<i64: 1, 1, 64>}, {pipeline_mode = #tpu.pipeline_mode<synchronous>, transform_indices = @transform_7, window_bounds = array<i64: 64, 32>}, {pipeline_mode = #tpu.pipeline_mode<synchronous>, transform_indices = @transform_8, window_bounds = array<i64: 1, 32>}, {transform_indices = @transform_9, window_bounds = array<i64: 1, 16, 32>}]} {
    %c0 = arith.constant 0 : index
    %c0_0 = arith.constant 0 : index
    %c0_1 = arith.constant 0 : index
    %0 = vector.load %arg1[%c0, %c0_0, %c0_1] : memref<1x16x32xf32, #tpu.memory_space<vmem>>, vector<1x16x32xf32>
    %1 = vector.shape_cast %0 : vector<1x16x32xf32> to vector<16x32xf32>
    %c0_2 = arith.constant 0 : index
    %c0_3 = arith.constant 0 : index
    %2 = vector.load %arg4[%c0_2, %c0_3] : memref<32x32xf32, #tpu.memory_space<vmem>>, vector<32x32xf32>
    %c0_4 = arith.constant 0 : index
    %c0_5 = arith.constant 0 : index
    %3 = vector.load %arg2[%c0_4, %c0_5] : memref<1x32xf32, #tpu.memory_space<vmem>>, vector<1x32xf32>
    %c0_6 = arith.constant 0 : index
    %c0_7 = arith.constant 0 : index
    %4 = vector.load %arg3[%c0_6, %c0_7] : memref<1x32xf32, #tpu.memory_space<vmem>>, vector<1x32xf32>
    %cst = arith.constant dense<0.000000e+00> : vector<32xf32>
    %5 = vector.multi_reduction <add>, %1, %cst [0] : vector<16x32xf32> to vector<32xf32>
    %6 = vector.shape_cast %5 : vector<32xf32> to vector<1x32xf32>
    %7 = arith.mulf %1, %1 : vector<16x32xf32>
    %cst_8 = arith.constant dense<0.000000e+00> : vector<32xf32>
    %8 = vector.multi_reduction <add>, %7, %cst_8 [0] : vector<16x32xf32> to vector<32xf32>
    %9 = vector.shape_cast %8 : vector<32xf32> to vector<1x32xf32>
    %cst_9 = arith.constant dense<0.000000e+00> : vector<1x32xf32>
    %10 = tpu.matmul %6, %2, %cst_9 {dimension_numbers = #tpu.dot_dimension_numbers<[1], [0], [0], [1], [0, 0, 1, 1], [], []>} : vector<1x32xf32>, vector<32x32xf32>, vector<1x32xf32> -> vector<1x32xf32>
    %cst_10 = arith.constant 1.562500e-02 : f32
    %11 = vector.broadcast %cst_10 : f32 to vector<1x32xf32>
    %12 = arith.mulf %10, %11 : vector<1x32xf32>
    %cst_11 = arith.constant dense<0.000000e+00> : vector<1x32xf32>
    %13 = tpu.matmul %9, %2, %cst_11 {dimension_numbers = #tpu.dot_dimension_numbers<[1], [0], [0], [1], [0, 0, 1, 1], [], []>} : vector<1x32xf32>, vector<32x32xf32>, vector<1x32xf32> -> vector<1x32xf32>
    %cst_12 = arith.constant 1.562500e-02 : f32
    %14 = vector.broadcast %cst_12 : f32 to vector<1x32xf32>
    %15 = arith.mulf %13, %14 : vector<1x32xf32>
    %16 = arith.mulf %12, %12 : vector<1x32xf32>
    %17 = arith.subf %15, %16 : vector<1x32xf32>
    %cst_13 = arith.constant 0.000000e+00 : f32
    %18 = vector.broadcast %cst_13 : f32 to vector<1x32xf32>
    %19 = arith.maximumf %17, %18 : vector<1x32xf32>
    %20 = vector.broadcast %12 : vector<1x32xf32> to vector<16x32xf32>
    %21 = arith.subf %1, %20 : vector<16x32xf32>
    %cst_14 = arith.constant 9.99999997E-7 : f32
    %22 = vector.broadcast %cst_14 : f32 to vector<1x32xf32>
    %23 = arith.addf %19, %22 : vector<1x32xf32>
    %24 = math.rsqrt %23 : vector<1x32xf32>
    %25 = vector.broadcast %24 : vector<1x32xf32> to vector<16x32xf32>
    %26 = arith.mulf %21, %25 : vector<16x32xf32>
    %27 = vector.broadcast %3 : vector<1x32xf32> to vector<16x32xf32>
    %28 = arith.mulf %26, %27 : vector<16x32xf32>
    %29 = vector.broadcast %4 : vector<1x32xf32> to vector<16x32xf32>
    %30 = arith.addf %28, %29 : vector<16x32xf32>
    %31 = arith.negf %30 : vector<16x32xf32>
    %32 = math.exp %31 : vector<16x32xf32>
    %cst_15 = arith.constant 1.000000e+00 : f32
    %33 = vector.broadcast %cst_15 : f32 to vector<16x32xf32>
    %34 = arith.addf %33, %32 : vector<16x32xf32>
    %35 = arith.divf %33, %34 : vector<16x32xf32>
    %36 = arith.mulf %30, %35 : vector<16x32xf32>
    %c0_16 = arith.constant 0 : index
    %c0_17 = arith.constant 0 : index
    %37 = vector.load %arg6[%c0_16, %c0_17] : memref<1x32xf32, #tpu.memory_space<vmem>>, vector<1x32xf32>
    %38 = tpu.iota {dimensions = array<i32: 0>} : vector<16x32xi32>
    %39 = arith.truncf %36 : vector<16x32xf32> to vector<16x32xbf16>
    %c0_i32 = arith.constant 0 : i32
    %40 = vector.broadcast %c0_i32 : i32 to vector<16x32xi32>
    %41 = arith.cmpi eq, %38, %40 : vector<16x32xi32>
    %c1_i32 = arith.constant 1 : i32
    %42 = tpu.dynamic_rotate %36 by %c1_i32 dim 0 : vector<16x32xf32>, i32 -> vector<16x32xf32>
    %cst_18 = arith.constant 0.000000e+00 : f32
    %43 = vector.broadcast %cst_18 : f32 to vector<16x32xf32>
    %44 = arith.select %41, %43, %42 : vector<16x32xi1>, vector<16x32xf32>
    %45 = arith.truncf %44 : vector<16x32xf32> to vector<16x32xbf16>
    %c15_i32 = arith.constant 15 : i32
    %46 = vector.broadcast %c15_i32 : i32 to vector<16x32xi32>
    %47 = arith.cmpi eq, %38, %46 : vector<16x32xi32>
    %c15_i32_19 = arith.constant 15 : i32
    %48 = tpu.dynamic_rotate %36 by %c15_i32_19 dim 0 : vector<16x32xf32>, i32 -> vector<16x32xf32>
    %cst_20 = arith.constant 0.000000e+00 : f32
    %49 = vector.broadcast %cst_20 : f32 to vector<16x32xf32>
    %50 = arith.select %47, %49, %48 : vector<16x32xi1>, vector<16x32xf32>
    %51 = arith.truncf %50 : vector<16x32xf32> to vector<16x32xbf16>
    %c0_21 = arith.constant 0 : index
    %c0_22 = arith.constant 0 : index
    %c0_23 = arith.constant 0 : index
    %52 = vector.load %arg5[%c0_21, %c0_22, %c0_23] : memref<3x32x32xbf16, #tpu.memory_space<vmem>>, vector<1x32x32xbf16>
    %53 = vector.shape_cast %52 : vector<1x32x32xbf16> to vector<32x32xbf16>
    %cst_24 = arith.constant dense<0.000000e+00> : vector<16x32xf32>
    %54 = tpu.matmul %45, %53, %cst_24 {dimension_numbers = #tpu.dot_dimension_numbers<[1], [0], [0], [1], [0, 0, 1, 1], [], []>} : vector<16x32xbf16>, vector<32x32xbf16>, vector<16x32xf32> -> vector<16x32xf32>
    %c1 = arith.constant 1 : index
    %c0_25 = arith.constant 0 : index
    %c0_26 = arith.constant 0 : index
    %55 = vector.load %arg5[%c1, %c0_25, %c0_26] : memref<3x32x32xbf16, #tpu.memory_space<vmem>>, vector<1x32x32xbf16>
    %56 = vector.shape_cast %55 : vector<1x32x32xbf16> to vector<32x32xbf16>
    %cst_27 = arith.constant dense<0.000000e+00> : vector<16x32xf32>
    %57 = tpu.matmul %39, %56, %cst_27 {dimension_numbers = #tpu.dot_dimension_numbers<[1], [0], [0], [1], [0, 0, 1, 1], [], []>} : vector<16x32xbf16>, vector<32x32xbf16>, vector<16x32xf32> -> vector<16x32xf32>
    %58 = arith.addf %54, %57 : vector<16x32xf32>
    %c2 = arith.constant 2 : index
    %c0_28 = arith.constant 0 : index
    %c0_29 = arith.constant 0 : index
    %59 = vector.load %arg5[%c2, %c0_28, %c0_29] : memref<3x32x32xbf16, #tpu.memory_space<vmem>>, vector<1x32x32xbf16>
    %60 = vector.shape_cast %59 : vector<1x32x32xbf16> to vector<32x32xbf16>
    %cst_30 = arith.constant dense<0.000000e+00> : vector<16x32xf32>
    %61 = tpu.matmul %51, %60, %cst_30 {dimension_numbers = #tpu.dot_dimension_numbers<[1], [0], [0], [1], [0, 0, 1, 1], [], []>} : vector<16x32xbf16>, vector<32x32xbf16>, vector<16x32xf32> -> vector<16x32xf32>
    %62 = arith.addf %58, %61 : vector<16x32xf32>
    %63 = vector.broadcast %37 : vector<1x32xf32> to vector<16x32xf32>
    %64 = arith.addf %62, %63 : vector<16x32xf32>
    %c0_31 = arith.constant 0 : index
    %c0_32 = arith.constant 0 : index
    %c0_33 = arith.constant 0 : index
    %65 = vector.load %arg7[%c0_31, %c0_32, %c0_33] : memref<1x1x64xf32, #tpu.memory_space<vmem>>, vector<1x1x64xf32>
    %66 = vector.shape_cast %65 : vector<1x1x64xf32> to vector<1x64xf32>
    %67 = arith.negf %66 : vector<1x64xf32>
    %68 = math.exp %67 : vector<1x64xf32>
    %cst_34 = arith.constant 1.000000e+00 : f32
    %69 = vector.broadcast %cst_34 : f32 to vector<1x64xf32>
    %70 = arith.addf %69, %68 : vector<1x64xf32>
    %71 = arith.divf %69, %70 : vector<1x64xf32>
    %72 = arith.mulf %66, %71 : vector<1x64xf32>
    %73 = arith.truncf %72 : vector<1x64xf32> to vector<1x64xbf16>
    %c0_35 = arith.constant 0 : index
    %c0_36 = arith.constant 0 : index
    %74 = vector.load %arg8[%c0_35, %c0_36] : memref<64x32xbf16, #tpu.memory_space<vmem>>, vector<64x32xbf16>
    %cst_37 = arith.constant dense<0.000000e+00> : vector<1x32xf32>
    %75 = tpu.matmul %73, %74, %cst_37 {dimension_numbers = #tpu.dot_dimension_numbers<[1], [0], [0], [1], [0, 0, 1, 1], [], []>} : vector<1x64xbf16>, vector<64x32xbf16>, vector<1x32xf32> -> vector<1x32xf32>
    %c0_38 = arith.constant 0 : index
    %c0_39 = arith.constant 0 : index
    %76 = vector.load %arg9[%c0_38, %c0_39] : memref<1x32xf32, #tpu.memory_space<vmem>>, vector<1x32xf32>
    %77 = arith.addf %75, %76 : vector<1x32xf32>
    %78 = vector.broadcast %77 : vector<1x32xf32> to vector<16x32xf32>
    %79 = arith.addf %64, %78 : vector<16x32xf32>
    %c0_40 = arith.constant 0 : index
    %c0_41 = arith.constant 0 : index
    %c0_42 = arith.constant 0 : index
    %80 = vector.load %arg10[%c0_40, %c0_41, %c0_42] : memref<1x16x32xf32, #tpu.memory_space<vmem>>, vector<1x16x32xf32>
    %81 = vector.shape_cast %80 : vector<1x16x32xf32> to vector<16x32xf32>
    %82 = vector.shape_cast %79 : vector<16x32xf32> to vector<1x16x32xf32>
    tpu.vector_store %arg10[%c0_40, %c0_41, %c0_42], %82 {strides = array<i32>} : memref<1x16x32xf32, #tpu.memory_space<vmem>>, vector<1x16x32xf32>,
    return
  }
  func.func @transform_0(%arg0: i32) -> (i32, i32, i32) {
    %c0_i32 = arith.constant 0 : i32
    %c0_i32_0 = arith.constant 0 : i32
    %c0_i32_1 = arith.constant 0 : i32
    return %arg0, %c0_i32, %c0_i32_0 : i32, i32, i32
  }
  func.func @transform_1(%arg0: i32) -> (i32, i32) {
    %c0_i32 = arith.constant 0 : i32
    %c0_i32_0 = arith.constant 0 : i32
    %c0_i32_1 = arith.constant 0 : i32
    return %c0_i32, %c0_i32_0 : i32, i32
  }
  func.func @transform_2(%arg0: i32) -> (i32, i32) {
    %c0_i32 = arith.constant 0 : i32
    %c0_i32_0 = arith.constant 0 : i32
    %c0_i32_1 = arith.constant 0 : i32
    return %c0_i32, %c0_i32_0 : i32, i32
  }
  func.func @transform_3(%arg0: i32) -> (i32, i32) {
    %c0_i32 = arith.constant 0 : i32
    %c0_i32_0 = arith.constant 0 : i32
    %c0_i32_1 = arith.constant 0 : i32
    return %c0_i32, %c0_i32_0 : i32, i32
  }
  func.func @transform_4(%arg0: i32) -> (i32, i32, i32) {
    %c0_i32 = arith.constant 0 : i32
    %c0_i32_0 = arith.constant 0 : i32
    %c0_i32_1 = arith.constant 0 : i32
    %c0_i32_2 = arith.constant 0 : i32
    return %c0_i32, %c0_i32_0, %c0_i32_1 : i32, i32, i32
  }
  func.func @transform_5(%arg0: i32) -> (i32, i32) {
    %c0_i32 = arith.constant 0 : i32
    %c0_i32_0 = arith.constant 0 : i32
    %c0_i32_1 = arith.constant 0 : i32
    return %c0_i32, %c0_i32_0 : i32, i32
  }
  func.func @transform_6(%arg0: i32) -> (i32, i32, i32) {
    %c0_i32 = arith.constant 0 : i32
    %c0_i32_0 = arith.constant 0 : i32
    %c0_i32_1 = arith.constant 0 : i32
    return %arg0, %c0_i32, %c0_i32_0 : i32, i32, i32
  }
  func.func @transform_7(%arg0: i32) -> (i32, i32) {
    %c0_i32 = arith.constant 0 : i32
    %c0_i32_0 = arith.constant 0 : i32
    %c0_i32_1 = arith.constant 0 : i32
    return %c0_i32, %c0_i32_0 : i32, i32
  }
  func.func @transform_8(%arg0: i32) -> (i32, i32) {
    %c0_i32 = arith.constant 0 : i32
    %c0_i32_0 = arith.constant 0 : i32
    %c0_i32_1 = arith.constant 0 : i32
    return %c0_i32, %c0_i32_0 : i32, i32
  }
  func.func @transform_9(%arg0: i32) -> (i32, i32, i32) {
    %c0_i32 = arith.constant 0 : i32
    %c0_i32_0 = arith.constant 0 : i32
    %c0_i32_1 = arith.constant 0 : i32
    return %arg0, %c0_i32, %c0_i32_0 : i32, i32, i32
  }
}

module attributes {stable_mosaic.version = 11 : i64} {
  func.func @_selfattn_kernel(%arg0: i32, %arg1: memref<1x16x32xf32, #tpu.memory_space<vmem>>, %arg2: memref<1x32xf32, #tpu.memory_space<vmem>>, %arg3: memref<1x32xf32, #tpu.memory_space<vmem>>, %arg4: memref<32x32xf32, #tpu.memory_space<vmem>>, %arg5: memref<32x32xbf16, #tpu.memory_space<vmem>>, %arg6: memref<1x32xf32, #tpu.memory_space<vmem>>, %arg7: memref<1x32xf32, #tpu.memory_space<vmem>>, %arg8: memref<1x32xf32, #tpu.memory_space<vmem>>, %arg9: memref<4x32x8xbf16, #tpu.memory_space<vmem>>, %arg10: memref<4x32x8xbf16, #tpu.memory_space<vmem>>, %arg11: memref<4x32x8xbf16, #tpu.memory_space<vmem>>, %arg12: memref<4x8x32xbf16, #tpu.memory_space<vmem>>, %arg13: memref<1x32xf32, #tpu.memory_space<vmem>>, %arg14: memref<1x16x32xf32, #tpu.memory_space<vmem>>) attributes {dimension_semantics = [#tpu.dimension_semantics<parallel>], iteration_bounds = array<i64: 2>, scalar_prefetch = 0 : i64, scratch_operands = 0 : i64, tpu.core_type = #tpu.core_type<tc>, window_params = [{transform_indices = @transform_0, window_bounds = array<i64: 1, 16, 32>}, {pipeline_mode = #tpu.pipeline_mode<synchronous>, transform_indices = @transform_1, window_bounds = array<i64: 1, 32>}, {pipeline_mode = #tpu.pipeline_mode<synchronous>, transform_indices = @transform_2, window_bounds = array<i64: 1, 32>}, {pipeline_mode = #tpu.pipeline_mode<synchronous>, transform_indices = @transform_3, window_bounds = array<i64: 32, 32>}, {pipeline_mode = #tpu.pipeline_mode<synchronous>, transform_indices = @transform_4, window_bounds = array<i64: 32, 32>}, {pipeline_mode = #tpu.pipeline_mode<synchronous>, transform_indices = @transform_5, window_bounds = array<i64: 1, 32>}, {pipeline_mode = #tpu.pipeline_mode<synchronous>, transform_indices = @transform_6, window_bounds = array<i64: 1, 32>}, {pipeline_mode = #tpu.pipeline_mode<synchronous>, transform_indices = @transform_7, window_bounds = array<i64: 1, 32>}, {pipeline_mode = #tpu.pipeline_mode<synchronous>, transform_indices = @transform_8, window_bounds = array<i64: 4, 32, 8>}, {pipeline_mode = #tpu.pipeline_mode<synchronous>, transform_indices = @transform_9, window_bounds = array<i64: 4, 32, 8>}, {pipeline_mode = #tpu.pipeline_mode<synchronous>, transform_indices = @transform_10, window_bounds = array<i64: 4, 32, 8>}, {pipeline_mode = #tpu.pipeline_mode<synchronous>, transform_indices = @transform_11, window_bounds = array<i64: 4, 8, 32>}, {pipeline_mode = #tpu.pipeline_mode<synchronous>, transform_indices = @transform_12, window_bounds = array<i64: 1, 32>}, {transform_indices = @transform_13, window_bounds = array<i64: 1, 16, 32>}]} {
    %c0 = arith.constant 0 : index
    %c0_0 = arith.constant 0 : index
    %c0_1 = arith.constant 0 : index
    %0 = vector.load %arg1[%c0, %c0_0, %c0_1] : memref<1x16x32xf32, #tpu.memory_space<vmem>>, vector<1x16x32xf32>
    %1 = vector.shape_cast %0 : vector<1x16x32xf32> to vector<16x32xf32>
    %c0_2 = arith.constant 0 : index
    %c0_3 = arith.constant 0 : index
    %2 = vector.load %arg4[%c0_2, %c0_3] : memref<32x32xf32, #tpu.memory_space<vmem>>, vector<32x32xf32>
    %c0_4 = arith.constant 0 : index
    %c0_5 = arith.constant 0 : index
    %3 = vector.load %arg2[%c0_4, %c0_5] : memref<1x32xf32, #tpu.memory_space<vmem>>, vector<1x32xf32>
    %c0_6 = arith.constant 0 : index
    %c0_7 = arith.constant 0 : index
    %4 = vector.load %arg3[%c0_6, %c0_7] : memref<1x32xf32, #tpu.memory_space<vmem>>, vector<1x32xf32>
    %cst = arith.constant dense<0.000000e+00> : vector<32xf32>
    %5 = vector.multi_reduction <add>, %1, %cst [0] : vector<16x32xf32> to vector<32xf32>
    %6 = vector.shape_cast %5 : vector<32xf32> to vector<1x32xf32>
    %7 = arith.mulf %1, %1 : vector<16x32xf32>
    %cst_8 = arith.constant dense<0.000000e+00> : vector<32xf32>
    %8 = vector.multi_reduction <add>, %7, %cst_8 [0] : vector<16x32xf32> to vector<32xf32>
    %9 = vector.shape_cast %8 : vector<32xf32> to vector<1x32xf32>
    %cst_9 = arith.constant dense<0.000000e+00> : vector<1x32xf32>
    %10 = tpu.matmul %6, %2, %cst_9 {dimension_numbers = #tpu.dot_dimension_numbers<[1], [0], [0], [1], [0, 0, 1, 1], [], []>} : vector<1x32xf32>, vector<32x32xf32>, vector<1x32xf32> -> vector<1x32xf32>
    %cst_10 = arith.constant 1.562500e-02 : f32
    %11 = vector.broadcast %cst_10 : f32 to vector<1x32xf32>
    %12 = arith.mulf %10, %11 : vector<1x32xf32>
    %cst_11 = arith.constant dense<0.000000e+00> : vector<1x32xf32>
    %13 = tpu.matmul %9, %2, %cst_11 {dimension_numbers = #tpu.dot_dimension_numbers<[1], [0], [0], [1], [0, 0, 1, 1], [], []>} : vector<1x32xf32>, vector<32x32xf32>, vector<1x32xf32> -> vector<1x32xf32>
    %cst_12 = arith.constant 1.562500e-02 : f32
    %14 = vector.broadcast %cst_12 : f32 to vector<1x32xf32>
    %15 = arith.mulf %13, %14 : vector<1x32xf32>
    %16 = arith.mulf %12, %12 : vector<1x32xf32>
    %17 = arith.subf %15, %16 : vector<1x32xf32>
    %cst_13 = arith.constant 0.000000e+00 : f32
    %18 = vector.broadcast %cst_13 : f32 to vector<1x32xf32>
    %19 = arith.maximumf %17, %18 : vector<1x32xf32>
    %20 = vector.broadcast %12 : vector<1x32xf32> to vector<16x32xf32>
    %21 = arith.subf %1, %20 : vector<16x32xf32>
    %cst_14 = arith.constant 9.99999997E-7 : f32
    %22 = vector.broadcast %cst_14 : f32 to vector<1x32xf32>
    %23 = arith.addf %19, %22 : vector<1x32xf32>
    %24 = math.rsqrt %23 : vector<1x32xf32>
    %25 = vector.broadcast %24 : vector<1x32xf32> to vector<16x32xf32>
    %26 = arith.mulf %21, %25 : vector<16x32xf32>
    %27 = vector.broadcast %3 : vector<1x32xf32> to vector<16x32xf32>
    %28 = arith.mulf %26, %27 : vector<16x32xf32>
    %29 = vector.broadcast %4 : vector<1x32xf32> to vector<16x32xf32>
    %30 = arith.addf %28, %29 : vector<16x32xf32>
    %31 = arith.truncf %30 : vector<16x32xf32> to vector<16x32xbf16>
    %c0_15 = arith.constant 0 : index
    %c0_16 = arith.constant 0 : index
    %32 = vector.load %arg5[%c0_15, %c0_16] : memref<32x32xbf16, #tpu.memory_space<vmem>>, vector<32x32xbf16>
    %cst_17 = arith.constant dense<0.000000e+00> : vector<16x32xf32>
    %33 = tpu.matmul %31, %32, %cst_17 {dimension_numbers = #tpu.dot_dimension_numbers<[1], [0], [0], [1], [0, 0, 1, 1], [], []>} : vector<16x32xbf16>, vector<32x32xbf16>, vector<16x32xf32> -> vector<16x32xf32>
    %c0_18 = arith.constant 0 : index
    %c0_19 = arith.constant 0 : index
    %34 = vector.load %arg6[%c0_18, %c0_19] : memref<1x32xf32, #tpu.memory_space<vmem>>, vector<1x32xf32>
    %35 = vector.broadcast %34 : vector<1x32xf32> to vector<16x32xf32>
    %36 = arith.addf %33, %35 : vector<16x32xf32>
    %c0_20 = arith.constant 0 : index
    %c0_21 = arith.constant 0 : index
    %37 = vector.load %arg7[%c0_20, %c0_21] : memref<1x32xf32, #tpu.memory_space<vmem>>, vector<1x32xf32>
    %c0_22 = arith.constant 0 : index
    %c0_23 = arith.constant 0 : index
    %38 = vector.load %arg8[%c0_22, %c0_23] : memref<1x32xf32, #tpu.memory_space<vmem>>, vector<1x32xf32>
    %cst_24 = arith.constant dense<0.000000e+00> : vector<16xf32>
    %39 = vector.multi_reduction <add>, %36, %cst_24 [1] : vector<16x32xf32> to vector<16xf32>
    %40 = vector.shape_cast %39 : vector<16xf32> to vector<16x1xf32>
    %cst_25 = arith.constant 3.200000e+01 : f32
    %41 = vector.broadcast %cst_25 : f32 to vector<16x1xf32>
    %42 = arith.divf %40, %41 : vector<16x1xf32>
    %43 = vector.broadcast %42 : vector<16x1xf32> to vector<16x32xf32>
    %44 = arith.subf %36, %43 : vector<16x32xf32>
    %45 = arith.mulf %44, %44 : vector<16x32xf32>
    %cst_26 = arith.constant dense<0.000000e+00> : vector<16xf32>
    %46 = vector.multi_reduction <add>, %45, %cst_26 [1] : vector<16x32xf32> to vector<16xf32>
    %47 = vector.shape_cast %46 : vector<16xf32> to vector<16x1xf32>
    %cst_27 = arith.constant 3.200000e+01 : f32
    %48 = vector.broadcast %cst_27 : f32 to vector<16x1xf32>
    %49 = arith.divf %47, %48 : vector<16x1xf32>
    %50 = vector.broadcast %42 : vector<16x1xf32> to vector<16x32xf32>
    %51 = arith.subf %36, %50 : vector<16x32xf32>
    %cst_28 = arith.constant 9.99999974E-6 : f32
    %52 = vector.broadcast %cst_28 : f32 to vector<16x1xf32>
    %53 = arith.addf %49, %52 : vector<16x1xf32>
    %54 = math.rsqrt %53 : vector<16x1xf32>
    %55 = vector.broadcast %54 : vector<16x1xf32> to vector<16x32xf32>
    %56 = arith.mulf %51, %55 : vector<16x32xf32>
    %57 = vector.broadcast %37 : vector<1x32xf32> to vector<16x32xf32>
    %58 = arith.mulf %56, %57 : vector<16x32xf32>
    %59 = vector.broadcast %38 : vector<1x32xf32> to vector<16x32xf32>
    %60 = arith.addf %58, %59 : vector<16x32xf32>
    %c0_29 = arith.constant 0 : index
    %c0_30 = arith.constant 0 : index
    %61 = vector.load %arg13[%c0_29, %c0_30] : memref<1x32xf32, #tpu.memory_space<vmem>>, vector<1x32xf32>
    %62 = arith.truncf %60 : vector<16x32xf32> to vector<16x32xbf16>
    %63 = arith.truncf %60 : vector<16x32xf32> to vector<16x32xbf16>
    %c0_31 = arith.constant 0 : index
    %c0_32 = arith.constant 0 : index
    %c0_33 = arith.constant 0 : index
    %64 = vector.load %arg9[%c0_31, %c0_32, %c0_33] : memref<4x32x8xbf16, #tpu.memory_space<vmem>>, vector<1x32x8xbf16>
    %65 = vector.shape_cast %64 : vector<1x32x8xbf16> to vector<32x8xbf16>
    %cst_34 = arith.constant dense<0.000000e+00> : vector<16x8xf32>
    %66 = tpu.matmul %62, %65, %cst_34 {dimension_numbers = #tpu.dot_dimension_numbers<[1], [0], [0], [1], [0, 0, 1, 1], [], []>} : vector<16x32xbf16>, vector<32x8xbf16>, vector<16x8xf32> -> vector<16x8xf32>
    %c0_35 = arith.constant 0 : index
    %c0_36 = arith.constant 0 : index
    %c0_37 = arith.constant 0 : index
    %67 = vector.load %arg10[%c0_35, %c0_36, %c0_37] : memref<4x32x8xbf16, #tpu.memory_space<vmem>>, vector<1x32x8xbf16>
    %68 = vector.shape_cast %67 : vector<1x32x8xbf16> to vector<32x8xbf16>
    %cst_38 = arith.constant dense<0.000000e+00> : vector<16x8xf32>
    %69 = tpu.matmul %63, %68, %cst_38 {dimension_numbers = #tpu.dot_dimension_numbers<[1], [0], [0], [1], [0, 0, 1, 1], [], []>} : vector<16x32xbf16>, vector<32x8xbf16>, vector<16x8xf32> -> vector<16x8xf32>
    %c0_39 = arith.constant 0 : index
    %c0_40 = arith.constant 0 : index
    %c0_41 = arith.constant 0 : index
    %70 = vector.load %arg11[%c0_39, %c0_40, %c0_41] : memref<4x32x8xbf16, #tpu.memory_space<vmem>>, vector<1x32x8xbf16>
    %71 = vector.shape_cast %70 : vector<1x32x8xbf16> to vector<32x8xbf16>
    %cst_42 = arith.constant dense<0.000000e+00> : vector<16x8xf32>
    %72 = tpu.matmul %63, %71, %cst_42 {dimension_numbers = #tpu.dot_dimension_numbers<[1], [0], [0], [1], [0, 0, 1, 1], [], []>} : vector<16x32xbf16>, vector<32x8xbf16>, vector<16x8xf32> -> vector<16x8xf32>
    %73 = arith.truncf %66 : vector<16x8xf32> to vector<16x8xbf16>
    %74 = arith.truncf %69 : vector<16x8xf32> to vector<16x8xbf16>
    %cst_43 = arith.constant dense<0.000000e+00> : vector<16x16xf32>
    %75 = tpu.matmul %73, %74, %cst_43 {dimension_numbers = #tpu.dot_dimension_numbers<[1], [1], [0], [0], [0, 0, 1, 0], [], []>} : vector<16x8xbf16>, vector<16x8xbf16>, vector<16x16xf32> -> vector<16x16xf32>
    %cst_44 = arith.constant 0.353553385 : f32
    %76 = vector.broadcast %cst_44 : f32 to vector<16x16xf32>
    %77 = arith.mulf %75, %76 : vector<16x16xf32>
    %cst_45 = arith.constant dense<0xFF800000> : vector<16xf32>
    %78 = vector.multi_reduction <maximumf>, %77, %cst_45 [1] : vector<16x16xf32> to vector<16xf32>
    %79 = vector.shape_cast %78 : vector<16xf32> to vector<16x1xf32>
    %80 = vector.broadcast %79 : vector<16x1xf32> to vector<16x16xf32>
    %81 = arith.subf %77, %80 : vector<16x16xf32>
    %82 = math.exp %81 : vector<16x16xf32>
    %cst_46 = arith.constant dense<0.000000e+00> : vector<16xf32>
    %83 = vector.multi_reduction <add>, %82, %cst_46 [1] : vector<16x16xf32> to vector<16xf32>
    %84 = vector.shape_cast %83 : vector<16xf32> to vector<16x1xf32>
    %85 = tpu.reciprocal %84 {approx = true} : vector<16x1xf32> -> vector<16x1xf32>
    %86 = vector.broadcast %85 : vector<16x1xf32> to vector<16x16xf32>
    %87 = arith.mulf %82, %86 : vector<16x16xf32>
    %88 = arith.truncf %87 : vector<16x16xf32> to vector<16x16xbf16>
    %89 = arith.truncf %72 : vector<16x8xf32> to vector<16x8xbf16>
    %cst_47 = arith.constant dense<0.000000e+00> : vector<16x8xf32>
    %90 = tpu.matmul %88, %89, %cst_47 {dimension_numbers = #tpu.dot_dimension_numbers<[1], [0], [0], [1], [0, 0, 1, 1], [], []>} : vector<16x16xbf16>, vector<16x8xbf16>, vector<16x8xf32> -> vector<16x8xf32>
    %91 = arith.truncf %90 : vector<16x8xf32> to vector<16x8xbf16>
    %c0_48 = arith.constant 0 : index
    %c0_49 = arith.constant 0 : index
    %c0_50 = arith.constant 0 : index
    %92 = vector.load %arg12[%c0_48, %c0_49, %c0_50] : memref<4x8x32xbf16, #tpu.memory_space<vmem>>, vector<1x8x32xbf16>
    %93 = vector.shape_cast %92 : vector<1x8x32xbf16> to vector<8x32xbf16>
    %cst_51 = arith.constant dense<0.000000e+00> : vector<16x32xf32>
    %94 = tpu.matmul %91, %93, %cst_51 {dimension_numbers = #tpu.dot_dimension_numbers<[1], [0], [0], [1], [0, 0, 1, 1], [], []>} : vector<16x8xbf16>, vector<8x32xbf16>, vector<16x32xf32> -> vector<16x32xf32>
    %c1 = arith.constant 1 : index
    %c0_52 = arith.constant 0 : index
    %c0_53 = arith.constant 0 : index
    %95 = vector.load %arg9[%c1, %c0_52, %c0_53] : memref<4x32x8xbf16, #tpu.memory_space<vmem>>, vector<1x32x8xbf16>
    %96 = vector.shape_cast %95 : vector<1x32x8xbf16> to vector<32x8xbf16>
    %cst_54 = arith.constant dense<0.000000e+00> : vector<16x8xf32>
    %97 = tpu.matmul %62, %96, %cst_54 {dimension_numbers = #tpu.dot_dimension_numbers<[1], [0], [0], [1], [0, 0, 1, 1], [], []>} : vector<16x32xbf16>, vector<32x8xbf16>, vector<16x8xf32> -> vector<16x8xf32>
    %c1_55 = arith.constant 1 : index
    %c0_56 = arith.constant 0 : index
    %c0_57 = arith.constant 0 : index
    %98 = vector.load %arg10[%c1_55, %c0_56, %c0_57] : memref<4x32x8xbf16, #tpu.memory_space<vmem>>, vector<1x32x8xbf16>
    %99 = vector.shape_cast %98 : vector<1x32x8xbf16> to vector<32x8xbf16>
    %cst_58 = arith.constant dense<0.000000e+00> : vector<16x8xf32>
    %100 = tpu.matmul %63, %99, %cst_58 {dimension_numbers = #tpu.dot_dimension_numbers<[1], [0], [0], [1], [0, 0, 1, 1], [], []>} : vector<16x32xbf16>, vector<32x8xbf16>, vector<16x8xf32> -> vector<16x8xf32>
    %c1_59 = arith.constant 1 : index
    %c0_60 = arith.constant 0 : index
    %c0_61 = arith.constant 0 : index
    %101 = vector.load %arg11[%c1_59, %c0_60, %c0_61] : memref<4x32x8xbf16, #tpu.memory_space<vmem>>, vector<1x32x8xbf16>
    %102 = vector.shape_cast %101 : vector<1x32x8xbf16> to vector<32x8xbf16>
    %cst_62 = arith.constant dense<0.000000e+00> : vector<16x8xf32>
    %103 = tpu.matmul %63, %102, %cst_62 {dimension_numbers = #tpu.dot_dimension_numbers<[1], [0], [0], [1], [0, 0, 1, 1], [], []>} : vector<16x32xbf16>, vector<32x8xbf16>, vector<16x8xf32> -> vector<16x8xf32>
    %104 = arith.truncf %97 : vector<16x8xf32> to vector<16x8xbf16>
    %105 = arith.truncf %100 : vector<16x8xf32> to vector<16x8xbf16>
    %cst_63 = arith.constant dense<0.000000e+00> : vector<16x16xf32>
    %106 = tpu.matmul %104, %105, %cst_63 {dimension_numbers = #tpu.dot_dimension_numbers<[1], [1], [0], [0], [0, 0, 1, 0], [], []>} : vector<16x8xbf16>, vector<16x8xbf16>, vector<16x16xf32> -> vector<16x16xf32>
    %cst_64 = arith.constant 0.353553385 : f32
    %107 = vector.broadcast %cst_64 : f32 to vector<16x16xf32>
    %108 = arith.mulf %106, %107 : vector<16x16xf32>
    %cst_65 = arith.constant dense<0xFF800000> : vector<16xf32>
    %109 = vector.multi_reduction <maximumf>, %108, %cst_65 [1] : vector<16x16xf32> to vector<16xf32>
    %110 = vector.shape_cast %109 : vector<16xf32> to vector<16x1xf32>
    %111 = vector.broadcast %110 : vector<16x1xf32> to vector<16x16xf32>
    %112 = arith.subf %108, %111 : vector<16x16xf32>
    %113 = math.exp %112 : vector<16x16xf32>
    %cst_66 = arith.constant dense<0.000000e+00> : vector<16xf32>
    %114 = vector.multi_reduction <add>, %113, %cst_66 [1] : vector<16x16xf32> to vector<16xf32>
    %115 = vector.shape_cast %114 : vector<16xf32> to vector<16x1xf32>
    %116 = tpu.reciprocal %115 {approx = true} : vector<16x1xf32> -> vector<16x1xf32>
    %117 = vector.broadcast %116 : vector<16x1xf32> to vector<16x16xf32>
    %118 = arith.mulf %113, %117 : vector<16x16xf32>
    %119 = arith.truncf %118 : vector<16x16xf32> to vector<16x16xbf16>
    %120 = arith.truncf %103 : vector<16x8xf32> to vector<16x8xbf16>
    %cst_67 = arith.constant dense<0.000000e+00> : vector<16x8xf32>
    %121 = tpu.matmul %119, %120, %cst_67 {dimension_numbers = #tpu.dot_dimension_numbers<[1], [0], [0], [1], [0, 0, 1, 1], [], []>} : vector<16x16xbf16>, vector<16x8xbf16>, vector<16x8xf32> -> vector<16x8xf32>
    %122 = arith.truncf %121 : vector<16x8xf32> to vector<16x8xbf16>
    %c1_68 = arith.constant 1 : index
    %c0_69 = arith.constant 0 : index
    %c0_70 = arith.constant 0 : index
    %123 = vector.load %arg12[%c1_68, %c0_69, %c0_70] : memref<4x8x32xbf16, #tpu.memory_space<vmem>>, vector<1x8x32xbf16>
    %124 = vector.shape_cast %123 : vector<1x8x32xbf16> to vector<8x32xbf16>
    %cst_71 = arith.constant dense<0.000000e+00> : vector<16x32xf32>
    %125 = tpu.matmul %122, %124, %cst_71 {dimension_numbers = #tpu.dot_dimension_numbers<[1], [0], [0], [1], [0, 0, 1, 1], [], []>} : vector<16x8xbf16>, vector<8x32xbf16>, vector<16x32xf32> -> vector<16x32xf32>
    %126 = arith.addf %94, %125 : vector<16x32xf32>
    %c2 = arith.constant 2 : index
    %c0_72 = arith.constant 0 : index
    %c0_73 = arith.constant 0 : index
    %127 = vector.load %arg9[%c2, %c0_72, %c0_73] : memref<4x32x8xbf16, #tpu.memory_space<vmem>>, vector<1x32x8xbf16>
    %128 = vector.shape_cast %127 : vector<1x32x8xbf16> to vector<32x8xbf16>
    %cst_74 = arith.constant dense<0.000000e+00> : vector<16x8xf32>
    %129 = tpu.matmul %62, %128, %cst_74 {dimension_numbers = #tpu.dot_dimension_numbers<[1], [0], [0], [1], [0, 0, 1, 1], [], []>} : vector<16x32xbf16>, vector<32x8xbf16>, vector<16x8xf32> -> vector<16x8xf32>
    %c2_75 = arith.constant 2 : index
    %c0_76 = arith.constant 0 : index
    %c0_77 = arith.constant 0 : index
    %130 = vector.load %arg10[%c2_75, %c0_76, %c0_77] : memref<4x32x8xbf16, #tpu.memory_space<vmem>>, vector<1x32x8xbf16>
    %131 = vector.shape_cast %130 : vector<1x32x8xbf16> to vector<32x8xbf16>
    %cst_78 = arith.constant dense<0.000000e+00> : vector<16x8xf32>
    %132 = tpu.matmul %63, %131, %cst_78 {dimension_numbers = #tpu.dot_dimension_numbers<[1], [0], [0], [1], [0, 0, 1, 1], [], []>} : vector<16x32xbf16>, vector<32x8xbf16>, vector<16x8xf32> -> vector<16x8xf32>
    %c2_79 = arith.constant 2 : index
    %c0_80 = arith.constant 0 : index
    %c0_81 = arith.constant 0 : index
    %133 = vector.load %arg11[%c2_79, %c0_80, %c0_81] : memref<4x32x8xbf16, #tpu.memory_space<vmem>>, vector<1x32x8xbf16>
    %134 = vector.shape_cast %133 : vector<1x32x8xbf16> to vector<32x8xbf16>
    %cst_82 = arith.constant dense<0.000000e+00> : vector<16x8xf32>
    %135 = tpu.matmul %63, %134, %cst_82 {dimension_numbers = #tpu.dot_dimension_numbers<[1], [0], [0], [1], [0, 0, 1, 1], [], []>} : vector<16x32xbf16>, vector<32x8xbf16>, vector<16x8xf32> -> vector<16x8xf32>
    %136 = arith.truncf %129 : vector<16x8xf32> to vector<16x8xbf16>
    %137 = arith.truncf %132 : vector<16x8xf32> to vector<16x8xbf16>
    %cst_83 = arith.constant dense<0.000000e+00> : vector<16x16xf32>
    %138 = tpu.matmul %136, %137, %cst_83 {dimension_numbers = #tpu.dot_dimension_numbers<[1], [1], [0], [0], [0, 0, 1, 0], [], []>} : vector<16x8xbf16>, vector<16x8xbf16>, vector<16x16xf32> -> vector<16x16xf32>
    %cst_84 = arith.constant 0.353553385 : f32
    %139 = vector.broadcast %cst_84 : f32 to vector<16x16xf32>
    %140 = arith.mulf %138, %139 : vector<16x16xf32>
    %cst_85 = arith.constant dense<0xFF800000> : vector<16xf32>
    %141 = vector.multi_reduction <maximumf>, %140, %cst_85 [1] : vector<16x16xf32> to vector<16xf32>
    %142 = vector.shape_cast %141 : vector<16xf32> to vector<16x1xf32>
    %143 = vector.broadcast %142 : vector<16x1xf32> to vector<16x16xf32>
    %144 = arith.subf %140, %143 : vector<16x16xf32>
    %145 = math.exp %144 : vector<16x16xf32>
    %cst_86 = arith.constant dense<0.000000e+00> : vector<16xf32>
    %146 = vector.multi_reduction <add>, %145, %cst_86 [1] : vector<16x16xf32> to vector<16xf32>
    %147 = vector.shape_cast %146 : vector<16xf32> to vector<16x1xf32>
    %148 = tpu.reciprocal %147 {approx = true} : vector<16x1xf32> -> vector<16x1xf32>
    %149 = vector.broadcast %148 : vector<16x1xf32> to vector<16x16xf32>
    %150 = arith.mulf %145, %149 : vector<16x16xf32>
    %151 = arith.truncf %150 : vector<16x16xf32> to vector<16x16xbf16>
    %152 = arith.truncf %135 : vector<16x8xf32> to vector<16x8xbf16>
    %cst_87 = arith.constant dense<0.000000e+00> : vector<16x8xf32>
    %153 = tpu.matmul %151, %152, %cst_87 {dimension_numbers = #tpu.dot_dimension_numbers<[1], [0], [0], [1], [0, 0, 1, 1], [], []>} : vector<16x16xbf16>, vector<16x8xbf16>, vector<16x8xf32> -> vector<16x8xf32>
    %154 = arith.truncf %153 : vector<16x8xf32> to vector<16x8xbf16>
    %c2_88 = arith.constant 2 : index
    %c0_89 = arith.constant 0 : index
    %c0_90 = arith.constant 0 : index
    %155 = vector.load %arg12[%c2_88, %c0_89, %c0_90] : memref<4x8x32xbf16, #tpu.memory_space<vmem>>, vector<1x8x32xbf16>
    %156 = vector.shape_cast %155 : vector<1x8x32xbf16> to vector<8x32xbf16>
    %cst_91 = arith.constant dense<0.000000e+00> : vector<16x32xf32>
    %157 = tpu.matmul %154, %156, %cst_91 {dimension_numbers = #tpu.dot_dimension_numbers<[1], [0], [0], [1], [0, 0, 1, 1], [], []>} : vector<16x8xbf16>, vector<8x32xbf16>, vector<16x32xf32> -> vector<16x32xf32>
    %158 = arith.addf %126, %157 : vector<16x32xf32>
    %c3 = arith.constant 3 : index
    %c0_92 = arith.constant 0 : index
    %c0_93 = arith.constant 0 : index
    %159 = vector.load %arg9[%c3, %c0_92, %c0_93] : memref<4x32x8xbf16, #tpu.memory_space<vmem>>, vector<1x32x8xbf16>
    %160 = vector.shape_cast %159 : vector<1x32x8xbf16> to vector<32x8xbf16>
    %cst_94 = arith.constant dense<0.000000e+00> : vector<16x8xf32>
    %161 = tpu.matmul %62, %160, %cst_94 {dimension_numbers = #tpu.dot_dimension_numbers<[1], [0], [0], [1], [0, 0, 1, 1], [], []>} : vector<16x32xbf16>, vector<32x8xbf16>, vector<16x8xf32> -> vector<16x8xf32>
    %c3_95 = arith.constant 3 : index
    %c0_96 = arith.constant 0 : index
    %c0_97 = arith.constant 0 : index
    %162 = vector.load %arg10[%c3_95, %c0_96, %c0_97] : memref<4x32x8xbf16, #tpu.memory_space<vmem>>, vector<1x32x8xbf16>
    %163 = vector.shape_cast %162 : vector<1x32x8xbf16> to vector<32x8xbf16>
    %cst_98 = arith.constant dense<0.000000e+00> : vector<16x8xf32>
    %164 = tpu.matmul %63, %163, %cst_98 {dimension_numbers = #tpu.dot_dimension_numbers<[1], [0], [0], [1], [0, 0, 1, 1], [], []>} : vector<16x32xbf16>, vector<32x8xbf16>, vector<16x8xf32> -> vector<16x8xf32>
    %c3_99 = arith.constant 3 : index
    %c0_100 = arith.constant 0 : index
    %c0_101 = arith.constant 0 : index
    %165 = vector.load %arg11[%c3_99, %c0_100, %c0_101] : memref<4x32x8xbf16, #tpu.memory_space<vmem>>, vector<1x32x8xbf16>
    %166 = vector.shape_cast %165 : vector<1x32x8xbf16> to vector<32x8xbf16>
    %cst_102 = arith.constant dense<0.000000e+00> : vector<16x8xf32>
    %167 = tpu.matmul %63, %166, %cst_102 {dimension_numbers = #tpu.dot_dimension_numbers<[1], [0], [0], [1], [0, 0, 1, 1], [], []>} : vector<16x32xbf16>, vector<32x8xbf16>, vector<16x8xf32> -> vector<16x8xf32>
    %168 = arith.truncf %161 : vector<16x8xf32> to vector<16x8xbf16>
    %169 = arith.truncf %164 : vector<16x8xf32> to vector<16x8xbf16>
    %cst_103 = arith.constant dense<0.000000e+00> : vector<16x16xf32>
    %170 = tpu.matmul %168, %169, %cst_103 {dimension_numbers = #tpu.dot_dimension_numbers<[1], [1], [0], [0], [0, 0, 1, 0], [], []>} : vector<16x8xbf16>, vector<16x8xbf16>, vector<16x16xf32> -> vector<16x16xf32>
    %cst_104 = arith.constant 0.353553385 : f32
    %171 = vector.broadcast %cst_104 : f32 to vector<16x16xf32>
    %172 = arith.mulf %170, %171 : vector<16x16xf32>
    %cst_105 = arith.constant dense<0xFF800000> : vector<16xf32>
    %173 = vector.multi_reduction <maximumf>, %172, %cst_105 [1] : vector<16x16xf32> to vector<16xf32>
    %174 = vector.shape_cast %173 : vector<16xf32> to vector<16x1xf32>
    %175 = vector.broadcast %174 : vector<16x1xf32> to vector<16x16xf32>
    %176 = arith.subf %172, %175 : vector<16x16xf32>
    %177 = math.exp %176 : vector<16x16xf32>
    %cst_106 = arith.constant dense<0.000000e+00> : vector<16xf32>
    %178 = vector.multi_reduction <add>, %177, %cst_106 [1] : vector<16x16xf32> to vector<16xf32>
    %179 = vector.shape_cast %178 : vector<16xf32> to vector<16x1xf32>
    %180 = tpu.reciprocal %179 {approx = true} : vector<16x1xf32> -> vector<16x1xf32>
    %181 = vector.broadcast %180 : vector<16x1xf32> to vector<16x16xf32>
    %182 = arith.mulf %177, %181 : vector<16x16xf32>
    %183 = arith.truncf %182 : vector<16x16xf32> to vector<16x16xbf16>
    %184 = arith.truncf %167 : vector<16x8xf32> to vector<16x8xbf16>
    %cst_107 = arith.constant dense<0.000000e+00> : vector<16x8xf32>
    %185 = tpu.matmul %183, %184, %cst_107 {dimension_numbers = #tpu.dot_dimension_numbers<[1], [0], [0], [1], [0, 0, 1, 1], [], []>} : vector<16x16xbf16>, vector<16x8xbf16>, vector<16x8xf32> -> vector<16x8xf32>
    %186 = arith.truncf %185 : vector<16x8xf32> to vector<16x8xbf16>
    %c3_108 = arith.constant 3 : index
    %c0_109 = arith.constant 0 : index
    %c0_110 = arith.constant 0 : index
    %187 = vector.load %arg12[%c3_108, %c0_109, %c0_110] : memref<4x8x32xbf16, #tpu.memory_space<vmem>>, vector<1x8x32xbf16>
    %188 = vector.shape_cast %187 : vector<1x8x32xbf16> to vector<8x32xbf16>
    %cst_111 = arith.constant dense<0.000000e+00> : vector<16x32xf32>
    %189 = tpu.matmul %186, %188, %cst_111 {dimension_numbers = #tpu.dot_dimension_numbers<[1], [0], [0], [1], [0, 0, 1, 1], [], []>} : vector<16x8xbf16>, vector<8x32xbf16>, vector<16x32xf32> -> vector<16x32xf32>
    %190 = arith.addf %158, %189 : vector<16x32xf32>
    %191 = vector.broadcast %61 : vector<1x32xf32> to vector<16x32xf32>
    %192 = arith.addf %190, %191 : vector<16x32xf32>
    %193 = arith.addf %192, %36 : vector<16x32xf32>
    %c0_112 = arith.constant 0 : index
    %c0_113 = arith.constant 0 : index
    %c0_114 = arith.constant 0 : index
    %194 = vector.load %arg14[%c0_112, %c0_113, %c0_114] : memref<1x16x32xf32, #tpu.memory_space<vmem>>, vector<1x16x32xf32>
    %195 = vector.shape_cast %194 : vector<1x16x32xf32> to vector<16x32xf32>
    %196 = vector.shape_cast %193 : vector<16x32xf32> to vector<1x16x32xf32>
    tpu.vector_store %arg14[%c0_112, %c0_113, %c0_114], %196 {strides = array<i32>} : memref<1x16x32xf32, #tpu.memory_space<vmem>>, vector<1x16x32xf32>,
    return
  }
  func.func @transform_0(%arg0: i32) -> (i32, i32, i32) {
    %c0_i32 = arith.constant 0 : i32
    %c0_i32_0 = arith.constant 0 : i32
    %c0_i32_1 = arith.constant 0 : i32
    return %arg0, %c0_i32, %c0_i32_0 : i32, i32, i32
  }
  func.func @transform_1(%arg0: i32) -> (i32, i32) {
    %c0_i32 = arith.constant 0 : i32
    %c0_i32_0 = arith.constant 0 : i32
    %c0_i32_1 = arith.constant 0 : i32
    return %c0_i32, %c0_i32_0 : i32, i32
  }
  func.func @transform_2(%arg0: i32) -> (i32, i32) {
    %c0_i32 = arith.constant 0 : i32
    %c0_i32_0 = arith.constant 0 : i32
    %c0_i32_1 = arith.constant 0 : i32
    return %c0_i32, %c0_i32_0 : i32, i32
  }
  func.func @transform_3(%arg0: i32) -> (i32, i32) {
    %c0_i32 = arith.constant 0 : i32
    %c0_i32_0 = arith.constant 0 : i32
    %c0_i32_1 = arith.constant 0 : i32
    return %c0_i32, %c0_i32_0 : i32, i32
  }
  func.func @transform_4(%arg0: i32) -> (i32, i32) {
    %c0_i32 = arith.constant 0 : i32
    %c0_i32_0 = arith.constant 0 : i32
    %c0_i32_1 = arith.constant 0 : i32
    return %c0_i32, %c0_i32_0 : i32, i32
  }
  func.func @transform_5(%arg0: i32) -> (i32, i32) {
    %c0_i32 = arith.constant 0 : i32
    %c0_i32_0 = arith.constant 0 : i32
    %c0_i32_1 = arith.constant 0 : i32
    return %c0_i32, %c0_i32_0 : i32, i32
  }
  func.func @transform_6(%arg0: i32) -> (i32, i32) {
    %c0_i32 = arith.constant 0 : i32
    %c0_i32_0 = arith.constant 0 : i32
    %c0_i32_1 = arith.constant 0 : i32
    return %c0_i32, %c0_i32_0 : i32, i32
  }
  func.func @transform_7(%arg0: i32) -> (i32, i32) {
    %c0_i32 = arith.constant 0 : i32
    %c0_i32_0 = arith.constant 0 : i32
    %c0_i32_1 = arith.constant 0 : i32
    return %c0_i32, %c0_i32_0 : i32, i32
  }
  func.func @transform_8(%arg0: i32) -> (i32, i32, i32) {
    %c0_i32 = arith.constant 0 : i32
    %c0_i32_0 = arith.constant 0 : i32
    %c0_i32_1 = arith.constant 0 : i32
    %c0_i32_2 = arith.constant 0 : i32
    return %c0_i32, %c0_i32_0, %c0_i32_1 : i32, i32, i32
  }
  func.func @transform_9(%arg0: i32) -> (i32, i32, i32) {
    %c0_i32 = arith.constant 0 : i32
    %c0_i32_0 = arith.constant 0 : i32
    %c0_i32_1 = arith.constant 0 : i32
    %c0_i32_2 = arith.constant 0 : i32
    return %c0_i32, %c0_i32_0, %c0_i32_1 : i32, i32, i32
  }
  func.func @transform_10(%arg0: i32) -> (i32, i32, i32) {
    %c0_i32 = arith.constant 0 : i32
    %c0_i32_0 = arith.constant 0 : i32
    %c0_i32_1 = arith.constant 0 : i32
    %c0_i32_2 = arith.constant 0 : i32
    return %c0_i32, %c0_i32_0, %c0_i32_1 : i32, i32, i32
  }
  func.func @transform_11(%arg0: i32) -> (i32, i32, i32) {
    %c0_i32 = arith.constant 0 : i32
    %c0_i32_0 = arith.constant 0 : i32
    %c0_i32_1 = arith.constant 0 : i32
    %c0_i32_2 = arith.constant 0 : i32
    return %c0_i32, %c0_i32_0, %c0_i32_1 : i32, i32, i32
  }
  func.func @transform_12(%arg0: i32) -> (i32, i32) {
    %c0_i32 = arith.constant 0 : i32
    %c0_i32_0 = arith.constant 0 : i32
    %c0_i32_1 = arith.constant 0 : i32
    return %c0_i32, %c0_i32_0 : i32, i32
  }
  func.func @transform_13(%arg0: i32) -> (i32, i32, i32) {
    %c0_i32 = arith.constant 0 : i32
    %c0_i32_0 = arith.constant 0 : i32
    %c0_i32_1 = arith.constant 0 : i32
    return %arg0, %c0_i32, %c0_i32_0 : i32, i32, i32
  }
}

module attributes {stable_mosaic.version = 11 : i64} {
  func.func @_crossattn_kernel(%arg0: i32, %arg1: memref<1x16x32xf32, #tpu.memory_space<vmem>>, %arg2: memref<1x32xf32, #tpu.memory_space<vmem>>, %arg3: memref<1x32xf32, #tpu.memory_space<vmem>>, %arg4: memref<1x8x64xf32, #tpu.memory_space<vmem>>, %arg5: memref<4x32x8xbf16, #tpu.memory_space<vmem>>, %arg6: memref<4x64x8xbf16, #tpu.memory_space<vmem>>, %arg7: memref<4x64x8xbf16, #tpu.memory_space<vmem>>, %arg8: memref<4x8x32xbf16, #tpu.memory_space<vmem>>, %arg9: memref<1x32xf32, #tpu.memory_space<vmem>>, %arg10: memref<1x16x32xf32, #tpu.memory_space<vmem>>) attributes {dimension_semantics = [#tpu.dimension_semantics<parallel>], iteration_bounds = array<i64: 2>, scalar_prefetch = 0 : i64, scratch_operands = 0 : i64, tpu.core_type = #tpu.core_type<tc>, window_params = [{transform_indices = @transform_0, window_bounds = array<i64: 1, 16, 32>}, {pipeline_mode = #tpu.pipeline_mode<synchronous>, transform_indices = @transform_1, window_bounds = array<i64: 1, 32>}, {pipeline_mode = #tpu.pipeline_mode<synchronous>, transform_indices = @transform_2, window_bounds = array<i64: 1, 32>}, {transform_indices = @transform_3, window_bounds = array<i64: 1, 8, 64>}, {pipeline_mode = #tpu.pipeline_mode<synchronous>, transform_indices = @transform_4, window_bounds = array<i64: 4, 32, 8>}, {pipeline_mode = #tpu.pipeline_mode<synchronous>, transform_indices = @transform_5, window_bounds = array<i64: 4, 64, 8>}, {pipeline_mode = #tpu.pipeline_mode<synchronous>, transform_indices = @transform_6, window_bounds = array<i64: 4, 64, 8>}, {pipeline_mode = #tpu.pipeline_mode<synchronous>, transform_indices = @transform_7, window_bounds = array<i64: 4, 8, 32>}, {pipeline_mode = #tpu.pipeline_mode<synchronous>, transform_indices = @transform_8, window_bounds = array<i64: 1, 32>}, {transform_indices = @transform_9, window_bounds = array<i64: 1, 16, 32>}]} {
    %c0 = arith.constant 0 : index
    %c0_0 = arith.constant 0 : index
    %c0_1 = arith.constant 0 : index
    %0 = vector.load %arg1[%c0, %c0_0, %c0_1] : memref<1x16x32xf32, #tpu.memory_space<vmem>>, vector<1x16x32xf32>
    %1 = vector.shape_cast %0 : vector<1x16x32xf32> to vector<16x32xf32>
    %c0_2 = arith.constant 0 : index
    %c0_3 = arith.constant 0 : index
    %2 = vector.load %arg2[%c0_2, %c0_3] : memref<1x32xf32, #tpu.memory_space<vmem>>, vector<1x32xf32>
    %c0_4 = arith.constant 0 : index
    %c0_5 = arith.constant 0 : index
    %3 = vector.load %arg3[%c0_4, %c0_5] : memref<1x32xf32, #tpu.memory_space<vmem>>, vector<1x32xf32>
    %cst = arith.constant dense<0.000000e+00> : vector<16xf32>
    %4 = vector.multi_reduction <add>, %1, %cst [1] : vector<16x32xf32> to vector<16xf32>
    %5 = vector.shape_cast %4 : vector<16xf32> to vector<16x1xf32>
    %cst_6 = arith.constant 3.200000e+01 : f32
    %6 = vector.broadcast %cst_6 : f32 to vector<16x1xf32>
    %7 = arith.divf %5, %6 : vector<16x1xf32>
    %8 = vector.broadcast %7 : vector<16x1xf32> to vector<16x32xf32>
    %9 = arith.subf %1, %8 : vector<16x32xf32>
    %10 = arith.mulf %9, %9 : vector<16x32xf32>
    %cst_7 = arith.constant dense<0.000000e+00> : vector<16xf32>
    %11 = vector.multi_reduction <add>, %10, %cst_7 [1] : vector<16x32xf32> to vector<16xf32>
    %12 = vector.shape_cast %11 : vector<16xf32> to vector<16x1xf32>
    %cst_8 = arith.constant 3.200000e+01 : f32
    %13 = vector.broadcast %cst_8 : f32 to vector<16x1xf32>
    %14 = arith.divf %12, %13 : vector<16x1xf32>
    %15 = vector.broadcast %7 : vector<16x1xf32> to vector<16x32xf32>
    %16 = arith.subf %1, %15 : vector<16x32xf32>
    %cst_9 = arith.constant 9.99999974E-6 : f32
    %17 = vector.broadcast %cst_9 : f32 to vector<16x1xf32>
    %18 = arith.addf %14, %17 : vector<16x1xf32>
    %19 = math.rsqrt %18 : vector<16x1xf32>
    %20 = vector.broadcast %19 : vector<16x1xf32> to vector<16x32xf32>
    %21 = arith.mulf %16, %20 : vector<16x32xf32>
    %22 = vector.broadcast %2 : vector<1x32xf32> to vector<16x32xf32>
    %23 = arith.mulf %21, %22 : vector<16x32xf32>
    %24 = vector.broadcast %3 : vector<1x32xf32> to vector<16x32xf32>
    %25 = arith.addf %23, %24 : vector<16x32xf32>
    %c0_10 = arith.constant 0 : index
    %c0_11 = arith.constant 0 : index
    %c0_12 = arith.constant 0 : index
    %26 = vector.load %arg4[%c0_10, %c0_11, %c0_12] : memref<1x8x64xf32, #tpu.memory_space<vmem>>, vector<1x8x64xf32>
    %27 = vector.shape_cast %26 : vector<1x8x64xf32> to vector<8x64xf32>
    %c0_13 = arith.constant 0 : index
    %c0_14 = arith.constant 0 : index
    %28 = vector.load %arg9[%c0_13, %c0_14] : memref<1x32xf32, #tpu.memory_space<vmem>>, vector<1x32xf32>
    %29 = arith.truncf %25 : vector<16x32xf32> to vector<16x32xbf16>
    %30 = arith.truncf %27 : vector<8x64xf32> to vector<8x64xbf16>
    %c0_15 = arith.constant 0 : index
    %c0_16 = arith.constant 0 : index
    %c0_17 = arith.constant 0 : index
    %31 = vector.load %arg5[%c0_15, %c0_16, %c0_17] : memref<4x32x8xbf16, #tpu.memory_space<vmem>>, vector<1x32x8xbf16>
    %32 = vector.shape_cast %31 : vector<1x32x8xbf16> to vector<32x8xbf16>
    %cst_18 = arith.constant dense<0.000000e+00> : vector<16x8xf32>
    %33 = tpu.matmul %29, %32, %cst_18 {dimension_numbers = #tpu.dot_dimension_numbers<[1], [0], [0], [1], [0, 0, 1, 1], [], []>} : vector<16x32xbf16>, vector<32x8xbf16>, vector<16x8xf32> -> vector<16x8xf32>
    %c0_19 = arith.constant 0 : index
    %c0_20 = arith.constant 0 : index
    %c0_21 = arith.constant 0 : index
    %34 = vector.load %arg6[%c0_19, %c0_20, %c0_21] : memref<4x64x8xbf16, #tpu.memory_space<vmem>>, vector<1x64x8xbf16>
    %35 = vector.shape_cast %34 : vector<1x64x8xbf16> to vector<64x8xbf16>
    %cst_22 = arith.constant dense<0.000000e+00> : vector<8x8xf32>
    %36 = tpu.matmul %30, %35, %cst_22 {dimension_numbers = #tpu.dot_dimension_numbers<[1], [0], [0], [1], [0, 0, 1, 1], [], []>} : vector<8x64xbf16>, vector<64x8xbf16>, vector<8x8xf32> -> vector<8x8xf32>
    %c0_23 = arith.constant 0 : index
    %c0_24 = arith.constant 0 : index
    %c0_25 = arith.constant 0 : index
    %37 = vector.load %arg7[%c0_23, %c0_24, %c0_25] : memref<4x64x8xbf16, #tpu.memory_space<vmem>>, vector<1x64x8xbf16>
    %38 = vector.shape_cast %37 : vector<1x64x8xbf16> to vector<64x8xbf16>
    %cst_26 = arith.constant dense<0.000000e+00> : vector<8x8xf32>
    %39 = tpu.matmul %30, %38, %cst_26 {dimension_numbers = #tpu.dot_dimension_numbers<[1], [0], [0], [1], [0, 0, 1, 1], [], []>} : vector<8x64xbf16>, vector<64x8xbf16>, vector<8x8xf32> -> vector<8x8xf32>
    %40 = arith.truncf %33 : vector<16x8xf32> to vector<16x8xbf16>
    %41 = arith.truncf %36 : vector<8x8xf32> to vector<8x8xbf16>
    %cst_27 = arith.constant dense<0.000000e+00> : vector<16x8xf32>
    %42 = tpu.matmul %40, %41, %cst_27 {dimension_numbers = #tpu.dot_dimension_numbers<[1], [1], [0], [0], [0, 0, 1, 0], [], []>} : vector<16x8xbf16>, vector<8x8xbf16>, vector<16x8xf32> -> vector<16x8xf32>
    %cst_28 = arith.constant 0.353553385 : f32
    %43 = vector.broadcast %cst_28 : f32 to vector<16x8xf32>
    %44 = arith.mulf %42, %43 : vector<16x8xf32>
    %cst_29 = arith.constant dense<0xFF800000> : vector<16xf32>
    %45 = vector.multi_reduction <maximumf>, %44, %cst_29 [1] : vector<16x8xf32> to vector<16xf32>
    %46 = vector.shape_cast %45 : vector<16xf32> to vector<16x1xf32>
    %47 = vector.broadcast %46 : vector<16x1xf32> to vector<16x8xf32>
    %48 = arith.subf %44, %47 : vector<16x8xf32>
    %49 = math.exp %48 : vector<16x8xf32>
    %cst_30 = arith.constant dense<0.000000e+00> : vector<16xf32>
    %50 = vector.multi_reduction <add>, %49, %cst_30 [1] : vector<16x8xf32> to vector<16xf32>
    %51 = vector.shape_cast %50 : vector<16xf32> to vector<16x1xf32>
    %52 = tpu.reciprocal %51 {approx = true} : vector<16x1xf32> -> vector<16x1xf32>
    %53 = vector.broadcast %52 : vector<16x1xf32> to vector<16x8xf32>
    %54 = arith.mulf %49, %53 : vector<16x8xf32>
    %55 = arith.truncf %54 : vector<16x8xf32> to vector<16x8xbf16>
    %56 = arith.truncf %39 : vector<8x8xf32> to vector<8x8xbf16>
    %cst_31 = arith.constant dense<0.000000e+00> : vector<16x8xf32>
    %57 = tpu.matmul %55, %56, %cst_31 {dimension_numbers = #tpu.dot_dimension_numbers<[1], [0], [0], [1], [0, 0, 1, 1], [], []>} : vector<16x8xbf16>, vector<8x8xbf16>, vector<16x8xf32> -> vector<16x8xf32>
    %58 = arith.truncf %57 : vector<16x8xf32> to vector<16x8xbf16>
    %c0_32 = arith.constant 0 : index
    %c0_33 = arith.constant 0 : index
    %c0_34 = arith.constant 0 : index
    %59 = vector.load %arg8[%c0_32, %c0_33, %c0_34] : memref<4x8x32xbf16, #tpu.memory_space<vmem>>, vector<1x8x32xbf16>
    %60 = vector.shape_cast %59 : vector<1x8x32xbf16> to vector<8x32xbf16>
    %cst_35 = arith.constant dense<0.000000e+00> : vector<16x32xf32>
    %61 = tpu.matmul %58, %60, %cst_35 {dimension_numbers = #tpu.dot_dimension_numbers<[1], [0], [0], [1], [0, 0, 1, 1], [], []>} : vector<16x8xbf16>, vector<8x32xbf16>, vector<16x32xf32> -> vector<16x32xf32>
    %c1 = arith.constant 1 : index
    %c0_36 = arith.constant 0 : index
    %c0_37 = arith.constant 0 : index
    %62 = vector.load %arg5[%c1, %c0_36, %c0_37] : memref<4x32x8xbf16, #tpu.memory_space<vmem>>, vector<1x32x8xbf16>
    %63 = vector.shape_cast %62 : vector<1x32x8xbf16> to vector<32x8xbf16>
    %cst_38 = arith.constant dense<0.000000e+00> : vector<16x8xf32>
    %64 = tpu.matmul %29, %63, %cst_38 {dimension_numbers = #tpu.dot_dimension_numbers<[1], [0], [0], [1], [0, 0, 1, 1], [], []>} : vector<16x32xbf16>, vector<32x8xbf16>, vector<16x8xf32> -> vector<16x8xf32>
    %c1_39 = arith.constant 1 : index
    %c0_40 = arith.constant 0 : index
    %c0_41 = arith.constant 0 : index
    %65 = vector.load %arg6[%c1_39, %c0_40, %c0_41] : memref<4x64x8xbf16, #tpu.memory_space<vmem>>, vector<1x64x8xbf16>
    %66 = vector.shape_cast %65 : vector<1x64x8xbf16> to vector<64x8xbf16>
    %cst_42 = arith.constant dense<0.000000e+00> : vector<8x8xf32>
    %67 = tpu.matmul %30, %66, %cst_42 {dimension_numbers = #tpu.dot_dimension_numbers<[1], [0], [0], [1], [0, 0, 1, 1], [], []>} : vector<8x64xbf16>, vector<64x8xbf16>, vector<8x8xf32> -> vector<8x8xf32>
    %c1_43 = arith.constant 1 : index
    %c0_44 = arith.constant 0 : index
    %c0_45 = arith.constant 0 : index
    %68 = vector.load %arg7[%c1_43, %c0_44, %c0_45] : memref<4x64x8xbf16, #tpu.memory_space<vmem>>, vector<1x64x8xbf16>
    %69 = vector.shape_cast %68 : vector<1x64x8xbf16> to vector<64x8xbf16>
    %cst_46 = arith.constant dense<0.000000e+00> : vector<8x8xf32>
    %70 = tpu.matmul %30, %69, %cst_46 {dimension_numbers = #tpu.dot_dimension_numbers<[1], [0], [0], [1], [0, 0, 1, 1], [], []>} : vector<8x64xbf16>, vector<64x8xbf16>, vector<8x8xf32> -> vector<8x8xf32>
    %71 = arith.truncf %64 : vector<16x8xf32> to vector<16x8xbf16>
    %72 = arith.truncf %67 : vector<8x8xf32> to vector<8x8xbf16>
    %cst_47 = arith.constant dense<0.000000e+00> : vector<16x8xf32>
    %73 = tpu.matmul %71, %72, %cst_47 {dimension_numbers = #tpu.dot_dimension_numbers<[1], [1], [0], [0], [0, 0, 1, 0], [], []>} : vector<16x8xbf16>, vector<8x8xbf16>, vector<16x8xf32> -> vector<16x8xf32>
    %cst_48 = arith.constant 0.353553385 : f32
    %74 = vector.broadcast %cst_48 : f32 to vector<16x8xf32>
    %75 = arith.mulf %73, %74 : vector<16x8xf32>
    %cst_49 = arith.constant dense<0xFF800000> : vector<16xf32>
    %76 = vector.multi_reduction <maximumf>, %75, %cst_49 [1] : vector<16x8xf32> to vector<16xf32>
    %77 = vector.shape_cast %76 : vector<16xf32> to vector<16x1xf32>
    %78 = vector.broadcast %77 : vector<16x1xf32> to vector<16x8xf32>
    %79 = arith.subf %75, %78 : vector<16x8xf32>
    %80 = math.exp %79 : vector<16x8xf32>
    %cst_50 = arith.constant dense<0.000000e+00> : vector<16xf32>
    %81 = vector.multi_reduction <add>, %80, %cst_50 [1] : vector<16x8xf32> to vector<16xf32>
    %82 = vector.shape_cast %81 : vector<16xf32> to vector<16x1xf32>
    %83 = tpu.reciprocal %82 {approx = true} : vector<16x1xf32> -> vector<16x1xf32>
    %84 = vector.broadcast %83 : vector<16x1xf32> to vector<16x8xf32>
    %85 = arith.mulf %80, %84 : vector<16x8xf32>
    %86 = arith.truncf %85 : vector<16x8xf32> to vector<16x8xbf16>
    %87 = arith.truncf %70 : vector<8x8xf32> to vector<8x8xbf16>
    %cst_51 = arith.constant dense<0.000000e+00> : vector<16x8xf32>
    %88 = tpu.matmul %86, %87, %cst_51 {dimension_numbers = #tpu.dot_dimension_numbers<[1], [0], [0], [1], [0, 0, 1, 1], [], []>} : vector<16x8xbf16>, vector<8x8xbf16>, vector<16x8xf32> -> vector<16x8xf32>
    %89 = arith.truncf %88 : vector<16x8xf32> to vector<16x8xbf16>
    %c1_52 = arith.constant 1 : index
    %c0_53 = arith.constant 0 : index
    %c0_54 = arith.constant 0 : index
    %90 = vector.load %arg8[%c1_52, %c0_53, %c0_54] : memref<4x8x32xbf16, #tpu.memory_space<vmem>>, vector<1x8x32xbf16>
    %91 = vector.shape_cast %90 : vector<1x8x32xbf16> to vector<8x32xbf16>
    %cst_55 = arith.constant dense<0.000000e+00> : vector<16x32xf32>
    %92 = tpu.matmul %89, %91, %cst_55 {dimension_numbers = #tpu.dot_dimension_numbers<[1], [0], [0], [1], [0, 0, 1, 1], [], []>} : vector<16x8xbf16>, vector<8x32xbf16>, vector<16x32xf32> -> vector<16x32xf32>
    %93 = arith.addf %61, %92 : vector<16x32xf32>
    %c2 = arith.constant 2 : index
    %c0_56 = arith.constant 0 : index
    %c0_57 = arith.constant 0 : index
    %94 = vector.load %arg5[%c2, %c0_56, %c0_57] : memref<4x32x8xbf16, #tpu.memory_space<vmem>>, vector<1x32x8xbf16>
    %95 = vector.shape_cast %94 : vector<1x32x8xbf16> to vector<32x8xbf16>
    %cst_58 = arith.constant dense<0.000000e+00> : vector<16x8xf32>
    %96 = tpu.matmul %29, %95, %cst_58 {dimension_numbers = #tpu.dot_dimension_numbers<[1], [0], [0], [1], [0, 0, 1, 1], [], []>} : vector<16x32xbf16>, vector<32x8xbf16>, vector<16x8xf32> -> vector<16x8xf32>
    %c2_59 = arith.constant 2 : index
    %c0_60 = arith.constant 0 : index
    %c0_61 = arith.constant 0 : index
    %97 = vector.load %arg6[%c2_59, %c0_60, %c0_61] : memref<4x64x8xbf16, #tpu.memory_space<vmem>>, vector<1x64x8xbf16>
    %98 = vector.shape_cast %97 : vector<1x64x8xbf16> to vector<64x8xbf16>
    %cst_62 = arith.constant dense<0.000000e+00> : vector<8x8xf32>
    %99 = tpu.matmul %30, %98, %cst_62 {dimension_numbers = #tpu.dot_dimension_numbers<[1], [0], [0], [1], [0, 0, 1, 1], [], []>} : vector<8x64xbf16>, vector<64x8xbf16>, vector<8x8xf32> -> vector<8x8xf32>
    %c2_63 = arith.constant 2 : index
    %c0_64 = arith.constant 0 : index
    %c0_65 = arith.constant 0 : index
    %100 = vector.load %arg7[%c2_63, %c0_64, %c0_65] : memref<4x64x8xbf16, #tpu.memory_space<vmem>>, vector<1x64x8xbf16>
    %101 = vector.shape_cast %100 : vector<1x64x8xbf16> to vector<64x8xbf16>
    %cst_66 = arith.constant dense<0.000000e+00> : vector<8x8xf32>
    %102 = tpu.matmul %30, %101, %cst_66 {dimension_numbers = #tpu.dot_dimension_numbers<[1], [0], [0], [1], [0, 0, 1, 1], [], []>} : vector<8x64xbf16>, vector<64x8xbf16>, vector<8x8xf32> -> vector<8x8xf32>
    %103 = arith.truncf %96 : vector<16x8xf32> to vector<16x8xbf16>
    %104 = arith.truncf %99 : vector<8x8xf32> to vector<8x8xbf16>
    %cst_67 = arith.constant dense<0.000000e+00> : vector<16x8xf32>
    %105 = tpu.matmul %103, %104, %cst_67 {dimension_numbers = #tpu.dot_dimension_numbers<[1], [1], [0], [0], [0, 0, 1, 0], [], []>} : vector<16x8xbf16>, vector<8x8xbf16>, vector<16x8xf32> -> vector<16x8xf32>
    %cst_68 = arith.constant 0.353553385 : f32
    %106 = vector.broadcast %cst_68 : f32 to vector<16x8xf32>
    %107 = arith.mulf %105, %106 : vector<16x8xf32>
    %cst_69 = arith.constant dense<0xFF800000> : vector<16xf32>
    %108 = vector.multi_reduction <maximumf>, %107, %cst_69 [1] : vector<16x8xf32> to vector<16xf32>
    %109 = vector.shape_cast %108 : vector<16xf32> to vector<16x1xf32>
    %110 = vector.broadcast %109 : vector<16x1xf32> to vector<16x8xf32>
    %111 = arith.subf %107, %110 : vector<16x8xf32>
    %112 = math.exp %111 : vector<16x8xf32>
    %cst_70 = arith.constant dense<0.000000e+00> : vector<16xf32>
    %113 = vector.multi_reduction <add>, %112, %cst_70 [1] : vector<16x8xf32> to vector<16xf32>
    %114 = vector.shape_cast %113 : vector<16xf32> to vector<16x1xf32>
    %115 = tpu.reciprocal %114 {approx = true} : vector<16x1xf32> -> vector<16x1xf32>
    %116 = vector.broadcast %115 : vector<16x1xf32> to vector<16x8xf32>
    %117 = arith.mulf %112, %116 : vector<16x8xf32>
    %118 = arith.truncf %117 : vector<16x8xf32> to vector<16x8xbf16>
    %119 = arith.truncf %102 : vector<8x8xf32> to vector<8x8xbf16>
    %cst_71 = arith.constant dense<0.000000e+00> : vector<16x8xf32>
    %120 = tpu.matmul %118, %119, %cst_71 {dimension_numbers = #tpu.dot_dimension_numbers<[1], [0], [0], [1], [0, 0, 1, 1], [], []>} : vector<16x8xbf16>, vector<8x8xbf16>, vector<16x8xf32> -> vector<16x8xf32>
    %121 = arith.truncf %120 : vector<16x8xf32> to vector<16x8xbf16>
    %c2_72 = arith.constant 2 : index
    %c0_73 = arith.constant 0 : index
    %c0_74 = arith.constant 0 : index
    %122 = vector.load %arg8[%c2_72, %c0_73, %c0_74] : memref<4x8x32xbf16, #tpu.memory_space<vmem>>, vector<1x8x32xbf16>
    %123 = vector.shape_cast %122 : vector<1x8x32xbf16> to vector<8x32xbf16>
    %cst_75 = arith.constant dense<0.000000e+00> : vector<16x32xf32>
    %124 = tpu.matmul %121, %123, %cst_75 {dimension_numbers = #tpu.dot_dimension_numbers<[1], [0], [0], [1], [0, 0, 1, 1], [], []>} : vector<16x8xbf16>, vector<8x32xbf16>, vector<16x32xf32> -> vector<16x32xf32>
    %125 = arith.addf %93, %124 : vector<16x32xf32>
    %c3 = arith.constant 3 : index
    %c0_76 = arith.constant 0 : index
    %c0_77 = arith.constant 0 : index
    %126 = vector.load %arg5[%c3, %c0_76, %c0_77] : memref<4x32x8xbf16, #tpu.memory_space<vmem>>, vector<1x32x8xbf16>
    %127 = vector.shape_cast %126 : vector<1x32x8xbf16> to vector<32x8xbf16>
    %cst_78 = arith.constant dense<0.000000e+00> : vector<16x8xf32>
    %128 = tpu.matmul %29, %127, %cst_78 {dimension_numbers = #tpu.dot_dimension_numbers<[1], [0], [0], [1], [0, 0, 1, 1], [], []>} : vector<16x32xbf16>, vector<32x8xbf16>, vector<16x8xf32> -> vector<16x8xf32>
    %c3_79 = arith.constant 3 : index
    %c0_80 = arith.constant 0 : index
    %c0_81 = arith.constant 0 : index
    %129 = vector.load %arg6[%c3_79, %c0_80, %c0_81] : memref<4x64x8xbf16, #tpu.memory_space<vmem>>, vector<1x64x8xbf16>
    %130 = vector.shape_cast %129 : vector<1x64x8xbf16> to vector<64x8xbf16>
    %cst_82 = arith.constant dense<0.000000e+00> : vector<8x8xf32>
    %131 = tpu.matmul %30, %130, %cst_82 {dimension_numbers = #tpu.dot_dimension_numbers<[1], [0], [0], [1], [0, 0, 1, 1], [], []>} : vector<8x64xbf16>, vector<64x8xbf16>, vector<8x8xf32> -> vector<8x8xf32>
    %c3_83 = arith.constant 3 : index
    %c0_84 = arith.constant 0 : index
    %c0_85 = arith.constant 0 : index
    %132 = vector.load %arg7[%c3_83, %c0_84, %c0_85] : memref<4x64x8xbf16, #tpu.memory_space<vmem>>, vector<1x64x8xbf16>
    %133 = vector.shape_cast %132 : vector<1x64x8xbf16> to vector<64x8xbf16>
    %cst_86 = arith.constant dense<0.000000e+00> : vector<8x8xf32>
    %134 = tpu.matmul %30, %133, %cst_86 {dimension_numbers = #tpu.dot_dimension_numbers<[1], [0], [0], [1], [0, 0, 1, 1], [], []>} : vector<8x64xbf16>, vector<64x8xbf16>, vector<8x8xf32> -> vector<8x8xf32>
    %135 = arith.truncf %128 : vector<16x8xf32> to vector<16x8xbf16>
    %136 = arith.truncf %131 : vector<8x8xf32> to vector<8x8xbf16>
    %cst_87 = arith.constant dense<0.000000e+00> : vector<16x8xf32>
    %137 = tpu.matmul %135, %136, %cst_87 {dimension_numbers = #tpu.dot_dimension_numbers<[1], [1], [0], [0], [0, 0, 1, 0], [], []>} : vector<16x8xbf16>, vector<8x8xbf16>, vector<16x8xf32> -> vector<16x8xf32>
    %cst_88 = arith.constant 0.353553385 : f32
    %138 = vector.broadcast %cst_88 : f32 to vector<16x8xf32>
    %139 = arith.mulf %137, %138 : vector<16x8xf32>
    %cst_89 = arith.constant dense<0xFF800000> : vector<16xf32>
    %140 = vector.multi_reduction <maximumf>, %139, %cst_89 [1] : vector<16x8xf32> to vector<16xf32>
    %141 = vector.shape_cast %140 : vector<16xf32> to vector<16x1xf32>
    %142 = vector.broadcast %141 : vector<16x1xf32> to vector<16x8xf32>
    %143 = arith.subf %139, %142 : vector<16x8xf32>
    %144 = math.exp %143 : vector<16x8xf32>
    %cst_90 = arith.constant dense<0.000000e+00> : vector<16xf32>
    %145 = vector.multi_reduction <add>, %144, %cst_90 [1] : vector<16x8xf32> to vector<16xf32>
    %146 = vector.shape_cast %145 : vector<16xf32> to vector<16x1xf32>
    %147 = tpu.reciprocal %146 {approx = true} : vector<16x1xf32> -> vector<16x1xf32>
    %148 = vector.broadcast %147 : vector<16x1xf32> to vector<16x8xf32>
    %149 = arith.mulf %144, %148 : vector<16x8xf32>
    %150 = arith.truncf %149 : vector<16x8xf32> to vector<16x8xbf16>
    %151 = arith.truncf %134 : vector<8x8xf32> to vector<8x8xbf16>
    %cst_91 = arith.constant dense<0.000000e+00> : vector<16x8xf32>
    %152 = tpu.matmul %150, %151, %cst_91 {dimension_numbers = #tpu.dot_dimension_numbers<[1], [0], [0], [1], [0, 0, 1, 1], [], []>} : vector<16x8xbf16>, vector<8x8xbf16>, vector<16x8xf32> -> vector<16x8xf32>
    %153 = arith.truncf %152 : vector<16x8xf32> to vector<16x8xbf16>
    %c3_92 = arith.constant 3 : index
    %c0_93 = arith.constant 0 : index
    %c0_94 = arith.constant 0 : index
    %154 = vector.load %arg8[%c3_92, %c0_93, %c0_94] : memref<4x8x32xbf16, #tpu.memory_space<vmem>>, vector<1x8x32xbf16>
    %155 = vector.shape_cast %154 : vector<1x8x32xbf16> to vector<8x32xbf16>
    %cst_95 = arith.constant dense<0.000000e+00> : vector<16x32xf32>
    %156 = tpu.matmul %153, %155, %cst_95 {dimension_numbers = #tpu.dot_dimension_numbers<[1], [0], [0], [1], [0, 0, 1, 1], [], []>} : vector<16x8xbf16>, vector<8x32xbf16>, vector<16x32xf32> -> vector<16x32xf32>
    %157 = arith.addf %125, %156 : vector<16x32xf32>
    %158 = vector.broadcast %28 : vector<1x32xf32> to vector<16x32xf32>
    %159 = arith.addf %157, %158 : vector<16x32xf32>
    %160 = arith.addf %159, %1 : vector<16x32xf32>
    %c0_96 = arith.constant 0 : index
    %c0_97 = arith.constant 0 : index
    %c0_98 = arith.constant 0 : index
    %161 = vector.load %arg10[%c0_96, %c0_97, %c0_98] : memref<1x16x32xf32, #tpu.memory_space<vmem>>, vector<1x16x32xf32>
    %162 = vector.shape_cast %161 : vector<1x16x32xf32> to vector<16x32xf32>
    %163 = vector.shape_cast %160 : vector<16x32xf32> to vector<1x16x32xf32>
    tpu.vector_store %arg10[%c0_96, %c0_97, %c0_98], %163 {strides = array<i32>} : memref<1x16x32xf32, #tpu.memory_space<vmem>>, vector<1x16x32xf32>,
    return
  }
  func.func @transform_0(%arg0: i32) -> (i32, i32, i32) {
    %c0_i32 = arith.constant 0 : i32
    %c0_i32_0 = arith.constant 0 : i32
    %c0_i32_1 = arith.constant 0 : i32
    return %arg0, %c0_i32, %c0_i32_0 : i32, i32, i32
  }
  func.func @transform_1(%arg0: i32) -> (i32, i32) {
    %c0_i32 = arith.constant 0 : i32
    %c0_i32_0 = arith.constant 0 : i32
    %c0_i32_1 = arith.constant 0 : i32
    return %c0_i32, %c0_i32_0 : i32, i32
  }
  func.func @transform_2(%arg0: i32) -> (i32, i32) {
    %c0_i32 = arith.constant 0 : i32
    %c0_i32_0 = arith.constant 0 : i32
    %c0_i32_1 = arith.constant 0 : i32
    return %c0_i32, %c0_i32_0 : i32, i32
  }
  func.func @transform_3(%arg0: i32) -> (i32, i32, i32) {
    %c0_i32 = arith.constant 0 : i32
    %c0_i32_0 = arith.constant 0 : i32
    %c0_i32_1 = arith.constant 0 : i32
    return %arg0, %c0_i32, %c0_i32_0 : i32, i32, i32
  }
  func.func @transform_4(%arg0: i32) -> (i32, i32, i32) {
    %c0_i32 = arith.constant 0 : i32
    %c0_i32_0 = arith.constant 0 : i32
    %c0_i32_1 = arith.constant 0 : i32
    %c0_i32_2 = arith.constant 0 : i32
    return %c0_i32, %c0_i32_0, %c0_i32_1 : i32, i32, i32
  }
  func.func @transform_5(%arg0: i32) -> (i32, i32, i32) {
    %c0_i32 = arith.constant 0 : i32
    %c0_i32_0 = arith.constant 0 : i32
    %c0_i32_1 = arith.constant 0 : i32
    %c0_i32_2 = arith.constant 0 : i32
    return %c0_i32, %c0_i32_0, %c0_i32_1 : i32, i32, i32
  }
  func.func @transform_6(%arg0: i32) -> (i32, i32, i32) {
    %c0_i32 = arith.constant 0 : i32
    %c0_i32_0 = arith.constant 0 : i32
    %c0_i32_1 = arith.constant 0 : i32
    %c0_i32_2 = arith.constant 0 : i32
    return %c0_i32, %c0_i32_0, %c0_i32_1 : i32, i32, i32
  }
  func.func @transform_7(%arg0: i32) -> (i32, i32, i32) {
    %c0_i32 = arith.constant 0 : i32
    %c0_i32_0 = arith.constant 0 : i32
    %c0_i32_1 = arith.constant 0 : i32
    %c0_i32_2 = arith.constant 0 : i32
    return %c0_i32, %c0_i32_0, %c0_i32_1 : i32, i32, i32
  }
  func.func @transform_8(%arg0: i32) -> (i32, i32) {
    %c0_i32 = arith.constant 0 : i32
    %c0_i32_0 = arith.constant 0 : i32
    %c0_i32_1 = arith.constant 0 : i32
    return %c0_i32, %c0_i32_0 : i32, i32
  }
  func.func @transform_9(%arg0: i32) -> (i32, i32, i32) {
    %c0_i32 = arith.constant 0 : i32
    %c0_i32_0 = arith.constant 0 : i32
    %c0_i32_1 = arith.constant 0 : i32
    return %arg0, %c0_i32, %c0_i32_0 : i32, i32, i32
  }
}

module attributes {stable_mosaic.version = 11 : i64} {
  func.func @_resnet_part2_kernel(%arg0: i32, %arg1: memref<1x16x32xf32, #tpu.memory_space<vmem>>, %arg2: memref<1x32xf32, #tpu.memory_space<vmem>>, %arg3: memref<1x32xf32, #tpu.memory_space<vmem>>, %arg4: memref<32x32xf32, #tpu.memory_space<vmem>>, %arg5: memref<3x32x32xbf16, #tpu.memory_space<vmem>>, %arg6: memref<1x32xf32, #tpu.memory_space<vmem>>, %arg7: memref<1x16x32xf32, #tpu.memory_space<vmem>>, %arg8: memref<1x16x32xf32, #tpu.memory_space<vmem>>) attributes {dimension_semantics = [#tpu.dimension_semantics<parallel>], iteration_bounds = array<i64: 2>, scalar_prefetch = 0 : i64, scratch_operands = 0 : i64, tpu.core_type = #tpu.core_type<tc>, window_params = [{transform_indices = @transform_0, window_bounds = array<i64: 1, 16, 32>}, {pipeline_mode = #tpu.pipeline_mode<synchronous>, transform_indices = @transform_1, window_bounds = array<i64: 1, 32>}, {pipeline_mode = #tpu.pipeline_mode<synchronous>, transform_indices = @transform_2, window_bounds = array<i64: 1, 32>}, {pipeline_mode = #tpu.pipeline_mode<synchronous>, transform_indices = @transform_3, window_bounds = array<i64: 32, 32>}, {pipeline_mode = #tpu.pipeline_mode<synchronous>, transform_indices = @transform_4, window_bounds = array<i64: 3, 32, 32>}, {pipeline_mode = #tpu.pipeline_mode<synchronous>, transform_indices = @transform_5, window_bounds = array<i64: 1, 32>}, {transform_indices = @transform_6, window_bounds = array<i64: 1, 16, 32>}, {transform_indices = @transform_7, window_bounds = array<i64: 1, 16, 32>}]} {
    %c0 = arith.constant 0 : index
    %c0_0 = arith.constant 0 : index
    %c0_1 = arith.constant 0 : index
    %0 = vector.load %arg1[%c0, %c0_0, %c0_1] : memref<1x16x32xf32, #tpu.memory_space<vmem>>, vector<1x16x32xf32>
    %1 = vector.shape_cast %0 : vector<1x16x32xf32> to vector<16x32xf32>
    %c0_2 = arith.constant 0 : index
    %c0_3 = arith.constant 0 : index
    %2 = vector.load %arg4[%c0_2, %c0_3] : memref<32x32xf32, #tpu.memory_space<vmem>>, vector<32x32xf32>
    %c0_4 = arith.constant 0 : index
    %c0_5 = arith.constant 0 : index
    %3 = vector.load %arg2[%c0_4, %c0_5] : memref<1x32xf32, #tpu.memory_space<vmem>>, vector<1x32xf32>
    %c0_6 = arith.constant 0 : index
    %c0_7 = arith.constant 0 : index
    %4 = vector.load %arg3[%c0_6, %c0_7] : memref<1x32xf32, #tpu.memory_space<vmem>>, vector<1x32xf32>
    %cst = arith.constant dense<0.000000e+00> : vector<32xf32>
    %5 = vector.multi_reduction <add>, %1, %cst [0] : vector<16x32xf32> to vector<32xf32>
    %6 = vector.shape_cast %5 : vector<32xf32> to vector<1x32xf32>
    %7 = arith.mulf %1, %1 : vector<16x32xf32>
    %cst_8 = arith.constant dense<0.000000e+00> : vector<32xf32>
    %8 = vector.multi_reduction <add>, %7, %cst_8 [0] : vector<16x32xf32> to vector<32xf32>
    %9 = vector.shape_cast %8 : vector<32xf32> to vector<1x32xf32>
    %cst_9 = arith.constant dense<0.000000e+00> : vector<1x32xf32>
    %10 = tpu.matmul %6, %2, %cst_9 {dimension_numbers = #tpu.dot_dimension_numbers<[1], [0], [0], [1], [0, 0, 1, 1], [], []>} : vector<1x32xf32>, vector<32x32xf32>, vector<1x32xf32> -> vector<1x32xf32>
    %cst_10 = arith.constant 1.562500e-02 : f32
    %11 = vector.broadcast %cst_10 : f32 to vector<1x32xf32>
    %12 = arith.mulf %10, %11 : vector<1x32xf32>
    %cst_11 = arith.constant dense<0.000000e+00> : vector<1x32xf32>
    %13 = tpu.matmul %9, %2, %cst_11 {dimension_numbers = #tpu.dot_dimension_numbers<[1], [0], [0], [1], [0, 0, 1, 1], [], []>} : vector<1x32xf32>, vector<32x32xf32>, vector<1x32xf32> -> vector<1x32xf32>
    %cst_12 = arith.constant 1.562500e-02 : f32
    %14 = vector.broadcast %cst_12 : f32 to vector<1x32xf32>
    %15 = arith.mulf %13, %14 : vector<1x32xf32>
    %16 = arith.mulf %12, %12 : vector<1x32xf32>
    %17 = arith.subf %15, %16 : vector<1x32xf32>
    %cst_13 = arith.constant 0.000000e+00 : f32
    %18 = vector.broadcast %cst_13 : f32 to vector<1x32xf32>
    %19 = arith.maximumf %17, %18 : vector<1x32xf32>
    %20 = vector.broadcast %12 : vector<1x32xf32> to vector<16x32xf32>
    %21 = arith.subf %1, %20 : vector<16x32xf32>
    %cst_14 = arith.constant 9.99999997E-7 : f32
    %22 = vector.broadcast %cst_14 : f32 to vector<1x32xf32>
    %23 = arith.addf %19, %22 : vector<1x32xf32>
    %24 = math.rsqrt %23 : vector<1x32xf32>
    %25 = vector.broadcast %24 : vector<1x32xf32> to vector<16x32xf32>
    %26 = arith.mulf %21, %25 : vector<16x32xf32>
    %27 = vector.broadcast %3 : vector<1x32xf32> to vector<16x32xf32>
    %28 = arith.mulf %26, %27 : vector<16x32xf32>
    %29 = vector.broadcast %4 : vector<1x32xf32> to vector<16x32xf32>
    %30 = arith.addf %28, %29 : vector<16x32xf32>
    %31 = arith.negf %30 : vector<16x32xf32>
    %32 = math.exp %31 : vector<16x32xf32>
    %cst_15 = arith.constant 1.000000e+00 : f32
    %33 = vector.broadcast %cst_15 : f32 to vector<16x32xf32>
    %34 = arith.addf %33, %32 : vector<16x32xf32>
    %35 = arith.divf %33, %34 : vector<16x32xf32>
    %36 = arith.mulf %30, %35 : vector<16x32xf32>
    %c0_16 = arith.constant 0 : index
    %c0_17 = arith.constant 0 : index
    %37 = vector.load %arg6[%c0_16, %c0_17] : memref<1x32xf32, #tpu.memory_space<vmem>>, vector<1x32xf32>
    %38 = tpu.iota {dimensions = array<i32: 0>} : vector<16x32xi32>
    %39 = arith.truncf %36 : vector<16x32xf32> to vector<16x32xbf16>
    %c0_i32 = arith.constant 0 : i32
    %40 = vector.broadcast %c0_i32 : i32 to vector<16x32xi32>
    %41 = arith.cmpi eq, %38, %40 : vector<16x32xi32>
    %c1_i32 = arith.constant 1 : i32
    %42 = tpu.dynamic_rotate %36 by %c1_i32 dim 0 : vector<16x32xf32>, i32 -> vector<16x32xf32>
    %cst_18 = arith.constant 0.000000e+00 : f32
    %43 = vector.broadcast %cst_18 : f32 to vector<16x32xf32>
    %44 = arith.select %41, %43, %42 : vector<16x32xi1>, vector<16x32xf32>
    %45 = arith.truncf %44 : vector<16x32xf32> to vector<16x32xbf16>
    %c15_i32 = arith.constant 15 : i32
    %46 = vector.broadcast %c15_i32 : i32 to vector<16x32xi32>
    %47 = arith.cmpi eq, %38, %46 : vector<16x32xi32>
    %c15_i32_19 = arith.constant 15 : i32
    %48 = tpu.dynamic_rotate %36 by %c15_i32_19 dim 0 : vector<16x32xf32>, i32 -> vector<16x32xf32>
    %cst_20 = arith.constant 0.000000e+00 : f32
    %49 = vector.broadcast %cst_20 : f32 to vector<16x32xf32>
    %50 = arith.select %47, %49, %48 : vector<16x32xi1>, vector<16x32xf32>
    %51 = arith.truncf %50 : vector<16x32xf32> to vector<16x32xbf16>
    %c0_21 = arith.constant 0 : index
    %c0_22 = arith.constant 0 : index
    %c0_23 = arith.constant 0 : index
    %52 = vector.load %arg5[%c0_21, %c0_22, %c0_23] : memref<3x32x32xbf16, #tpu.memory_space<vmem>>, vector<1x32x32xbf16>
    %53 = vector.shape_cast %52 : vector<1x32x32xbf16> to vector<32x32xbf16>
    %cst_24 = arith.constant dense<0.000000e+00> : vector<16x32xf32>
    %54 = tpu.matmul %45, %53, %cst_24 {dimension_numbers = #tpu.dot_dimension_numbers<[1], [0], [0], [1], [0, 0, 1, 1], [], []>} : vector<16x32xbf16>, vector<32x32xbf16>, vector<16x32xf32> -> vector<16x32xf32>
    %c1 = arith.constant 1 : index
    %c0_25 = arith.constant 0 : index
    %c0_26 = arith.constant 0 : index
    %55 = vector.load %arg5[%c1, %c0_25, %c0_26] : memref<3x32x32xbf16, #tpu.memory_space<vmem>>, vector<1x32x32xbf16>
    %56 = vector.shape_cast %55 : vector<1x32x32xbf16> to vector<32x32xbf16>
    %cst_27 = arith.constant dense<0.000000e+00> : vector<16x32xf32>
    %57 = tpu.matmul %39, %56, %cst_27 {dimension_numbers = #tpu.dot_dimension_numbers<[1], [0], [0], [1], [0, 0, 1, 1], [], []>} : vector<16x32xbf16>, vector<32x32xbf16>, vector<16x32xf32> -> vector<16x32xf32>
    %58 = arith.addf %54, %57 : vector<16x32xf32>
    %c2 = arith.constant 2 : index
    %c0_28 = arith.constant 0 : index
    %c0_29 = arith.constant 0 : index
    %59 = vector.load %arg5[%c2, %c0_28, %c0_29] : memref<3x32x32xbf16, #tpu.memory_space<vmem>>, vector<1x32x32xbf16>
    %60 = vector.shape_cast %59 : vector<1x32x32xbf16> to vector<32x32xbf16>
    %cst_30 = arith.constant dense<0.000000e+00> : vector<16x32xf32>
    %61 = tpu.matmul %51, %60, %cst_30 {dimension_numbers = #tpu.dot_dimension_numbers<[1], [0], [0], [1], [0, 0, 1, 1], [], []>} : vector<16x32xbf16>, vector<32x32xbf16>, vector<16x32xf32> -> vector<16x32xf32>
    %62 = arith.addf %58, %61 : vector<16x32xf32>
    %63 = vector.broadcast %37 : vector<1x32xf32> to vector<16x32xf32>
    %64 = arith.addf %62, %63 : vector<16x32xf32>
    %c0_31 = arith.constant 0 : index
    %c0_32 = arith.constant 0 : index
    %c0_33 = arith.constant 0 : index
    %65 = vector.load %arg7[%c0_31, %c0_32, %c0_33] : memref<1x16x32xf32, #tpu.memory_space<vmem>>, vector<1x16x32xf32>
    %66 = vector.shape_cast %65 : vector<1x16x32xf32> to vector<16x32xf32>
    %67 = arith.addf %66, %64 : vector<16x32xf32>
    %cst_34 = arith.constant 1.000000e+00 : f32
    %68 = vector.broadcast %cst_34 : f32 to vector<16x32xf32>
    %69 = arith.mulf %67, %68 : vector<16x32xf32>
    %c0_35 = arith.constant 0 : index
    %c0_36 = arith.constant 0 : index
    %c0_37 = arith.constant 0 : index
    %70 = vector.load %arg8[%c0_35, %c0_36, %c0_37] : memref<1x16x32xf32, #tpu.memory_space<vmem>>, vector<1x16x32xf32>
    %71 = vector.shape_cast %70 : vector<1x16x32xf32> to vector<16x32xf32>
    %72 = vector.shape_cast %69 : vector<16x32xf32> to vector<1x16x32xf32>
    tpu.vector_store %arg8[%c0_35, %c0_36, %c0_37], %72 {strides = array<i32>} : memref<1x16x32xf32, #tpu.memory_space<vmem>>, vector<1x16x32xf32>,
    return
  }
  func.func @transform_0(%arg0: i32) -> (i32, i32, i32) {
    %c0_i32 = arith.constant 0 : i32
    %c0_i32_0 = arith.constant 0 : i32
    %c0_i32_1 = arith.constant 0 : i32
    return %arg0, %c0_i32, %c0_i32_0 : i32, i32, i32
  }
  func.func @transform_1(%arg0: i32) -> (i32, i32) {
    %c0_i32 = arith.constant 0 : i32
    %c0_i32_0 = arith.constant 0 : i32
    %c0_i32_1 = arith.constant 0 : i32
    return %c0_i32, %c0_i32_0 : i32, i32
  }
  func.func @transform_2(%arg0: i32) -> (i32, i32) {
    %c0_i32 = arith.constant 0 : i32
    %c0_i32_0 = arith.constant 0 : i32
    %c0_i32_1 = arith.constant 0 : i32
    return %c0_i32, %c0_i32_0 : i32, i32
  }
  func.func @transform_3(%arg0: i32) -> (i32, i32) {
    %c0_i32 = arith.constant 0 : i32
    %c0_i32_0 = arith.constant 0 : i32
    %c0_i32_1 = arith.constant 0 : i32
    return %c0_i32, %c0_i32_0 : i32, i32
  }
  func.func @transform_4(%arg0: i32) -> (i32, i32, i32) {
    %c0_i32 = arith.constant 0 : i32
    %c0_i32_0 = arith.constant 0 : i32
    %c0_i32_1 = arith.constant 0 : i32
    %c0_i32_2 = arith.constant 0 : i32
    return %c0_i32, %c0_i32_0, %c0_i32_1 : i32, i32, i32
  }
  func.func @transform_5(%arg0: i32) -> (i32, i32) {
    %c0_i32 = arith.constant 0 : i32
    %c0_i32_0 = arith.constant 0 : i32
    %c0_i32_1 = arith.constant 0 : i32
    return %c0_i32, %c0_i32_0 : i32, i32
  }
  func.func @transform_6(%arg0: i32) -> (i32, i32, i32) {
    %c0_i32 = arith.constant 0 : i32
    %c0_i32_0 = arith.constant 0 : i32
    %c0_i32_1 = arith.constant 0 : i32
    return %arg0, %c0_i32, %c0_i32_0 : i32, i32, i32
  }
  func.func @transform_7(%arg0: i32) -> (i32, i32, i32) {
    %c0_i32 = arith.constant 0 : i32
    %c0_i32_0 = arith.constant 0 : i32
    %c0_i32_1 = arith.constant 0 : i32
    return %arg0, %c0_i32, %c0_i32_0 : i32, i32, i32
  }
}

module attributes {stable_mosaic.version = 11 : i64} {
  func.func @_ff_projout_kernel(%arg0: i32, %arg1: memref<1x16x32xf32, #tpu.memory_space<vmem>>, %arg2: memref<1x32xf32, #tpu.memory_space<vmem>>, %arg3: memref<1x32xf32, #tpu.memory_space<vmem>>, %arg4: memref<32x128xbf16, #tpu.memory_space<vmem>>, %arg5: memref<1x128xf32, #tpu.memory_space<vmem>>, %arg6: memref<32x128xbf16, #tpu.memory_space<vmem>>, %arg7: memref<1x128xf32, #tpu.memory_space<vmem>>, %arg8: memref<128x32xbf16, #tpu.memory_space<vmem>>, %arg9: memref<1x32xf32, #tpu.memory_space<vmem>>, %arg10: memref<32x32xbf16, #tpu.memory_space<vmem>>, %arg11: memref<1x32xf32, #tpu.memory_space<vmem>>, %arg12: memref<1x16x32xf32, #tpu.memory_space<vmem>>, %arg13: memref<1x16x32xf32, #tpu.memory_space<vmem>>) attributes {dimension_semantics = [#tpu.dimension_semantics<parallel>], iteration_bounds = array<i64: 2>, scalar_prefetch = 0 : i64, scratch_operands = 0 : i64, tpu.core_type = #tpu.core_type<tc>, window_params = [{transform_indices = @transform_0, window_bounds = array<i64: 1, 16, 32>}, {pipeline_mode = #tpu.pipeline_mode<synchronous>, transform_indices = @transform_1, window_bounds = array<i64: 1, 32>}, {pipeline_mode = #tpu.pipeline_mode<synchronous>, transform_indices = @transform_2, window_bounds = array<i64: 1, 32>}, {pipeline_mode = #tpu.pipeline_mode<synchronous>, transform_indices = @transform_3, window_bounds = array<i64: 32, 128>}, {pipeline_mode = #tpu.pipeline_mode<synchronous>, transform_indices = @transform_4, window_bounds = array<i64: 1, 128>}, {pipeline_mode = #tpu.pipeline_mode<synchronous>, transform_indices = @transform_5, window_bounds = array<i64: 32, 128>}, {pipeline_mode = #tpu.pipeline_mode<synchronous>, transform_indices = @transform_6, window_bounds = array<i64: 1, 128>}, {pipeline_mode = #tpu.pipeline_mode<synchronous>, transform_indices = @transform_7, window_bounds = array<i64: 128, 32>}, {pipeline_mode = #tpu.pipeline_mode<synchronous>, transform_indices = @transform_8, window_bounds = array<i64: 1, 32>}, {pipeline_mode = #tpu.pipeline_mode<synchronous>, transform_indices = @transform_9, window_bounds = array<i64: 32, 32>}, {pipeline_mode = #tpu.pipeline_mode<synchronous>, transform_indices = @transform_10, window_bounds = array<i64: 1, 32>}, {transform_indices = @transform_11, window_bounds = array<i64: 1, 16, 32>}, {transform_indices = @transform_12, window_bounds = array<i64: 1, 16, 32>}]} {
    %c0 = arith.constant 0 : index
    %c0_0 = arith.constant 0 : index
    %c0_1 = arith.constant 0 : index
    %0 = vector.load %arg1[%c0, %c0_0, %c0_1] : memref<1x16x32xf32, #tpu.memory_space<vmem>>, vector<1x16x32xf32>
    %1 = vector.shape_cast %0 : vector<1x16x32xf32> to vector<16x32xf32>
    %c0_2 = arith.constant 0 : index
    %c0_3 = arith.constant 0 : index
    %2 = vector.load %arg2[%c0_2, %c0_3] : memref<1x32xf32, #tpu.memory_space<vmem>>, vector<1x32xf32>
    %c0_4 = arith.constant 0 : index
    %c0_5 = arith.constant 0 : index
    %3 = vector.load %arg3[%c0_4, %c0_5] : memref<1x32xf32, #tpu.memory_space<vmem>>, vector<1x32xf32>
    %cst = arith.constant dense<0.000000e+00> : vector<16xf32>
    %4 = vector.multi_reduction <add>, %1, %cst [1] : vector<16x32xf32> to vector<16xf32>
    %5 = vector.shape_cast %4 : vector<16xf32> to vector<16x1xf32>
    %cst_6 = arith.constant 3.200000e+01 : f32
    %6 = vector.broadcast %cst_6 : f32 to vector<16x1xf32>
    %7 = arith.divf %5, %6 : vector<16x1xf32>
    %8 = vector.broadcast %7 : vector<16x1xf32> to vector<16x32xf32>
    %9 = arith.subf %1, %8 : vector<16x32xf32>
    %10 = arith.mulf %9, %9 : vector<16x32xf32>
    %cst_7 = arith.constant dense<0.000000e+00> : vector<16xf32>
    %11 = vector.multi_reduction <add>, %10, %cst_7 [1] : vector<16x32xf32> to vector<16xf32>
    %12 = vector.shape_cast %11 : vector<16xf32> to vector<16x1xf32>
    %cst_8 = arith.constant 3.200000e+01 : f32
    %13 = vector.broadcast %cst_8 : f32 to vector<16x1xf32>
    %14 = arith.divf %12, %13 : vector<16x1xf32>
    %15 = vector.broadcast %7 : vector<16x1xf32> to vector<16x32xf32>
    %16 = arith.subf %1, %15 : vector<16x32xf32>
    %cst_9 = arith.constant 9.99999974E-6 : f32
    %17 = vector.broadcast %cst_9 : f32 to vector<16x1xf32>
    %18 = arith.addf %14, %17 : vector<16x1xf32>
    %19 = math.rsqrt %18 : vector<16x1xf32>
    %20 = vector.broadcast %19 : vector<16x1xf32> to vector<16x32xf32>
    %21 = arith.mulf %16, %20 : vector<16x32xf32>
    %22 = vector.broadcast %2 : vector<1x32xf32> to vector<16x32xf32>
    %23 = arith.mulf %21, %22 : vector<16x32xf32>
    %24 = vector.broadcast %3 : vector<1x32xf32> to vector<16x32xf32>
    %25 = arith.addf %23, %24 : vector<16x32xf32>
    %26 = arith.truncf %25 : vector<16x32xf32> to vector<16x32xbf16>
    %c0_10 = arith.constant 0 : index
    %c0_11 = arith.constant 0 : index
    %27 = vector.load %arg4[%c0_10, %c0_11] : memref<32x128xbf16, #tpu.memory_space<vmem>>, vector<32x128xbf16>
    %cst_12 = arith.constant dense<0.000000e+00> : vector<16x128xf32>
    %28 = tpu.matmul %26, %27, %cst_12 {dimension_numbers = #tpu.dot_dimension_numbers<[1], [0], [0], [1], [0, 0, 1, 1], [], []>} : vector<16x32xbf16>, vector<32x128xbf16>, vector<16x128xf32> -> vector<16x128xf32>
    %c0_13 = arith.constant 0 : index
    %c0_14 = arith.constant 0 : index
    %29 = vector.load %arg5[%c0_13, %c0_14] : memref<1x128xf32, #tpu.memory_space<vmem>>, vector<1x128xf32>
    %30 = vector.broadcast %29 : vector<1x128xf32> to vector<16x128xf32>
    %31 = arith.addf %28, %30 : vector<16x128xf32>
    %c0_15 = arith.constant 0 : index
    %c0_16 = arith.constant 0 : index
    %32 = vector.load %arg6[%c0_15, %c0_16] : memref<32x128xbf16, #tpu.memory_space<vmem>>, vector<32x128xbf16>
    %cst_17 = arith.constant dense<0.000000e+00> : vector<16x128xf32>
    %33 = tpu.matmul %26, %32, %cst_17 {dimension_numbers = #tpu.dot_dimension_numbers<[1], [0], [0], [1], [0, 0, 1, 1], [], []>} : vector<16x32xbf16>, vector<32x128xbf16>, vector<16x128xf32> -> vector<16x128xf32>
    %c0_18 = arith.constant 0 : index
    %c0_19 = arith.constant 0 : index
    %34 = vector.load %arg7[%c0_18, %c0_19] : memref<1x128xf32, #tpu.memory_space<vmem>>, vector<1x128xf32>
    %35 = vector.broadcast %34 : vector<1x128xf32> to vector<16x128xf32>
    %36 = arith.addf %33, %35 : vector<16x128xf32>
    %37 = arith.mulf %36, %36 : vector<16x128xf32>
    %38 = arith.mulf %36, %37 : vector<16x128xf32>
    %cst_20 = arith.constant 4.471500e-02 : f32
    %39 = vector.broadcast %cst_20 : f32 to vector<16x128xf32>
    %40 = arith.mulf %39, %38 : vector<16x128xf32>
    %41 = arith.addf %36, %40 : vector<16x128xf32>
    %cst_21 = arith.constant 0.797884583 : f32
    %42 = vector.broadcast %cst_21 : f32 to vector<16x128xf32>
    %43 = arith.mulf %42, %41 : vector<16x128xf32>
    %44 = math.tanh %43 : vector<16x128xf32>
    %cst_22 = arith.constant 1.000000e+00 : f32
    %45 = vector.broadcast %cst_22 : f32 to vector<16x128xf32>
    %46 = arith.addf %45, %44 : vector<16x128xf32>
    %cst_23 = arith.constant 5.000000e-01 : f32
    %47 = vector.broadcast %cst_23 : f32 to vector<16x128xf32>
    %48 = arith.mulf %47, %46 : vector<16x128xf32>
    %49 = arith.mulf %36, %48 : vector<16x128xf32>
    %50 = arith.mulf %31, %49 : vector<16x128xf32>
    %51 = arith.truncf %50 : vector<16x128xf32> to vector<16x128xbf16>
    %c0_24 = arith.constant 0 : index
    %c0_25 = arith.constant 0 : index
    %52 = vector.load %arg8[%c0_24, %c0_25] : memref<128x32xbf16, #tpu.memory_space<vmem>>, vector<128x32xbf16>
    %cst_26 = arith.constant dense<0.000000e+00> : vector<16x32xf32>
    %53 = tpu.matmul %51, %52, %cst_26 {dimension_numbers = #tpu.dot_dimension_numbers<[1], [0], [0], [1], [0, 0, 1, 1], [], []>} : vector<16x128xbf16>, vector<128x32xbf16>, vector<16x32xf32> -> vector<16x32xf32>
    %c0_27 = arith.constant 0 : index
    %c0_28 = arith.constant 0 : index
    %54 = vector.load %arg9[%c0_27, %c0_28] : memref<1x32xf32, #tpu.memory_space<vmem>>, vector<1x32xf32>
    %55 = vector.broadcast %54 : vector<1x32xf32> to vector<16x32xf32>
    %56 = arith.addf %53, %55 : vector<16x32xf32>
    %57 = arith.addf %56, %1 : vector<16x32xf32>
    %58 = arith.truncf %57 : vector<16x32xf32> to vector<16x32xbf16>
    %c0_29 = arith.constant 0 : index
    %c0_30 = arith.constant 0 : index
    %59 = vector.load %arg10[%c0_29, %c0_30] : memref<32x32xbf16, #tpu.memory_space<vmem>>, vector<32x32xbf16>
    %cst_31 = arith.constant dense<0.000000e+00> : vector<16x32xf32>
    %60 = tpu.matmul %58, %59, %cst_31 {dimension_numbers = #tpu.dot_dimension_numbers<[1], [0], [0], [1], [0, 0, 1, 1], [], []>} : vector<16x32xbf16>, vector<32x32xbf16>, vector<16x32xf32> -> vector<16x32xf32>
    %c0_32 = arith.constant 0 : index
    %c0_33 = arith.constant 0 : index
    %61 = vector.load %arg11[%c0_32, %c0_33] : memref<1x32xf32, #tpu.memory_space<vmem>>, vector<1x32xf32>
    %62 = vector.broadcast %61 : vector<1x32xf32> to vector<16x32xf32>
    %63 = arith.addf %60, %62 : vector<16x32xf32>
    %c0_34 = arith.constant 0 : index
    %c0_35 = arith.constant 0 : index
    %c0_36 = arith.constant 0 : index
    %64 = vector.load %arg12[%c0_34, %c0_35, %c0_36] : memref<1x16x32xf32, #tpu.memory_space<vmem>>, vector<1x16x32xf32>
    %65 = vector.shape_cast %64 : vector<1x16x32xf32> to vector<16x32xf32>
    %66 = arith.addf %63, %65 : vector<16x32xf32>
    %c0_37 = arith.constant 0 : index
    %c0_38 = arith.constant 0 : index
    %c0_39 = arith.constant 0 : index
    %67 = vector.load %arg13[%c0_37, %c0_38, %c0_39] : memref<1x16x32xf32, #tpu.memory_space<vmem>>, vector<1x16x32xf32>
    %68 = vector.shape_cast %67 : vector<1x16x32xf32> to vector<16x32xf32>
    %69 = vector.shape_cast %66 : vector<16x32xf32> to vector<1x16x32xf32>
    tpu.vector_store %arg13[%c0_37, %c0_38, %c0_39], %69 {strides = array<i32>} : memref<1x16x32xf32, #tpu.memory_space<vmem>>, vector<1x16x32xf32>,
    return
  }
  func.func @transform_0(%arg0: i32) -> (i32, i32, i32) {
    %c0_i32 = arith.constant 0 : i32
    %c0_i32_0 = arith.constant 0 : i32
    %c0_i32_1 = arith.constant 0 : i32
    return %arg0, %c0_i32, %c0_i32_0 : i32, i32, i32
  }
  func.func @transform_1(%arg0: i32) -> (i32, i32) {
    %c0_i32 = arith.constant 0 : i32
    %c0_i32_0 = arith.constant 0 : i32
    %c0_i32_1 = arith.constant 0 : i32
    return %c0_i32, %c0_i32_0 : i32, i32
  }
  func.func @transform_2(%arg0: i32) -> (i32, i32) {
    %c0_i32 = arith.constant 0 : i32
    %c0_i32_0 = arith.constant 0 : i32
    %c0_i32_1 = arith.constant 0 : i32
    return %c0_i32, %c0_i32_0 : i32, i32
  }
  func.func @transform_3(%arg0: i32) -> (i32, i32) {
    %c0_i32 = arith.constant 0 : i32
    %c0_i32_0 = arith.constant 0 : i32
    %c0_i32_1 = arith.constant 0 : i32
    return %c0_i32, %c0_i32_0 : i32, i32
  }
  func.func @transform_4(%arg0: i32) -> (i32, i32) {
    %c0_i32 = arith.constant 0 : i32
    %c0_i32_0 = arith.constant 0 : i32
    %c0_i32_1 = arith.constant 0 : i32
    return %c0_i32, %c0_i32_0 : i32, i32
  }
  func.func @transform_5(%arg0: i32) -> (i32, i32) {
    %c0_i32 = arith.constant 0 : i32
    %c0_i32_0 = arith.constant 0 : i32
    %c0_i32_1 = arith.constant 0 : i32
    return %c0_i32, %c0_i32_0 : i32, i32
  }
  func.func @transform_6(%arg0: i32) -> (i32, i32) {
    %c0_i32 = arith.constant 0 : i32
    %c0_i32_0 = arith.constant 0 : i32
    %c0_i32_1 = arith.constant 0 : i32
    return %c0_i32, %c0_i32_0 : i32, i32
  }
  func.func @transform_7(%arg0: i32) -> (i32, i32) {
    %c0_i32 = arith.constant 0 : i32
    %c0_i32_0 = arith.constant 0 : i32
    %c0_i32_1 = arith.constant 0 : i32
    return %c0_i32, %c0_i32_0 : i32, i32
  }
  func.func @transform_8(%arg0: i32) -> (i32, i32) {
    %c0_i32 = arith.constant 0 : i32
    %c0_i32_0 = arith.constant 0 : i32
    %c0_i32_1 = arith.constant 0 : i32
    return %c0_i32, %c0_i32_0 : i32, i32
  }
  func.func @transform_9(%arg0: i32) -> (i32, i32) {
    %c0_i32 = arith.constant 0 : i32
    %c0_i32_0 = arith.constant 0 : i32
    %c0_i32_1 = arith.constant 0 : i32
    return %c0_i32, %c0_i32_0 : i32, i32
  }
  func.func @transform_10(%arg0: i32) -> (i32, i32) {
    %c0_i32 = arith.constant 0 : i32
    %c0_i32_0 = arith.constant 0 : i32
    %c0_i32_1 = arith.constant 0 : i32
    return %c0_i32, %c0_i32_0 : i32, i32
  }
  func.func @transform_11(%arg0: i32) -> (i32, i32, i32) {
    %c0_i32 = arith.constant 0 : i32
    %c0_i32_0 = arith.constant 0 : i32
    %c0_i32_1 = arith.constant 0 : i32
    return %arg0, %c0_i32, %c0_i32_0 : i32, i32, i32
  }
  func.func @transform_12(%arg0: i32) -> (i32, i32, i32) {
    %c0_i32 = arith.constant 0 : i32
    %c0_i32_0 = arith.constant 0 : i32
    %c0_i32_1 = arith.constant 0 : i32
    return %arg0, %c0_i32, %c0_i32_0 : i32, i32, i32
  }
}

</mosaic_0001>

<bundles_post_ra>
// kernel: unet_mid_block_1d_cross_attn.7
= control target key start
LH: loop header
LB: loop body
LE: loop exit
PB: predicated region body
PF: predicated region fallthrough
CT: control target
= control target key end

     0   :  { %s1180_s30 = smov 0   ;;  %s1300_s0 = inlined_call_operand.vmem [shape: f32[2,16,32], index: 0, kind: input, shape index: {}]   ;;  %s1301_s1 = inlined_call_operand.vmem [shape: f32[1,32], index: 1, kind: input, shape index: {}]   ;;  %s1302_s2 = inlined_call_operand.vmem [shape: f32[1,32], index: 2, kind: input, shape index: {}]   ;;  %s1303_s3 = inlined_call_operand.vmem [shape: f32[32,32], index: 3, kind: input, shape index: {}]   ;;  %s1304_s4 = inlined_call_operand.vmem [shape: bf16[3,32,32], index: 4, kind: input, shape index: {}]   ;;  %s1305_s5 = inlined_call_operand.vmem [shape: f32[1,32], index: 5, kind: input, shape index: {}]   ;;  %s1306_s6 = inlined_call_operand.vmem [shape: f32[2,1,64], index: 6, kind: input, shape index: {}]   ;;  %s1307_s7 = inlined_call_operand.vmem [shape: bf16[64,32], index: 7, kind: input, shape index: {}]   ;;  %s1308_s8 = inlined_call_operand.vmem [shape: f32[1,32], index: 8, kind: input, shape index: {}]   ;;  %s1309_s9 = inlined_call_operand.vmem [shape: f32[2,16,32], index: 9, kind: output, shape index: {}]  }
   0x1 LB: > { %s947_s10 = sadd.s32 4294967295, %s1125_s30   ;;  %p951_p0 = scmp.ge.s32.totalorder %s1125_s30, 1  ;;  %s1125_s30 = sphi %s1180_s30, %s19_s30  }
   0x2   : > { %p295_p1 = scmp.lt.s32.totalorder %s1125_s30, 3 }
   0x4   : > { %p296_p2 = pnand %p951_p0, %p295_p1 }
   0x5   : > { %v350_v0 = vld [vmem:[%s1303_s3] sm:$0xff] (!%p296_p2)  ;;  %v351_v1 = vld [vmem:[%s1303_s3 + $0x8] sm:$0xff] (!%p296_p2)  ;;  %v352_v2 = vld [vmem:[%s1303_s3 + $0x10] sm:$0xff] (!%p296_p2)  ;;  %v1127_v3 = vmov (!%p296_p2), 0.0|0.0   ;;  %p334_p3 = scmp.lt.s32.totalorder (!%p296_p2), %s947_s10, 1  ;;  %vm1128_vm0 = vmmov (!%p296_p2), 0   ;;  %v528_v42 = vlaneseq (!%p296_p2) }
   0x6   : > { %299 = sbr.rel (%p296_p2) target bundleno = 543 (0x21f), region = 56  ;;  %1072 = vmatprep.subr.bf16.mxu0 (!%p296_p2), %v1127_v3  ;;  %v1073_v4 = vpack.c.bf16 (!%p296_p2), %v351_v1, %v350_v0  ;;  %1078 = vmatprep.subr.bf16.mxu1 (!%p296_p2), %v1127_v3  ;;  %v353_v5 = vld [vmem:[%s1303_s3 + $0x18] sm:$0xff] (!%p296_p2)  ;;  %v1129_v6 = vmov (!%p296_p2), 0.0   ;;  %vm356_vm1 = vcmask (!%p296_p2), 261120   ;;  %v1095_v30 = vld [vmem:[%s1304_s4 + $0x10] sm:$0xff] (!%p296_p2)   ;;  %v1096_v31 = vld [vmem:[%s1304_s4] sm:$0xff] (!%p296_p2)  }
   0x7   : > { %1022 = vmatprep.mubr.msk.f32.mxu0 (!%p296_p2), %vm1128_vm0, %v1129_v6  ;;  %1033 = vmatprep.mubr.msk.f32.mxu1 (!%p296_p2), %vm1128_vm0, %v1129_v6  ;;  %v1076_v7 = vpack.c.bf16 (!%p296_p2), %v353_v5, %v352_v2  ;;  %v1097_v32 = vld [vmem:[%s1304_s4 + $0x18] sm:$0xff] (!%p296_p2)   ;;  %v1098_v33 = vld [vmem:[%s1304_s4 + $0x8] sm:$0xff] (!%p296_p2)   ;;  %v529_v45 = vshrl.u32 (!%p296_p2), %v528_v42, 7  ;;  %v958_v52 = vld [vmem:[%s1301_s1] ss:$0 sm:$0xff] (!%p296_p2)  ;;  %vm831_vm6 = vcmask (!%p296_p2), 523264  }
   0x8   : > { %1074 = vmatpush3.bf16.msra.mxu0 (!%p296_p2), %v1073_v4  ;;  %1080 = vmatpush3.bf16.msra.mxu1 (!%p296_p2), %v1073_v4  ;;  %v959_v55 = vld [vmem:[%s1302_s2] ss:$0 sm:$0xff] (!%p296_p2) }
   0x9   : > { %1075 = vmatprep.subr.bf16.mxu0 (!%p296_p2), %v1127_v3  ;;  %1081 = vmatprep.subr.bf16.mxu1 (!%p296_p2), %v1127_v3  ;;  %v1240_v46 = vsub.s32 (!%p296_p2), 0, %v529_v45  ;;  %vm581_vm2 = vcmp.lt.s32.totalorder (!%p296_p2), %v529_v45, 1  ;;  %vm577_vm3 = vcmp.eq.s32.totalorder (!%p296_p2), %v529_v45, 0  ;;  %vm591_vm4 = vcmp.lt.s32.totalorder (!%p296_p2), %v529_v45, 7 }
   0xc   : > { %1077 = vmatpush3.bf16.msra.mxu0 (!%p296_p2), %v1076_v7  ;;  %1083 = vmatpush3.bf16.msra.mxu1 (!%p296_p2), %v1076_v7  ;;  %v575_v7 = vadd.s32 (!%p296_p2), 8, %v529_v45 }
   0xd   : > { %s1311_s10 = smov (!%p334_p3, %s947_s10), 1  ;;  %1036 = vmatprep.subr.bf16.mxu0 %v1129_v6  ;;  %1044 = vmatprep.subr.bf16.mxu1 %v1129_v6 }
   0xe   : > { %s988_s19 = sshll.u32 %s1311_s10, 4  ;;  %s341_s18 = scalar_lea.vmem %s1306_s6, %s1311_s10  ;;  %vm588_vm5 = vcmp.eq.s32.totalorder %v575_v7, 15 }
   0xf   : > { %s338_s22 = scalar_lea.vmem %s1300_s0, %s988_s19  ;;  %v789_v62 = vld [vmem:[%s341_s18] sm:$0x1]  ;;  %s346_s20 = scalar_lea.vmem %s1309_s9, %s988_s19 }
  0x10   : > { %v348_v8 = vld [vmem:[%s338_s22] sm:$0xff]  ;;  %v349_v9 = vld [vmem:[%s338_s22 + $0x8] sm:$0xff]  ;;  %v980_v63 = vmul.f32 -1.442695, %v789_v62 }
  0x11   : > { %v357_v10 = vsel %vm356_vm1, %v348_v8, 0.0  ;;  %v358_v11 = vsel %vm356_vm1, %v349_v9, 0.0  ;;  %v366_v12 = vmul.f32 %v348_v8, %v348_v8  ;;  %v367_v13 = vmul.f32 %v349_v9, %v349_v9 }
  0x12   : > { %v359_v14 = vadd.f32 %v358_v11, %v357_v10 }
  0x13   : > { %v368_v15 = vsel %vm356_vm1, %v366_v12, 0.0  ;;  %v369_v16 = vsel %vm356_vm1, %v367_v13, 0.0  ;;  %v1099_v12 = vld [vmem:[%s1304_s4 + $0x20] sm:$0xff]  }
  0x14   : > { %v360_v17 = vrot.slane %v359_v14, 4  ;;  %v370_v18 = vadd.f32 %v369_v16, %v368_v15 }
  0x16   : > { %v361_v19 = vadd.f32 %v360_v17, %v359_v14  ;;  %v371_v20 = vrot.slane %v370_v18, 4 }
  0x18   : > { %v362_v21 = vrot.slane %v361_v19, 2  ;;  %v372_v22 = vadd.f32 %v371_v20, %v370_v18 }
  0x1a   : > { %v363_v23 = vadd.f32 %v362_v21, %v361_v19  ;;  %v373_v24 = vrot.slane %v372_v22, 2 }
  0x1c   : > { %v364_v25 = vrot.slane %v363_v23, 1  ;;  %v374_v26 = vadd.f32 %v373_v24, %v372_v22  ;;  %v1101_v24 = vld [vmem:[%s1304_s4 + $0x28] sm:$0xff]  }
  0x1e   : > { %v365_v27 = vadd.f32 %v364_v25, %v363_v23  ;;  %v375_v28 = vrot.slane %v374_v26, 1  ;;  %v1100_v23 = vld [vmem:[%s1307_s7] sm:$0xff]  }
  0x20   : > { %1023 = vmatmul.mubr.msk.f32.vlgmr.msra.gmra.mrb[0].mxu0 %vm356_vm1, %v365_v27  ;;  %v376_v29 = vadd.f32 %v375_v28, %v374_v26  ;;  %v1102_v28 = vld [vmem:[%s1307_s7 + $0x8] sm:$0xff]  }
  0x21   : > { %1040 = vmatprep.mubr.msk.bf16.mxu0 %vm1128_vm0, %v1129_v6  ;;  %1037 = vmatpush3.bf16.msra.mxu0 %v1095_v30  ;;  %v1103_v30 = vld [vmem:[%s1307_s7 + $0x10] sm:$0xff]  }
  0x22   : > { %1034 = vmatmul.mubr.msk.f32.vlgmr.msra.gmra.mrb[0].mxu1 %vm356_vm1, %v376_v29  ;;  %1038 = vmatprep.subr.bf16.mxu0 %v1129_v6 }
  0x23   : > { %1048 = vmatprep.mubr.msk.bf16.mxu1 %vm1128_vm0, %v1129_v6  ;;  %1045 = vmatpush3.bf16.msra.mxu1 %v1096_v31 }
  0x24   : > { %1046 = vmatprep.subr.bf16.mxu1 %v1129_v6 }
  0x25   : > { %1039 = vmatpush3.bf16.msra.mxu0 %v1097_v32  ;;  %v1104_v32 = vld [vmem:[%s1307_s7 + $0x18] sm:$0xff]  }
  0x26   : > { %1052 = vmatprep.subr.bf16.mxu0 %v1129_v6 }
  0x27   : > { %1047 = vmatpush3.bf16.msra.mxu1 %v1098_v33 }
  0x28   : > { %1060 = vmatprep.subr.bf16.mxu1 %v1129_v6 }
  0xf3   : > { %v446_v34 = vpop.f32.mrb[0].mxu0 }
  0xf4   : > { %v450_v35 = vmul.f32 0.015625, %v446_v34  ;;  %v1024_v36 = vpop.f32.mrb[1].mxu0 }
  0xf5   : > { %v520_v37 = vpop.f32.mrb[0].mxu1 }
  0xf6   : > { %v525_v38 = vmul.f32 %v450_v35, %v450_v35  ;;  %v524_v39 = vmul.f32 0.015625, %v520_v37  ;;  %v1035_v40 = vpop.f32.mrb[1].mxu1  ;;  %v531_v47 = vrot.slane %v450_v35, %v1240_v46 }
  0xf8   : > { %v526_v41 = vsub.f32 %v524_v39, %v525_v38  ;;  %v532_v49 = vsub.f32 %v348_v8, %v531_v47  ;;  %v533_v50 = vsub.f32 %v349_v9, %v531_v47 }
  0xfa   : > { %v527_v43 = vmax.f32 %v526_v41, 0.0 }
  0xfc   : > { %v534_v44 = vadd.f32 1e-06, %v527_v43 }
  0xfe   : > { %1105 = vrsqrt.f32 %v534_v44 }
 0x108   : > { %v1106_v48 = vpop.eup %1105 }
 0x109   : > { %v539_v51 = vrot.slane %v1106_v48, %v1240_v46 }
 0x10b   : > { %v540_v53 = vmul.f32 %v539_v51, %v532_v49  ;;  %v541_v54 = vmul.f32 %v539_v51, %v533_v50  ;;  %v806_v50 = vld [vmem:[%s1308_s8] sm:$0x1] }
 0x10c   : > { %v979_v51 = vld [vmem:[%s1305_s5] ss:$0 sm:$0xff] }
 0x10d   : > { %v548_v56 = vmul.f32 %v958_v52, %v540_v53  ;;  %v549_v57 = vmul.f32 %v958_v52, %v541_v54 }
 0x10f   : > { %v556_v58 = vadd.f32 %v959_v55, %v548_v56  ;;  %v557_v59 = vadd.f32 %v959_v55, %v549_v57 }
 0x111   : > { %v960_v60 = vmul.f32 -1.442695, %v556_v58  ;;  %v961_v61 = vmul.f32 -1.442695, %v557_v59 }
 0x113   : > { %1107 = vpow2.f32 %v960_v60 }
 0x114   : > { %1109 = vpow2.f32 %v961_v61 }
 0x115   : > { %1111 = vpow2.f32 %v980_v63 }
 0x11d   : > { %v1108_v0 = vpop.eup %1107 }
 0x11e   : > { %v1110_v1 = vpop.eup %1109  ;;  %v564_v2 = vadd.f32 1.0, %v1108_v0 }
 0x11f   : > { %v565_v3 = vadd.f32 1.0, %v1110_v1  ;;  %v1112_v4 = vpop.eup %1111 }
 0x120   : > { %1113 = vrcp.f32 %v564_v2  ;;  %v793_v10 = vadd.f32 1.0, %v1112_v4 }
 0x121   : > { %1115 = vrcp.f32 %v565_v3 }
 0x122   : > { %1117 = vrcp.f32 %v793_v10 }
 0x12a   : > { %v1114_v5 = vpop.eup %1113 }
 0x12b   : > { %v1116_v8 = vpop.eup %1115  ;;  %v570_v9 = vmul.f32 %v1114_v5, %v556_v58 }
 0x12c   : > { %v571_v11 = vmul.f32 %v1116_v8, %v557_v59  ;;  %v1118_v29 = vpop.eup %1117 }
 0x12d   : > { %v579_v13 = vrot.slane %v570_v9, 7  ;;  %v589_v14 = vrot.slane %v570_v9, 1  ;;  %v796_v31 = vmul.f32 %v1118_v29, %v789_v62 }
 0x12e   : > { %v576_v15 = vpack.c.bf16 %v571_v11, %v570_v9  ;;  %v580_v16 = vrot.slane %v571_v11, 7  ;;  %v590_v17 = vrot.slane %v571_v11, 1 }
 0x12f   : > { %v797_v33 = vpack.c.bf16 %v796_v31, %v796_v31 }
 0x130   : > { %1041 = vmatmul.mubr.msk.bf16.vlgmr.msra.gmra.mrb[4].mxu0 %vm356_vm1, %v576_v15  ;;  %v582_v18 = vsel %vm581_vm2, %v579_v13, %v580_v16  ;;  %v583_v19 = vsel %vm581_vm2, %v580_v16, %v579_v13  ;;  %v592_v20 = vsel %vm591_vm4, %v589_v14, %v590_v17  ;;  %v593_v21 = vsel %vm591_vm4, %v590_v17, %v589_v14 }
 0x131   : > { %1053 = vmatpush3.bf16.msra.mxu0 %v1099_v12  ;;  %v584_v22 = vsel %vm577_vm3, 0.0, %v583_v19  ;;  %1056 = vmatprep.mubr.msk.bf16.mxu0 %vm1128_vm0, %v1129_v6  ;;  %v595_v25 = vsel %vm588_vm5, 0.0, %v593_v21 }
 0x132   : > { %v586_v26 = vpack.c.bf16 %v582_v18, %v584_v22  ;;  %1054 = vmatprep.subr.bf16.mxu0 %v1129_v6  ;;  %v596_v27 = vpack.c.bf16 %v595_v25, %v592_v20 }
 0x134   : > { %1049 = vmatmul.mubr.msk.bf16.vlgmr.msra.gmra.mrb[4].mxu1 %vm356_vm1, %v586_v26 }
 0x135   : > { %1061 = vmatpush3.bf16.msra.mxu1 %v1100_v23  ;;  %1055 = vmatpush3.bf16.msra.mxu0 %v1101_v24 }
 0x136   : > { %1062 = vmatprep.subr.bf16.mxu1 %v1129_v6  ;;  %1068 = vmatprep.mubr.msk.bf16.mxu1 %vm1128_vm0, %v1129_v6 }
 0x138   : > { %1057 = vmatmul.mubr.msk.bf16.vlgmr.msra.gmra.mrb[8].mxu0 %vm356_vm1, %v596_v27 }
 0x139   : > { %1063 = vmatpush3.bf16.msra.mxu1 %v1102_v28 }
 0x13a   : > { %1064 = vmatprep.subr.bf16.mxu1 %v1129_v6 }
 0x13d   : > { %1065 = vmatpush3.bf16.msra.mxu1 %v1103_v30 }
 0x13e   : > { %1066 = vmatprep.subr.bf16.mxu1 %v1129_v6 }
 0x141   : > { %1067 = vmatpush3.bf16.msra.mxu1 %v1104_v32 }
 0x144   : > { %1069 = vmatmul.mubr.msk.bf16.vlgmr.msra.gmra.mrb[8].mxu1 %vm831_vm6, %v797_v33 }
 0x203   : > { %v655_v34 = vpop.f32.mrb[4].mxu0 }
 0x204   : > { %v1042_v35 = vpop.f32.mrb[5].mxu0 }
 0x205   : > { %v658_v36 = vpop.f32.mrb[6].mxu0 }
 0x206   : > { %v1043_v37 = vpop.f32.mrb[7].mxu0 }
 0x207   : > { %v711_v38 = vpop.f32.mrb[4].mxu1 }
 0x208   : > { %v712_v39 = vadd.f32 %v711_v38, %v655_v34  ;;  %v1050_v40 = vpop.f32.mrb[5].mxu1 }
 0x209   : > { %v714_v41 = vpop.f32.mrb[6].mxu1 }
 0x20a   : > { %v715_v42 = vadd.f32 %v714_v41, %v658_v36  ;;  %v1051_v43 = vpop.f32.mrb[7].mxu1 }
 0x20b   : > { %v772_v44 = vpop.f32.mrb[8].mxu0 }
 0x20c   : > { %v779_v45 = vadd.f32 %v772_v44, %v712_v39  ;;  %v1058_v47 = vpop.f32.mrb[9].mxu0 }
 0x20d   : > { %v775_v48 = vpop.f32.mrb[10].mxu0 }
 0x20e   : > { %v780_v6 = vadd.f32 %v775_v48, %v715_v42  ;;  %v1059_v49 = vpop.f32.mrb[11].mxu0  ;;  %v787_v56 = vadd.f32 %v979_v51, %v779_v45 }
 0x210   : > { %v788_v57 = vadd.f32 %v979_v51, %v780_v6 }
 0x217   : > { %v869_v52 = vpop.f32.mrb[8].mxu1 }
 0x218   : > { %v870_v53 = vadd.f32 %v869_v52, %v806_v50  ;;  %v1070_v54 = vpop.f32.mrb[9].mxu1 }
 0x219   : > { %v872_v55 = vpop.f32.mrb[10].mxu1 }
 0x21a   : > { %v878_v58 = vrot.slane %v870_v53, %v1240_v46  ;;  %v1071_v59 = vpop.f32.mrb[11].mxu1 }
 0x21c   : > { %v879_v60 = vadd.f32 %v878_v58, %v787_v56  ;;  %v880_v61 = vadd.f32 %v878_v58, %v788_v57 }
 0x21e   : > { %881 = vst.msk [vmem:[%s346_s20] sm:$0xff] %vm356_vm1, %v879_v60  ;;  %882 = vst.msk [vmem:[%s346_s20 + $0x8] sm:$0xff] %vm356_vm1, %v880_v61 }
 0x21f PF: > { %s19_s30 = sadd.s32 1, %s1125_s30  }
 0x220   : > { %p16_p4 = scmp.ge.s32.totalorder %s19_s30, 4  }
 0x222   :  { %18 = sbr.rel (!%p16_p4) target bundleno = 1 (0x1), region = 91 }

// kernel: unet_mid_block_1d_cross_attn.8
= control target key start
LH: loop header
LB: loop body
LE: loop exit
PB: predicated region body
PF: predicated region fallthrough
CT: control target
= control target key end

     0   :  { %s1009_s24 = smov 0   ;;  %s1100_s0 = inlined_call_operand.vmem [shape: f32[2,16,32], index: 0, kind: input, shape index: {}]   ;;  %s1101_s1 = inlined_call_operand.vmem [shape: f32[1,32], index: 1, kind: input, shape index: {}]   ;;  %s1102_s2 = inlined_call_operand.vmem [shape: f32[1,32], index: 2, kind: input, shape index: {}]   ;;  %s1103_s3 = inlined_call_operand.vmem [shape: f32[32,32], index: 3, kind: input, shape index: {}]   ;;  %s1104_s4 = inlined_call_operand.vmem [shape: bf16[3,32,32], index: 4, kind: input, shape index: {}]   ;;  %s1105_s5 = inlined_call_operand.vmem [shape: f32[1,32], index: 5, kind: input, shape index: {}]   ;;  %s1106_s6 = inlined_call_operand.vmem [shape: f32[2,16,32], index: 6, kind: input, shape index: {}]   ;;  %s1107_s7 = inlined_call_operand.vmem [shape: f32[2,16,32], index: 7, kind: output, shape index: {}]  }
   0x1 LB: > { %s814_s25 = sadd.s32 4294967295, %s964_s24   ;;  %p818_p0 = scmp.ge.s32.totalorder %s964_s24, 1  ;;  %s964_s24 = sphi %s1009_s24, %s17_s24  }
   0x2   : > { %p247_p1 = scmp.lt.s32.totalorder %s964_s24, 3 }
   0x4   : > { %p248_p2 = pnand %p818_p0, %p247_p1 }
   0x5   : > { %v302_v0 = vld [vmem:[%s1103_s3] sm:$0xff] (!%p248_p2)  ;;  %v303_v1 = vld [vmem:[%s1103_s3 + $0x8] sm:$0xff] (!%p248_p2)  ;;  %v304_v2 = vld [vmem:[%s1103_s3 + $0x10] sm:$0xff] (!%p248_p2)  ;;  %v966_v3 = vmov (!%p248_p2), 0.0|0.0   ;;  %p284_p3 = scmp.lt.s32.totalorder (!%p248_p2), %s814_s25, 1  ;;  %vm967_vm0 = vmmov (!%p248_p2), 0   ;;  %v480_v42 = vlaneseq (!%p248_p2) }
   0x6   : > { %251 = sbr.rel (%p248_p2) target bundleno = 533 (0x215), region = 48  ;;  %919 = vmatprep.subr.bf16.mxu0 (!%p248_p2), %v966_v3  ;;  %v920_v4 = vpack.c.bf16 (!%p248_p2), %v303_v1, %v302_v0  ;;  %925 = vmatprep.subr.bf16.mxu1 (!%p248_p2), %v966_v3  ;;  %v305_v5 = vld [vmem:[%s1103_s3 + $0x18] sm:$0xff] (!%p248_p2)  ;;  %v968_v6 = vmov (!%p248_p2), 0.0   ;;  %vm308_vm1 = vcmask (!%p248_p2), 261120   ;;  %v942_v30 = vld [vmem:[%s1104_s4 + $0x10] sm:$0xff] (!%p248_p2)   ;;  %v944_v31 = vld [vmem:[%s1104_s4] sm:$0xff] (!%p248_p2)  }
   0x7   : > { %881 = vmatprep.mubr.msk.f32.mxu0 (!%p248_p2), %vm967_vm0, %v968_v6  ;;  %892 = vmatprep.mubr.msk.f32.mxu1 (!%p248_p2), %vm967_vm0, %v968_v6  ;;  %v923_v7 = vpack.c.bf16 (!%p248_p2), %v305_v5, %v304_v2  ;;  %v943_v32 = vld [vmem:[%s1104_s4 + $0x18] sm:$0xff] (!%p248_p2)   ;;  %v946_v33 = vld [vmem:[%s1104_s4 + $0x8] sm:$0xff] (!%p248_p2)   ;;  %v481_v45 = vshrl.u32 (!%p248_p2), %v480_v42, 7  ;;  %v827_v52 = vld [vmem:[%s1101_s1] ss:$0 sm:$0xff] (!%p248_p2) }
   0x8   : > { %921 = vmatpush3.bf16.msra.mxu0 (!%p248_p2), %v920_v4  ;;  %927 = vmatpush3.bf16.msra.mxu1 (!%p248_p2), %v920_v4  ;;  %v828_v55 = vld [vmem:[%s1102_s2] ss:$0 sm:$0xff] (!%p248_p2) }
   0x9   : > { %922 = vmatprep.subr.bf16.mxu0 (!%p248_p2), %v966_v3  ;;  %928 = vmatprep.subr.bf16.mxu1 (!%p248_p2), %v966_v3  ;;  %v482_v46 = vsub.s32 (!%p248_p2), 0, %v481_v45  ;;  %v527_v3 = vadd.s32 (!%p248_p2), 8, %v481_v45  ;;  %vm533_vm2 = vcmp.lt.s32.totalorder (!%p248_p2), %v481_v45, 1  ;;  %vm529_vm3 = vcmp.eq.s32.totalorder (!%p248_p2), %v481_v45, 0 }
   0xa   : > { %vm543_vm4 = vcmp.lt.s32.totalorder (!%p248_p2), %v481_v45, 7 }
   0xb   : > { %vm540_vm5 = vcmp.eq.s32.totalorder (!%p248_p2), %v527_v3, 15 }
   0xc   : > { %924 = vmatpush3.bf16.msra.mxu0 (!%p248_p2), %v923_v7  ;;  %930 = vmatpush3.bf16.msra.mxu1 (!%p248_p2), %v923_v7 }
   0xd   : > { %s1109_s25 = smov (!%p284_p3, %s814_s25), 1  ;;  %895 = vmatprep.subr.bf16.mxu0 %v968_v6  ;;  %903 = vmatprep.subr.bf16.mxu1 %v968_v6 }
   0xe   : > { %s1033_s11 = sshll.u32 %s1109_s25, 4 }
   0xf   : > { %s288_s14 = scalar_lea.vmem %s1100_s0, %s1033_s11  ;;  %s293_s12 = scalar_lea.vmem %s1106_s6, %s1033_s11 }
  0x10   : > { %v300_v8 = vld [vmem:[%s288_s14] sm:$0xff]  ;;  %v301_v9 = vld [vmem:[%s288_s14 + $0x8] sm:$0xff]  ;;  %s298_s17 = scalar_lea.vmem %s1107_s7, %s1033_s11 }
  0x11   : > { %v309_v10 = vsel %vm308_vm1, %v300_v8, 0.0  ;;  %v310_v11 = vsel %vm308_vm1, %v301_v9, 0.0  ;;  %v318_v12 = vmul.f32 %v300_v8, %v300_v8  ;;  %v319_v13 = vmul.f32 %v301_v9, %v301_v9 }
  0x12   : > { %v311_v14 = vadd.f32 %v310_v11, %v309_v10 }
  0x13   : > { %v320_v15 = vsel %vm308_vm1, %v318_v12, 0.0  ;;  %v321_v16 = vsel %vm308_vm1, %v319_v13, 0.0 }
  0x14   : > { %v312_v17 = vrot.slane %v311_v14, 4  ;;  %v322_v18 = vadd.f32 %v321_v16, %v320_v15 }
  0x16   : > { %v313_v19 = vadd.f32 %v312_v17, %v311_v14  ;;  %v323_v20 = vrot.slane %v322_v18, 4 }
  0x18   : > { %v314_v21 = vrot.slane %v313_v19, 2  ;;  %v324_v22 = vadd.f32 %v323_v20, %v322_v18 }
  0x1a   : > { %v315_v23 = vadd.f32 %v314_v21, %v313_v19  ;;  %v325_v24 = vrot.slane %v324_v22, 2  ;;  %v947_v19 = vld [vmem:[%s1104_s4 + $0x28] sm:$0xff]  }
  0x1c   : > { %v316_v25 = vrot.slane %v315_v23, 1  ;;  %v326_v26 = vadd.f32 %v325_v24, %v324_v22 }
  0x1e   : > { %v317_v27 = vadd.f32 %v316_v25, %v315_v23  ;;  %v327_v28 = vrot.slane %v326_v26, 1 }
  0x20   : > { %882 = vmatmul.mubr.msk.f32.vlgmr.msra.gmra.mrb[0].mxu0 %vm308_vm1, %v317_v27  ;;  %v328_v29 = vadd.f32 %v327_v28, %v326_v26 }
  0x21   : > { %899 = vmatprep.mubr.msk.bf16.mxu0 %vm967_vm0, %v968_v6  ;;  %896 = vmatpush3.bf16.msra.mxu0 %v942_v30 }
  0x22   : > { %893 = vmatmul.mubr.msk.f32.vlgmr.msra.gmra.mrb[0].mxu1 %vm308_vm1, %v328_v29  ;;  %897 = vmatprep.subr.bf16.mxu0 %v968_v6 }
  0x23   : > { %907 = vmatprep.mubr.msk.bf16.mxu1 %vm967_vm0, %v968_v6  ;;  %904 = vmatpush3.bf16.msra.mxu1 %v944_v31 }
  0x24   : > { %905 = vmatprep.subr.bf16.mxu1 %v968_v6 }
  0x25   : > { %898 = vmatpush3.bf16.msra.mxu0 %v943_v32 }
  0x26   : > { %911 = vmatprep.subr.bf16.mxu0 %v968_v6 }
  0x27   : > { %906 = vmatpush3.bf16.msra.mxu1 %v946_v33 }
  0xf3   : > { %v398_v34 = vpop.f32.mrb[0].mxu0 }
  0xf4   : > { %v402_v35 = vmul.f32 0.015625, %v398_v34  ;;  %v883_v36 = vpop.f32.mrb[1].mxu0 }
  0xf5   : > { %v472_v37 = vpop.f32.mrb[0].mxu1  ;;  %v741_v36 = vld [vmem:[%s293_s12] sm:$0xff] }
  0xf6   : > { %v477_v38 = vmul.f32 %v402_v35, %v402_v35  ;;  %v476_v39 = vmul.f32 0.015625, %v472_v37  ;;  %v894_v40 = vpop.f32.mrb[1].mxu1  ;;  %v483_v47 = vrot.slane %v402_v35, %v482_v46 }
  0xf8   : > { %v478_v41 = vsub.f32 %v476_v39, %v477_v38  ;;  %v484_v49 = vsub.f32 %v300_v8, %v483_v47  ;;  %v485_v50 = vsub.f32 %v301_v9, %v483_v47  ;;  %v945_v8 = vld [vmem:[%s1104_s4 + $0x20] sm:$0xff]  }
  0xfa   : > { %v479_v43 = vmax.f32 %v478_v41, 0.0  ;;  %v742_v41 = vld [vmem:[%s293_s12 + $0x8] sm:$0xff] }
  0xfc   : > { %v486_v44 = vadd.f32 1e-06, %v479_v43 }
  0xfe   : > { %948 = vrsqrt.f32 %v486_v44 }
 0x108   : > { %v949_v48 = vpop.eup %948 }
 0x109   : > { %v491_v51 = vrot.slane %v949_v48, %v482_v46 }
 0x10b   : > { %v492_v53 = vmul.f32 %v491_v51, %v484_v49  ;;  %v493_v54 = vmul.f32 %v491_v51, %v485_v50 }
 0x10d   : > { %v500_v56 = vmul.f32 %v827_v52, %v492_v53  ;;  %v501_v57 = vmul.f32 %v827_v52, %v493_v54 }
 0x10f   : > { %v508_v58 = vadd.f32 %v828_v55, %v500_v56  ;;  %v509_v59 = vadd.f32 %v828_v55, %v501_v57 }
 0x111   : > { %v829_v60 = vmul.f32 -1.442695, %v508_v58  ;;  %v830_v61 = vmul.f32 -1.442695, %v509_v59 }
 0x113   : > { %950 = vpow2.f32 %v829_v60 }
 0x114   : > { %952 = vpow2.f32 %v830_v61 }
 0x11d   : > { %v951_v62 = vpop.eup %950 }
 0x11e   : > { %v953_v63 = vpop.eup %952  ;;  %v516_v0 = vadd.f32 1.0, %v951_v62 }
 0x11f   : > { %v517_v1 = vadd.f32 1.0, %v953_v63 }
 0x120   : > { %954 = vrcp.f32 %v516_v0 }
 0x121   : > { %956 = vrcp.f32 %v517_v1 }
 0x12a   : > { %v955_v2 = vpop.eup %954 }
 0x12b   : > { %v957_v4 = vpop.eup %956  ;;  %v522_v5 = vmul.f32 %v955_v2, %v508_v58 }
 0x12c   : > { %v523_v7 = vmul.f32 %v957_v4, %v509_v59 }
 0x12d   : > { %v531_v9 = vrot.slane %v522_v5, 7  ;;  %v541_v10 = vrot.slane %v522_v5, 1 }
 0x12e   : > { %v528_v11 = vpack.c.bf16 %v523_v7, %v522_v5  ;;  %v532_v12 = vrot.slane %v523_v7, 7  ;;  %v542_v13 = vrot.slane %v523_v7, 1 }
 0x130   : > { %900 = vmatmul.mubr.msk.bf16.vlgmr.msra.gmra.mrb[4].mxu0 %vm308_vm1, %v528_v11  ;;  %v534_v14 = vsel %vm533_vm2, %v531_v9, %v532_v12  ;;  %v535_v15 = vsel %vm533_vm2, %v532_v12, %v531_v9  ;;  %v544_v16 = vsel %vm543_vm4, %v541_v10, %v542_v13  ;;  %v545_v17 = vsel %vm543_vm4, %v542_v13, %v541_v10 }
 0x131   : > { %912 = vmatpush3.bf16.msra.mxu0 %v945_v8  ;;  %v536_v18 = vsel %vm529_vm3, 0.0, %v535_v15  ;;  %915 = vmatprep.mubr.msk.bf16.mxu0 %vm967_vm0, %v968_v6  ;;  %v547_v20 = vsel %vm540_vm5, 0.0, %v545_v17 }
 0x132   : > { %913 = vmatprep.subr.bf16.mxu0 %v968_v6  ;;  %v538_v21 = vpack.c.bf16 %v534_v14, %v536_v18  ;;  %v548_v22 = vpack.c.bf16 %v547_v20, %v544_v16  ;;  %v848_v6 = vld [vmem:[%s1105_s5] ss:$0 sm:$0xff] }
 0x134   : > { %908 = vmatmul.mubr.msk.bf16.vlgmr.msra.gmra.mrb[4].mxu1 %vm308_vm1, %v538_v21 }
 0x135   : > { %914 = vmatpush3.bf16.msra.mxu0 %v947_v19 }
 0x138   : > { %916 = vmatmul.mubr.msk.bf16.vlgmr.msra.gmra.mrb[8].mxu0 %vm308_vm1, %v548_v22 }
 0x203   : > { %v607_v23 = vpop.f32.mrb[4].mxu0 }
 0x204   : > { %v901_v24 = vpop.f32.mrb[5].mxu0 }
 0x205   : > { %v610_v25 = vpop.f32.mrb[6].mxu0 }
 0x206   : > { %v902_v26 = vpop.f32.mrb[7].mxu0 }
 0x207   : > { %v663_v27 = vpop.f32.mrb[4].mxu1 }
 0x208   : > { %v664_v28 = vadd.f32 %v663_v27, %v607_v23  ;;  %v909_v29 = vpop.f32.mrb[5].mxu1 }
 0x209   : > { %v666_v30 = vpop.f32.mrb[6].mxu1 }
 0x20a   : > { %v667_v31 = vadd.f32 %v666_v30, %v610_v25  ;;  %v910_v32 = vpop.f32.mrb[7].mxu1 }
 0x20b   : > { %v724_v33 = vpop.f32.mrb[8].mxu0 }
 0x20c   : > { %v731_v34 = vadd.f32 %v724_v33, %v664_v28  ;;  %v917_v35 = vpop.f32.mrb[9].mxu0 }
 0x20d   : > { %v727_v37 = vpop.f32.mrb[10].mxu0 }
 0x20e   : > { %v739_v38 = vadd.f32 %v848_v6, %v731_v34  ;;  %v732_v39 = vadd.f32 %v727_v37, %v667_v31  ;;  %v918_v40 = vpop.f32.mrb[11].mxu0 }
 0x210   : > { %v743_v42 = vadd.f32 %v741_v36, %v739_v38  ;;  %v740_v43 = vadd.f32 %v848_v6, %v732_v39 }
 0x212   : > { %745 = vst.msk [vmem:[%s298_s17] sm:$0xff] %vm308_vm1, %v743_v42  ;;  %v744_v44 = vadd.f32 %v742_v41, %v740_v43 }
 0x214   : > { %746 = vst.msk [vmem:[%s298_s17 + $0x8] sm:$0xff] %vm308_vm1, %v744_v44 }
 0x215 PF: > { %s17_s24 = sadd.s32 1, %s964_s24  }
 0x216   : > { %p14_p4 = scmp.ge.s32.totalorder %s17_s24, 4  }
 0x218   :  { %16 = sbr.rel (!%p14_p4) target bundleno = 1 (0x1), region = 83 }

// kernel: unet_mid_block_1d_cross_attn.9
= control target key start
LH: loop header
LB: loop body
LE: loop exit
PB: predicated region body
PF: predicated region fallthrough
CT: control target
= control target key end

     0   :  { %s2762_s25 = smov 0   ;;  %s3089_s0 = inlined_call_operand.vmem [shape: f32[2,16,32], index: 0, kind: input, shape index: {}]   ;;  %s3090_s1 = inlined_call_operand.vmem [shape: f32[1,32], index: 1, kind: input, shape index: {}]   ;;  %s3091_s2 = inlined_call_operand.vmem [shape: f32[1,32], index: 2, kind: input, shape index: {}]   ;;  %s3092_s3 = inlined_call_operand.vmem [shape: f32[32,32], index: 3, kind: input, shape index: {}]   ;;  %s3093_s4 = inlined_call_operand.vmem [shape: bf16[32,32], index: 4, kind: input, shape index: {}]   ;;  %s3094_s5 = inlined_call_operand.vmem [shape: f32[1,32], index: 5, kind: input, shape index: {}]   ;;  %s3095_s6 = inlined_call_operand.vmem [shape: f32[1,32], index: 6, kind: input, shape index: {}]   ;;  %s3096_s7 = inlined_call_operand.vmem [shape: f32[1,32], index: 7, kind: input, shape index: {}]   ;;  %s3097_s8 = inlined_call_operand.vmem [shape: bf16[4,32,8], index: 8, kind: input, shape index: {}]   ;;  %s3098_s9 = inlined_call_operand.vmem [shape: bf16[4,32,8], index: 9, kind: input, shape index: {}]   ;;  %s3099_s10 = inlined_call_operand.vmem [shape: bf16[4,32,8], index: 10, kind: input, shape index: {}]   ;;  %s3100_s11 = inlined_call_operand.vmem [shape: bf16[4,8,32], index: 11, kind: input, shape index: {}]   ;;  %s3101_s12 = inlined_call_operand.vmem [shape: f32[1,32], index: 12, kind: input, shape index: {}]   ;;  %s3102_s13 = inlined_call_operand.vmem [shape: f32[2,16,32], index: 13, kind: output, shape index: {}]  }
   0x1 LB: > { %s2212_s26 = sadd.s32 4294967295, %s2687_s25   ;;  %p2216_p0 = scmp.ge.s32.totalorder %s2687_s25, 1  ;;  %s2687_s25 = sphi %s2762_s25, %s23_s25  }
   0x2   : > { %p387_p1 = scmp.lt.s32.totalorder %s2687_s25, 3 }
   0x4   : > { %p388_p2 = pnand %p2216_p0, %p387_p1 }
   0x5   : > { %v444_v0 = vld [vmem:[%s3092_s3] sm:$0xff] (!%p388_p2)  ;;  %v445_v1 = vld [vmem:[%s3092_s3 + $0x8] sm:$0xff] (!%p388_p2)  ;;  %v446_v2 = vld [vmem:[%s3092_s3 + $0x10] sm:$0xff] (!%p388_p2)  ;;  %v2689_v3 = vmov (!%p388_p2), 0.0|0.0   ;;  %p431_p3 = scmp.lt.s32.totalorder (!%p388_p2), %s2212_s26, 1  ;;  %vm2690_vm0 = vmmov (!%p388_p2), 0   ;;  %v622_v40 = vlaneseq (!%p388_p2) }
   0x6   : > { %391 = sbr.rel (%p388_p2) target bundleno = 4717 (0x126d), region = 72  ;;  %2594 = vmatprep.subr.bf16.mxu0 (!%p388_p2), %v2689_v3  ;;  %v2595_v4 = vpack.c.bf16 (!%p388_p2), %v445_v1, %v444_v0  ;;  %2600 = vmatprep.subr.bf16.mxu1 (!%p388_p2), %v2689_v3  ;;  %v447_v5 = vld [vmem:[%s3092_s3 + $0x18] sm:$0xff] (!%p388_p2)  ;;  %v2691_v6 = vmov (!%p388_p2), 0.0   ;;  %vm450_vm1 = vcmask (!%p388_p2), 261120   ;;  %v2617_v30 = vld [vmem:[%s3093_s4] sm:$0xff] (!%p388_p2)   ;;  %v2618_v31 = vld [vmem:[%s3093_s4 + $0x8] sm:$0xff] (!%p388_p2)  }
   0x7   : > { %2404 = vmatprep.mubr.msk.f32.mxu0 (!%p388_p2), %vm2690_vm0, %v2691_v6  ;;  %2415 = vmatprep.mubr.msk.f32.mxu1 (!%p388_p2), %vm2690_vm0, %v2691_v6  ;;  %v2598_v7 = vpack.c.bf16 (!%p388_p2), %v447_v5, %v446_v2  ;;  %v623_v43 = vshrl.u32 (!%p388_p2), %v622_v40, 7  ;;  %v2223_v50 = vld [vmem:[%s3090_s1] ss:$0 sm:$0xff] (!%p388_p2)  ;;  %vm943_vm2 = vcmask (!%p388_p2), 64512   ;;  %vm993_vm3 = vcmask (!%p388_p2), 130048  }
   0x8   : > { %2596 = vmatpush3.bf16.msra.mxu0 (!%p388_p2), %v2595_v4  ;;  %2602 = vmatpush3.bf16.msra.mxu1 (!%p388_p2), %v2595_v4  ;;  %v2224_v53 = vld [vmem:[%s3091_s2] ss:$0 sm:$0xff] (!%p388_p2)  ;;  %vm1363_vm4 = vcmask (!%p388_p2), 1043456  }
   0x9   : > { %2597 = vmatprep.subr.bf16.mxu0 (!%p388_p2), %v2689_v3  ;;  %2603 = vmatprep.subr.bf16.mxu1 (!%p388_p2), %v2689_v3  ;;  %v624_v44 = vsub.s32 (!%p388_p2), 0, %v623_v43  ;;  %v2225_v59 = vld [vmem:[%s3094_s5] ss:$0 sm:$0xff] (!%p388_p2) }
   0xc   : > { %2599 = vmatpush3.bf16.msra.mxu0 (!%p388_p2), %v2598_v7  ;;  %2605 = vmatpush3.bf16.msra.mxu1 (!%p388_p2), %v2598_v7 }
   0xd   : > { %s3104_s26 = smov (!%p431_p3, %s2212_s26), 1  ;;  %2418 = vmatprep.subr.bf16.mxu0 %v2691_v6  ;;  %2426 = vmatprep.subr.bf16.mxu1 %v2691_v6 }
   0xe   : > { %s2321_s18 = sshll.u32 %s3104_s26, 4 }
   0xf   : > { %s435_s21 = scalar_lea.vmem %s3089_s0, %s2321_s18  ;;  %s440_s28 = scalar_lea.vmem %s3102_s13, %s2321_s18 }
  0x10   : > { %v442_v8 = vld [vmem:[%s435_s21] sm:$0xff]  ;;  %v443_v9 = vld [vmem:[%s435_s21 + $0x8] sm:$0xff] }
  0x11   : > { %v451_v10 = vsel %vm450_vm1, %v442_v8, 0.0  ;;  %v452_v11 = vsel %vm450_vm1, %v443_v9, 0.0  ;;  %v460_v12 = vmul.f32 %v442_v8, %v442_v8  ;;  %v461_v13 = vmul.f32 %v443_v9, %v443_v9 }
  0x12   : > { %v453_v14 = vadd.f32 %v452_v11, %v451_v10 }
  0x13   : > { %v462_v15 = vsel %vm450_vm1, %v460_v12, 0.0  ;;  %v463_v16 = vsel %vm450_vm1, %v461_v13, 0.0 }
  0x14   : > { %v454_v17 = vrot.slane %v453_v14, 4  ;;  %v464_v18 = vadd.f32 %v463_v16, %v462_v15  ;;  %v2619_v15 = vld [vmem:[%s3097_s8] sm:$0xff]  }
  0x15   : > { %v2620_v16 = vld [vmem:[%s3098_s9] sm:$0xff]  }
  0x16   : > { %v455_v19 = vadd.f32 %v454_v17, %v453_v14  ;;  %v465_v20 = vrot.slane %v464_v18, 4  ;;  %v2621_v17 = vld [vmem:[%s3097_s8 + $0x8] sm:$0xff]  }
  0x18   : > { %v456_v21 = vrot.slane %v455_v19, 2  ;;  %v466_v22 = vadd.f32 %v465_v20, %v464_v18  ;;  %v2622_v18 = vld [vmem:[%s3098_s9 + $0x8] sm:$0xff]  }
  0x1a   : > { %v457_v23 = vadd.f32 %v456_v21, %v455_v19  ;;  %v467_v24 = vrot.slane %v466_v22, 2 }
  0x1c   : > { %v458_v25 = vrot.slane %v457_v23, 1  ;;  %v468_v26 = vadd.f32 %v467_v24, %v466_v22 }
  0x1e   : > { %v459_v27 = vadd.f32 %v458_v25, %v457_v23  ;;  %v469_v28 = vrot.slane %v468_v26, 1 }
  0x20   : > { %2405 = vmatmul.mubr.msk.f32.vlgmr.msra.gmra.mrb[0].mxu0 %vm450_vm1, %v459_v27  ;;  %v470_v29 = vadd.f32 %v469_v28, %v468_v26  ;;  %v2229_v27 = vld [vmem:[%s3095_s6] ss:$0 sm:$0xff] }
  0x21   : > { %2422 = vmatprep.mubr.msk.bf16.mxu0 %vm2690_vm0, %v2691_v6  ;;  %2419 = vmatpush3.bf16.msra.mxu0 %v2617_v30 }
  0x22   : > { %2416 = vmatmul.mubr.msk.f32.vlgmr.msra.gmra.mrb[0].mxu1 %vm450_vm1, %v470_v29  ;;  %2420 = vmatprep.subr.bf16.mxu0 %v2691_v6 }
  0x23   : > { %2430 = vmatprep.mubr.msk.bf16.mxu1 %vm2690_vm0, %v2691_v6  ;;  %2427 = vmatpush3.bf16.msra.mxu1 %v2619_v15 }
  0x24   : > { %2428 = vmatprep.subr.bf16.mxu1 %v2691_v6 }
  0x25   : > { %2421 = vmatpush3.bf16.msra.mxu0 %v2618_v31  ;;  %v2230_v31 = vld [vmem:[%s3096_s7] ss:$0 sm:$0xff] }
  0x26   : > { %2434 = vmatprep.subr.bf16.mxu0 %v2691_v6 }
  0x27   : > { %2429 = vmatpush3.bf16.msra.mxu1 %v2621_v17 }
  0x28   : > { %2442 = vmatprep.subr.bf16.mxu1 %v2691_v6 }
  0xf3   : > { %v540_v32 = vpop.f32.mrb[0].mxu0 }
  0xf4   : > { %v544_v33 = vmul.f32 0.015625, %v540_v32  ;;  %v2406_v34 = vpop.f32.mrb[1].mxu0 }
  0xf5   : > { %v614_v35 = vpop.f32.mrb[0].mxu1 }
  0xf6   : > { %v619_v36 = vmul.f32 %v544_v33, %v544_v33  ;;  %v618_v37 = vmul.f32 0.015625, %v614_v35  ;;  %v2417_v38 = vpop.f32.mrb[1].mxu1  ;;  %v625_v45 = vrot.slane %v544_v33, %v624_v44  ;;  %v2623_v35 = vld [vmem:[%s3099_s10] sm:$0xff]  }
  0xf8   : > { %v620_v39 = vsub.f32 %v618_v37, %v619_v36  ;;  %v626_v47 = vsub.f32 %v442_v8, %v625_v45  ;;  %v627_v48 = vsub.f32 %v443_v9, %v625_v45  ;;  %v2624_v37 = vld [vmem:[%s3099_s10 + $0x8] sm:$0xff]  }
  0xfa   : > { %v621_v41 = vmax.f32 %v620_v39, 0.0 }
  0xfc   : > { %v628_v42 = vadd.f32 1e-06, %v621_v41 }
  0xfe   : > { %2643 = vrsqrt.f32 %v628_v42 }
 0x108   : > { %v2644_v46 = vpop.eup %2643 }
 0x109   : > { %v633_v49 = vrot.slane %v2644_v46, %v624_v44 }
 0x10b   : > { %v634_v51 = vmul.f32 %v633_v49, %v626_v47  ;;  %v635_v52 = vmul.f32 %v633_v49, %v627_v48 }
 0x10d   : > { %v642_v54 = vmul.f32 %v2223_v50, %v634_v51  ;;  %v643_v55 = vmul.f32 %v2223_v50, %v635_v52  ;;  %v2625_v52 = vld [vmem:[%s3097_s8 + $0x10] sm:$0xff]  }
 0x10f   : > { %v650_v56 = vadd.f32 %v2224_v53, %v642_v54  ;;  %v651_v57 = vadd.f32 %v2224_v53, %v643_v55  ;;  %v2626_v55 = vld [vmem:[%s3097_s8 + $0x18] sm:$0xff]  }
 0x111   : > { %v652_v58 = vpack.c.bf16 %v651_v57, %v650_v56  ;;  %v2627_v56 = vld [vmem:[%s3099_s10 + $0x10] sm:$0xff]   ;;  %v2628_v57 = vld [vmem:[%s3099_s10 + $0x18] sm:$0xff]  }
 0x113   : > { %2423 = vmatmul.mubr.msk.bf16.vlgmr.msra.gmra.mrb[4].mxu0 %vm450_vm1, %v652_v58 }
 0x114   : > { %2438 = vmatprep.mubr.msk.bf16.mxu0 %vm2690_vm0, %v2691_v6  ;;  %2435 = vmatpush3.bf16.msra.mxu0 %v2620_v16 }
 0x115   : > { %2436 = vmatprep.subr.bf16.mxu0 %v2691_v6 }
 0x118   : > { %2437 = vmatpush3.bf16.msra.mxu0 %v2622_v18 }
 0x119   : > { %2450 = vmatprep.subr.bf16.mxu0 %v2691_v6 }
 0x1e6   : > { %v713_v60 = vpop.f32.mrb[4].mxu0 }
 0x1e7   : > { %v2826_v61 = vadd.f32 %v2225_v59, %v713_v60  ;;  %v2424_v62 = vpop.f32.mrb[5].mxu0 }
 0x1e8   : > { %v716_v63 = vpop.f32.mrb[6].mxu0 }
 0x1e9   : > { %v2828_v0 = vadd.f32 %v2225_v59, %v716_v63  ;;  %v2425_v1 = vpop.f32.mrb[7].mxu0  ;;  %v722_v2 = vsel %vm450_vm1, %v2826_v61, 0.0 }
 0x1ea   : > { %723 = vadd.xlane.f32.xlu0 %v722_v2 }
 0x1eb   : > { %v725_v3 = vsel %vm450_vm1, %v2828_v0, 0.0 }
 0x1ee   : > { %726 = vadd.xlane.f32.xlu0 %v725_v3 }
 0x277   : > { %v724_v4 = vpop.xlane.xlu0 %723 }
 0x278   : > { %v729_v5 = vmul.f32 0.03125, %v724_v4 }
 0x27a   : > { %v731_v7 = vsub.f32 %v2826_v61, %v729_v5 }
 0x27b   : > { %v727_v8 = vpop.xlane.xlu0 %726 }
 0x27c   : > { %v730_v9 = vmul.f32 0.03125, %v727_v8  ;;  %v733_v10 = vmul.f32 %v731_v7, %v731_v7 }
 0x27e   : > { %v732_v11 = vsub.f32 %v2828_v0, %v730_v9  ;;  %v735_v12 = vsel %vm450_vm1, %v733_v10, 0.0 }
 0x27f   : > { %736 = vadd.xlane.f32.xlu1 %v735_v12 }
 0x280   : > { %v734_v13 = vmul.f32 %v732_v11, %v732_v11 }
 0x282   : > { %v738_v14 = vsel %vm450_vm1, %v734_v13, 0.0 }
 0x283   : > { %739 = vadd.xlane.f32.xlu1 %v738_v14 }
 0x30c   : > { %v737_v19 = vpop.xlane.xlu1 %736 }
 0x30d   : > { %v741_v20 = vmul.f32 0.03125, %v737_v19 }
 0x30f   : > { %v743_v21 = vadd.f32 1e-05, %v741_v20 }
 0x310   : > { %v740_v22 = vpop.xlane.xlu1 %739 }
 0x311   : > { %2645 = vrsqrt.f32 %v743_v21  ;;  %v742_v23 = vmul.f32 0.03125, %v740_v22 }
 0x313   : > { %v744_v24 = vadd.f32 1e-05, %v742_v23 }
 0x315   : > { %2647 = vrsqrt.f32 %v744_v24 }
 0x31b   : > { %v2646_v25 = vpop.eup %2645 }
 0x31c   : > { %v747_v26 = vmul.f32 %v2646_v25, %v731_v7 }
 0x31e   : > { %v755_v29 = vmul.f32 %v2229_v27, %v747_v26 }
 0x31f   : > { %v2648_v28 = vpop.eup %2647 }
 0x320   : > { %v748_v30 = vmul.f32 %v2648_v28, %v732_v11  ;;  %v763_v33 = vadd.f32 %v2230_v31, %v755_v29 }
 0x322   : > { %v756_v32 = vmul.f32 %v2229_v27, %v748_v30 }
 0x324   : > { %v764_v34 = vadd.f32 %v2230_v31, %v756_v32  ;;  %v2629_v31 = vld [vmem:[%s3098_s9 + $0x10] sm:$0xff]  }
 0x326   : > { %v2863_v36 = vpack.c.bf16 %v764_v34, %v763_v33  ;;  %v2630_v33 = vld [vmem:[%s3098_s9 + $0x18] sm:$0xff]  }
 0x328   : > { %2431 = vmatmul.mubr.msk.bf16.vlgmr.msra.gmra.mrb[4].mxu1 %vm450_vm1, %v2863_v36  ;;  %2439 = vmatmul.mubr.msk.bf16.vlgmr.msra.gmra.mrb[8].mxu0 %vm450_vm1, %v2863_v36 }
 0x329   : > { %2443 = vmatpush3.bf16.msra.mxu1 %v2623_v35  ;;  %2446 = vmatprep.mubr.msk.bf16.mxu1 %vm2690_vm0, %v2691_v6 }
 0x32a   : > { %2444 = vmatprep.subr.bf16.mxu1 %v2691_v6  ;;  %2452 = vmatprep.mubr.msk.bf16.mxu0 %vm2690_vm0, %v2691_v6 }
 0x32d   : > { %2445 = vmatpush3.bf16.msra.mxu1 %v2624_v37 }
 0x32e   : > { %2456 = vmatprep.subr.bf16.mxu1 %v2691_v6 }
 0x330   : > { %2447 = vmatmul.mubr.msk.bf16.vlgmr.msra.gmra.mrb[8].mxu1 %vm450_vm1, %v2863_v36 }
 0x331   : > { %2458 = vmatprep.mubr.msk.bf16.mxu1 %vm2690_vm0, %v2691_v6 }
 0x3fb   : > { %v820_v38 = vpop.f32.mrb[4].mxu1  ;;  %v877_v39 = vpop.f32.mrb[8].mxu0 }
 0x3fc   : > { %v2432_v40 = vpop.f32.mrb[5].mxu1  ;;  %v2440_v41 = vpop.f32.mrb[9].mxu0 }
 0x3fd   : > { %v823_v42 = vpop.f32.mrb[6].mxu1  ;;  %v880_v43 = vpop.f32.mrb[10].mxu0 }
 0x3fe   : > { %v941_v44 = vpack.c.bf16 %v823_v42, %v820_v38  ;;  %v942_v45 = vpack.c.bf16 %v880_v43, %v877_v39  ;;  %v2433_v46 = vpop.f32.mrb[7].mxu1  ;;  %v2441_v47 = vpop.f32.mrb[11].mxu0 }
 0x400   : > { %v948_v48 = vsel %vm943_vm2, %v942_v45, 0 }
 0x401   : > { %2451 = vmatpush3.bf16.xpose.msra.mxu0 %v948_v48 }
 0x402   : > { %2462 = vmatprep.subr.bf16.mxu0 %v2691_v6 }
 0x403   : > { %v934_v49 = vpop.f32.mrb[8].mxu1 }
 0x404   : > { %v2448_v50 = vpop.f32.mrb[9].mxu1 }
 0x405   : > { %v937_v51 = vpop.f32.mrb[10].mxu1 }
 0x406   : > { %v1017_v53 = vpack.c.bf16 %v937_v51, %v934_v49  ;;  %v2449_v54 = vpop.f32.mrb[11].mxu1 }
 0x408   : > { %2453 = vmatmul.mubr.msk.bf16.vlgmr.msra.gmra.mrb[12].mxu0 %vm943_vm2, %v941_v44  ;;  %2457 = vmatpush3.bf16.msra.mxu1 %v1017_v53 }
 0x409   : > { %2463 = vmatpush3.bf16.msra.mxu0 %v2625_v52  ;;  %2466 = vmatprep.mubr.msk.bf16.mxu0 %vm2690_vm0, %v2691_v6 }
 0x40a   : > { %2464 = vmatprep.subr.bf16.mxu0 %v2691_v6  ;;  %2470 = vmatprep.subr.bf16.mxu1 %v2691_v6 }
 0x40d   : > { %2465 = vmatpush3.bf16.msra.mxu0 %v2626_v55 }
 0x40e   : > { %2478 = vmatprep.subr.bf16.mxu0 %v2691_v6 }
 0x410   : > { %2467 = vmatmul.mubr.msk.bf16.vlgmr.msra.gmra.mrb[16].mxu0 %vm450_vm1, %v2863_v36 }
 0x411   : > { %2479 = vmatpush3.bf16.msra.mxu0 %v2627_v56  ;;  %2482 = vmatprep.mubr.msk.bf16.mxu0 %vm2690_vm0, %v2691_v6 }
 0x412   : > { %2480 = vmatprep.subr.bf16.mxu0 %v2691_v6 }
 0x415   : > { %2481 = vmatpush3.bf16.msra.mxu0 %v2628_v57 }
 0x416   : > { %2492 = vmatprep.subr.bf16.mxu0 %v2691_v6 }
 0x418   : > { %2483 = vmatmul.mubr.msk.bf16.vlgmr.msra.gmra.mrb[20].mxu0 %vm450_vm1, %v2863_v36 }
 0x419   : > { %2494 = vmatprep.mubr.msk.bf16.mxu0 %vm2690_vm0, %v2691_v6 }
 0x4db   : > { %v984_v58 = vpop.f32.mrb[12].mxu0 }
 0x4dc   : > { %v991_v59 = vmul.f32 0.35355338, %v984_v58  ;;  %v2454_v60 = vpop.f32.mrb[13].mxu0 }
 0x4dd   : > { %v987_v62 = vpop.f32.mrb[14].mxu0 }
 0x4de   : > { %v992_v63 = vmul.f32 0.35355338, %v987_v62  ;;  %v2455_v1 = vpop.f32.mrb[15].mxu0  ;;  %v994_v2 = vsel %vm993_vm3, %v991_v59, -inf }
 0x4df   : > { %995 = vmax.xlane.f32.xlu0 %v994_v2  ;;  %v2265_v2 = vld [vmem:[%s3100_s11 + $0x4] sm:$0xf] }
 0x4e0   : > { %v997_v3 = vsel %vm993_vm3, %v992_v63, -inf }
 0x4e1   : > { %998 = vmax.xlane.f32.xlu1 %v997_v3  ;;  %v1365_v3 = vsel %vm1363_vm4, %v2265_v2, 0 }
 0x4e3   : > { %v1115_v4 = vpop.f32.mrb[16].mxu0 }
 0x4e4   : > { %v2468_v5 = vpop.f32.mrb[17].mxu0 }
 0x4e5   : > { %v1118_v7 = vpop.f32.mrb[18].mxu0 }
 0x4e6   : > { %v1238_v8 = vpack.c.bf16 %v1118_v7, %v1115_v4  ;;  %v2469_v9 = vpop.f32.mrb[19].mxu0 }
 0x4e7   : > { %v1063_v9 = vld [vmem:[%s3100_s11] sm:$0xf] }
 0x4eb   : > { %v1231_v10 = vpop.f32.mrb[20].mxu0 }
 0x4ec   : > { %v2484_v11 = vpop.f32.mrb[21].mxu0 }
 0x4ed   : > { %v1234_v12 = vpop.f32.mrb[22].mxu0 }
 0x4ee   : > { %v1312_v13 = vpack.c.bf16 %v1234_v12, %v1231_v10  ;;  %v2485_v14 = vpop.f32.mrb[23].mxu0 }
 0x4ef   : > { %v2631_v14 = vld [vmem:[%s3098_s9 + $0x20] sm:$0xff]  }
 0x4f0   : > { %2493 = vmatpush3.bf16.msra.mxu0 %v1312_v13  ;;  %v1412_v13 = vsel %vm1363_vm4, %v1063_v9, 0  ;;  %v2291_v9 = vld [vmem:[%s3100_s11 + $0x8] sm:$0xf] }
 0x4f1   : > { %2504 = vmatprep.subr.bf16.mxu0 %v2691_v6 }
 0x56c   : > { %v996_v15 = vpop.xlane.xlu0 %995 }
 0x56d   : > { %v1000_v16 = vsub.f32 %v991_v59, %v996_v15  ;;  %v2632_v15 = vld [vmem:[%s3098_s9 + $0x28] sm:$0xff]  }
 0x56e   : > { %v999_v17 = vpop.xlane.xlu1 %998 }
 0x56f   : > { %v1002_v18 = vmul.f32 1.442695, %v1000_v16  ;;  %v1001_v19 = vsub.f32 %v992_v63, %v999_v17 }
 0x571   : > { %2649 = vpow2.f32 %v1002_v18  ;;  %v1004_v20 = vmul.f32 1.442695, %v1001_v19  ;;  %v2633_v19 = vld [vmem:[%s3097_s8 + $0x20] sm:$0xff]  }
 0x573   : > { %2651 = vpow2.f32 %v1004_v20 }
 0x57b   : > { %v2650_v21 = vpop.eup %2649 }
 0x57c   : > { %v1006_v22 = vsel %vm993_vm3, %v2650_v21, 0.0 }
 0x57d   : > { %v2652_v23 = vpop.eup %2651  ;;  %1007 = vadd.xlane.f32.xlu0 %v1006_v22  ;;  %v2634_v22 = vld [vmem:[%s3097_s8 + $0x28] sm:$0xff]  }
 0x57e   : > { %v1009_v24 = vsel %vm993_vm3, %v2652_v23, 0.0 }
 0x57f   : > { %1010 = vadd.xlane.f32.xlu1 %v1009_v24 }
 0x60a   : > { %v1008_v25 = vpop.xlane.xlu0 %1007 }
 0x60b   : > { %2653 = vrcp.f32 %v1008_v25 }
 0x60c   : > { %v1011_v26 = vpop.xlane.xlu1 %1010 }
 0x60d   : > { %2655 = vrcp.f32 %v1011_v26  ;;  %v2635_v26 = vld [vmem:[%s3099_s10 + $0x20] sm:$0xff]  }
 0x615   : > { %v2654_v27 = vpop.eup %2653 }
 0x616   : > { %v1014_v29 = vmul.f32 %v2654_v27, %v2650_v21 }
 0x617   : > { %v2656_v28 = vpop.eup %2655 }
 0x618   : > { %v1015_v30 = vmul.f32 %v2656_v28, %v2652_v23  ;;  %v2636_v28 = vld [vmem:[%s3099_s10 + $0x28] sm:$0xff]  }
 0x61a   : > { %v1016_v32 = vpack.c.bf16 %v1015_v30, %v1014_v29 }
 0x61c   : > { %2459 = vmatmul.mubr.msk.bf16.vlgmr.msra.gmra.mrb[12].mxu1 %vm993_vm3, %v1016_v32 }
 0x61d   : > { %2471 = vmatpush3.bf16.msra.mxu1 %v2629_v31  ;;  %2474 = vmatprep.mubr.msk.bf16.mxu1 %vm2690_vm0, %v2691_v6 }
 0x61e   : > { %2472 = vmatprep.subr.bf16.mxu1 %v2691_v6 }
 0x621   : > { %2473 = vmatpush3.bf16.msra.mxu1 %v2630_v33 }
 0x622   : > { %2486 = vmatprep.subr.bf16.mxu1 %v2691_v6 }
 0x624   : > { %2475 = vmatmul.mubr.msk.bf16.vlgmr.msra.gmra.mrb[16].mxu1 %vm450_vm1, %v2863_v36 }
 0x625   : > { %2488 = vmatprep.mubr.msk.bf16.mxu1 %vm2690_vm0, %v2691_v6 }
 0x6ef   : > { %v1055_v34 = vpop.f32.mrb[12].mxu1 }
 0x6f0   : > { %v2460_v35 = vpop.f32.mrb[13].mxu1 }
 0x6f1   : > { %v1058_v37 = vpop.f32.mrb[14].mxu1 }
 0x6f2   : > { %v1062_v38 = vpack.c.bf16 %v1058_v37, %v1055_v34  ;;  %v2461_v39 = vpop.f32.mrb[15].mxu1 }
 0x6f7   : > { %v1173_v40 = vpop.f32.mrb[16].mxu1 }
 0x6f8   : > { %v2476_v41 = vpop.f32.mrb[17].mxu1 }
 0x6f9   : > { %v1176_v42 = vpop.f32.mrb[18].mxu1 }
 0x6fa   : > { %v1239_v43 = vpack.c.bf16 %v1176_v42, %v1173_v40  ;;  %v2477_v44 = vpop.f32.mrb[19].mxu1 }
 0x6fc   : > { %v1244_v45 = vsel %vm943_vm2, %v1239_v43, 0 }
 0x6fd   : > { %2487 = vmatpush3.bf16.xpose.msra.mxu1 %v1244_v45 }
 0x6fe   : > { %2498 = vmatprep.subr.bf16.mxu1 %v2691_v6 }
 0x704   : > { %2489 = vmatmul.mubr.msk.bf16.vlgmr.msra.gmra.mrb[20].mxu1 %vm943_vm2, %v1238_v8 }
 0x705   : > { %2500 = vmatprep.mubr.msk.bf16.mxu1 %vm2690_vm0, %v2691_v6  ;;  %2499 = vmatpush3.bf16.msra.mxu1 %v1365_v3 }
 0x706   : > { %2510 = vmatprep.subr.bf16.mxu1 %v2691_v6 }
 0x7d7   : > { %v1280_v46 = vpop.f32.mrb[20].mxu1 }
 0x7d8   : > { %v1287_v47 = vmul.f32 0.35355338, %v1280_v46  ;;  %v2490_v48 = vpop.f32.mrb[21].mxu1 }
 0x7d9   : > { %v1283_v49 = vpop.f32.mrb[22].mxu1 }
 0x7da   : > { %v1288_v50 = vmul.f32 0.35355338, %v1283_v49  ;;  %v2491_v51 = vpop.f32.mrb[23].mxu1  ;;  %v1289_v52 = vsel %vm993_vm3, %v1287_v47, -inf }
 0x7db   : > { %1290 = vmax.xlane.f32.xlu0 %v1289_v52 }
 0x7dc   : > { %v1292_v53 = vsel %vm993_vm3, %v1288_v50, -inf }
 0x7dd   : > { %1293 = vmax.xlane.f32.xlu1 %v1292_v53 }
 0x868   : > { %v1291_v54 = vpop.xlane.xlu0 %1290 }
 0x869   : > { %v1295_v55 = vsub.f32 %v1287_v47, %v1291_v54 }
 0x86a   : > { %v1294_v56 = vpop.xlane.xlu1 %1293 }
 0x86b   : > { %v1297_v57 = vmul.f32 1.442695, %v1295_v55  ;;  %v1296_v58 = vsub.f32 %v1288_v50, %v1294_v56 }
 0x86d   : > { %2657 = vpow2.f32 %v1297_v57  ;;  %v1299_v59 = vmul.f32 1.442695, %v1296_v58 }
 0x86f   : > { %2659 = vpow2.f32 %v1299_v59 }
 0x877   : > { %v2658_v60 = vpop.eup %2657 }
 0x878   : > { %v1301_v62 = vsel %vm993_vm3, %v2658_v60, 0.0 }
 0x879   : > { %v2660_v63 = vpop.eup %2659  ;;  %1302 = vadd.xlane.f32.xlu0 %v1301_v62 }
 0x87a   : > { %v1304_v1 = vsel %vm993_vm3, %v2660_v63, 0.0 }
 0x87b   : > { %1305 = vadd.xlane.f32.xlu1 %v1304_v1 }
 0x906   : > { %v1303_v4 = vpop.xlane.xlu0 %1302 }
 0x907   : > { %2661 = vrcp.f32 %v1303_v4 }
 0x908   : > { %v1306_v5 = vpop.xlane.xlu1 %1305 }
 0x909   : > { %2663 = vrcp.f32 %v1306_v5 }
 0x911   : > { %v2662_v7 = vpop.eup %2661 }
 0x912   : > { %v1309_v10 = vmul.f32 %v2662_v7, %v2658_v60 }
 0x913   : > { %v2664_v8 = vpop.eup %2663 }
 0x914   : > { %v1310_v11 = vmul.f32 %v2664_v8, %v2660_v63 }
 0x916   : > { %v1311_v12 = vpack.c.bf16 %v1310_v11, %v1309_v10  ;;  %v1755_v10 = vsel %vm1363_vm4, %v2291_v9, 0 }
 0x918   : > { %2495 = vmatmul.mubr.msk.bf16.vlgmr.msra.gmra.mrb[24].mxu0 %vm993_vm3, %v1311_v12 }
 0x919   : > { %2505 = vmatpush3.bf16.msra.mxu0 %v1412_v13  ;;  %2506 = vmatprep.mubr.msk.bf16.mxu0 %vm2690_vm0, %v2691_v6 }
 0x91a   : > { %2518 = vmatprep.subr.bf16.mxu0 %v2691_v6 }
 0x920   : > { %2507 = vmatmul.mubr.msk.bf16.vlgmr.msra.gmra.mrb[28].mxu0 %vm943_vm2, %v1062_v38 }
 0x921   : > { %2519 = vmatpush3.bf16.msra.mxu0 %v2631_v14  ;;  %2522 = vmatprep.mubr.msk.bf16.mxu0 %vm2690_vm0, %v2691_v6 }
 0x922   : > { %2520 = vmatprep.subr.bf16.mxu0 %v2691_v6 }
 0x925   : > { %2521 = vmatpush3.bf16.msra.mxu0 %v2632_v15 }
 0x926   : > { %2534 = vmatprep.subr.bf16.mxu0 %v2691_v6 }
 0x928   : > { %2523 = vmatmul.mubr.msk.bf16.vlgmr.msra.gmra.mrb[32].mxu0 %vm450_vm1, %v2863_v36 }
 0x929   : > { %2536 = vmatprep.mubr.msk.bf16.mxu0 %vm2690_vm0, %v2691_v6 }
 0x9eb   : > { %v1350_v16 = vpop.f32.mrb[24].mxu0 }
 0x9ec   : > { %v2496_v17 = vpop.f32.mrb[25].mxu0 }
 0x9ed   : > { %v1353_v18 = vpop.f32.mrb[26].mxu0  ;;  %v2637_v17 = vld [vmem:[%s3097_s8 + $0x30] sm:$0xff]  }
 0x9ee   : > { %v1357_v20 = vpack.c.bf16 %v1353_v18, %v1350_v16  ;;  %v2497_v21 = vpop.f32.mrb[27].mxu0 }
 0x9ef   : > { %v2640_v21 = vld [vmem:[%s3099_s10 + $0x38] sm:$0xff]  }
 0x9f0   : > { %2501 = vmatmul.mubr.msk.bf16.vlgmr.msra.gmra.mrb[24].mxu1 %vm943_vm2, %v1357_v20  ;;  %v2639_v20 = vld [vmem:[%s3099_s10 + $0x30] sm:$0xff]  }
 0x9f1   : > { %2511 = vmatpush3.bf16.msra.mxu1 %v2633_v19  ;;  %2514 = vmatprep.mubr.msk.bf16.mxu1 %vm2690_vm0, %v2691_v6  ;;  %v2638_v19 = vld [vmem:[%s3097_s8 + $0x38] sm:$0xff]  }
 0x9f2   : > { %2512 = vmatprep.subr.bf16.mxu1 %v2691_v6 }
 0x9f3   : > { %v1448_v23 = vpop.f32.mrb[28].mxu0 }
 0x9f4   : > { %v2508_v24 = vpop.f32.mrb[29].mxu0 }
 0x9f5   : > { %v1451_v25 = vpop.f32.mrb[30].mxu0  ;;  %2513 = vmatpush3.bf16.msra.mxu1 %v2634_v22 }
 0x9f6   : > { %v2509_v27 = vpop.f32.mrb[31].mxu0  ;;  %2526 = vmatprep.subr.bf16.mxu1 %v2691_v6 }
 0x9f8   : > { %2515 = vmatmul.mubr.msk.bf16.vlgmr.msra.gmra.mrb[28].mxu1 %vm450_vm1, %v2863_v36 }
 0x9f9   : > { %2527 = vmatpush3.bf16.msra.mxu1 %v2635_v26  ;;  %2530 = vmatprep.mubr.msk.bf16.mxu1 %vm2690_vm0, %v2691_v6 }
 0x9fa   : > { %2528 = vmatprep.subr.bf16.mxu1 %v2691_v6 }
 0x9fb   : > { %v1564_v29 = vpop.f32.mrb[32].mxu0 }
 0x9fc   : > { %v2524_v30 = vpop.f32.mrb[33].mxu0 }
 0x9fd   : > { %v1567_v31 = vpop.f32.mrb[34].mxu0  ;;  %2529 = vmatpush3.bf16.msra.mxu1 %v2636_v28  ;;  %v2642_v28 = vld [vmem:[%s3098_s9 + $0x38] sm:$0xff]  }
 0x9fe   : > { %v1630_v32 = vpack.c.bf16 %v1567_v31, %v1564_v29  ;;  %v2525_v33 = vpop.f32.mrb[35].mxu0  ;;  %2540 = vmatprep.subr.bf16.mxu1 %v2691_v6 }
 0xa00   : > { %v1635_v34 = vsel %vm943_vm2, %v1630_v32, 0  ;;  %2531 = vmatmul.mubr.msk.bf16.vlgmr.msra.gmra.mrb[32].mxu1 %vm450_vm1, %v2863_v36 }
 0xa01   : > { %2535 = vmatpush3.bf16.xpose.msra.mxu0 %v1635_v34  ;;  %2542 = vmatprep.mubr.msk.bf16.mxu1 %vm2690_vm0, %v2691_v6 }
 0xa02   : > { %2546 = vmatprep.subr.bf16.mxu0 %v2691_v6 }
 0xac3   : > { %v1401_v35 = vpop.f32.mrb[24].mxu1 }
 0xac4   : > { %v2998_v37 = vadd.f32 %v1448_v23, %v1401_v35  ;;  %v2502_v38 = vpop.f32.mrb[25].mxu1 }
 0xac5   : > { %v1404_v39 = vpop.f32.mrb[26].mxu1 }
 0xac6   : > { %v3000_v40 = vadd.f32 %v1451_v25, %v1404_v39  ;;  %v2503_v41 = vpop.f32.mrb[27].mxu1  ;;  %v2641_v25 = vld [vmem:[%s3098_s9 + $0x30] sm:$0xff]  }
 0xacb   : > { %v1506_v42 = vpop.f32.mrb[28].mxu1 }
 0xacc   : > { %v2516_v43 = vpop.f32.mrb[29].mxu1 }
 0xacd   : > { %v1509_v44 = vpop.f32.mrb[30].mxu1 }
 0xace   : > { %v1629_v45 = vpack.c.bf16 %v1509_v44, %v1506_v42  ;;  %v2517_v46 = vpop.f32.mrb[31].mxu1 }
 0xad0   : > { %2537 = vmatmul.mubr.msk.bf16.vlgmr.msra.gmra.mrb[36].mxu0 %vm943_vm2, %v1629_v45 }
 0xad1   : > { %2548 = vmatprep.mubr.msk.bf16.mxu0 %vm2690_vm0, %v2691_v6  ;;  %2547 = vmatpush3.bf16.msra.mxu0 %v1755_v10 }
 0xad2   : > { %2560 = vmatprep.subr.bf16.mxu0 %v2691_v6 }
 0xad3   : > { %v1622_v47 = vpop.f32.mrb[32].mxu1 }
 0xad4   : > { %v2532_v48 = vpop.f32.mrb[33].mxu1 }
 0xad5   : > { %v1625_v49 = vpop.f32.mrb[34].mxu1 }
 0xad6   : > { %v1703_v50 = vpack.c.bf16 %v1625_v49, %v1622_v47  ;;  %v2533_v51 = vpop.f32.mrb[35].mxu1 }
 0xad8   : > { %2541 = vmatpush3.bf16.msra.mxu1 %v1703_v50 }
 0xad9   : > { %2552 = vmatprep.subr.bf16.mxu1 %v2691_v6 }
 0xba3   : > { %v1671_v52 = vpop.f32.mrb[36].mxu0 }
 0xba4   : > { %v1678_v53 = vmul.f32 0.35355338, %v1671_v52  ;;  %v2538_v54 = vpop.f32.mrb[37].mxu0 }
 0xba5   : > { %v1674_v55 = vpop.f32.mrb[38].mxu0 }
 0xba6   : > { %v1679_v56 = vmul.f32 0.35355338, %v1674_v55  ;;  %v2539_v57 = vpop.f32.mrb[39].mxu0  ;;  %v1680_v58 = vsel %vm993_vm3, %v1678_v53, -inf }
 0xba7   : > { %1681 = vmax.xlane.f32.xlu0 %v1680_v58 }
 0xba8   : > { %v1683_v59 = vsel %vm993_vm3, %v1679_v56, -inf }
 0xba9   : > { %1684 = vmax.xlane.f32.xlu1 %v1683_v59 }
 0xc34   : > { %v1682_v60 = vpop.xlane.xlu0 %1681 }
 0xc35   : > { %v1686_v62 = vsub.f32 %v1678_v53, %v1682_v60 }
 0xc36   : > { %v1685_v63 = vpop.xlane.xlu1 %1684 }
 0xc37   : > { %v1688_v1 = vmul.f32 1.442695, %v1686_v62  ;;  %v1687_v2 = vsub.f32 %v1679_v56, %v1685_v63 }
 0xc39   : > { %2665 = vpow2.f32 %v1688_v1  ;;  %v1690_v3 = vmul.f32 1.442695, %v1687_v2 }
 0xc3b   : > { %2667 = vpow2.f32 %v1690_v3 }
 0xc43   : > { %v2666_v4 = vpop.eup %2665 }
 0xc44   : > { %v1692_v5 = vsel %vm993_vm3, %v2666_v4, 0.0 }
 0xc45   : > { %v2668_v7 = vpop.eup %2667  ;;  %1693 = vadd.xlane.f32.xlu0 %v1692_v5 }
 0xc46   : > { %v1695_v8 = vsel %vm993_vm3, %v2668_v7, 0.0 }
 0xc47   : > { %1696 = vadd.xlane.f32.xlu1 %v1695_v8 }
 0xcd2   : > { %v1694_v11 = vpop.xlane.xlu0 %1693 }
 0xcd3   : > { %2669 = vrcp.f32 %v1694_v11 }
 0xcd4   : > { %v1697_v12 = vpop.xlane.xlu1 %1696 }
 0xcd5   : > { %2671 = vrcp.f32 %v1697_v12 }
 0xcdd   : > { %v2670_v13 = vpop.eup %2669 }
 0xcde   : > { %v1700_v15 = vmul.f32 %v2670_v13, %v2666_v4 }
 0xcdf   : > { %v2672_v14 = vpop.eup %2671 }
 0xce0   : > { %v1701_v16 = vmul.f32 %v2672_v14, %v2668_v7  ;;  %v2316_v7 = vld [vmem:[%s3100_s11 + $0xc] sm:$0xf] }
 0xce1   : > { %v2100_v8 = vsel %vm1363_vm4, %v2316_v7, 0 }
 0xce2   : > { %v1702_v18 = vpack.c.bf16 %v1701_v16, %v1700_v15 }
 0xce4   : > { %2543 = vmatmul.mubr.msk.bf16.vlgmr.msra.gmra.mrb[36].mxu1 %vm993_vm3, %v1702_v18 }
 0xce5   : > { %2553 = vmatpush3.bf16.msra.mxu1 %v2637_v17  ;;  %2556 = vmatprep.mubr.msk.bf16.mxu1 %vm2690_vm0, %v2691_v6 }
 0xce6   : > { %2554 = vmatprep.subr.bf16.mxu1 %v2691_v6 }
 0xce9   : > { %2555 = vmatpush3.bf16.msra.mxu1 %v2638_v19 }
 0xcea   : > { %2568 = vmatprep.subr.bf16.mxu1 %v2691_v6 }
 0xcec   : > { %2557 = vmatmul.mubr.msk.bf16.vlgmr.msra.gmra.mrb[40].mxu1 %vm450_vm1, %v2863_v36 }
 0xced   : > { %2569 = vmatpush3.bf16.msra.mxu1 %v2639_v20  ;;  %2572 = vmatprep.mubr.msk.bf16.mxu1 %vm2690_vm0, %v2691_v6 }
 0xcee   : > { %2570 = vmatprep.subr.bf16.mxu1 %v2691_v6 }
 0xcf1   : > { %2571 = vmatpush3.bf16.msra.mxu1 %v2640_v21  ;;  %v2318_v21 = vld [vmem:[%s3101_s12] ss:$0 sm:$0xff] }
 0xcf2   : > { %2582 = vmatprep.subr.bf16.mxu1 %v2691_v6 }
 0xcf4   : > { %2573 = vmatmul.mubr.msk.bf16.vlgmr.msra.gmra.mrb[44].mxu1 %vm450_vm1, %v2863_v36 }
 0xcf5   : > { %2584 = vmatprep.mubr.msk.bf16.mxu1 %vm2690_vm0, %v2691_v6 }
 0xdb7   : > { %v1741_v22 = vpop.f32.mrb[36].mxu1 }
 0xdb8   : > { %v2544_v23 = vpop.f32.mrb[37].mxu1 }
 0xdb9   : > { %v1744_v24 = vpop.f32.mrb[38].mxu1 }
 0xdba   : > { %v1748_v26 = vpack.c.bf16 %v1744_v24, %v1741_v22  ;;  %v2545_v27 = vpop.f32.mrb[39].mxu1 }
 0xdbc   : > { %2549 = vmatmul.mubr.msk.bf16.vlgmr.msra.gmra.mrb[40].mxu0 %vm943_vm2, %v1748_v26 }
 0xdbd   : > { %2561 = vmatpush3.bf16.msra.mxu0 %v2641_v25  ;;  %2564 = vmatprep.mubr.msk.bf16.mxu0 %vm2690_vm0, %v2691_v6 }
 0xdbe   : > { %2562 = vmatprep.subr.bf16.mxu0 %v2691_v6 }
 0xdbf   : > { %v1851_v29 = vpop.f32.mrb[40].mxu1 }
 0xdc0   : > { %v2558_v30 = vpop.f32.mrb[41].mxu1 }
 0xdc1   : > { %v1854_v31 = vpop.f32.mrb[42].mxu1  ;;  %2563 = vmatpush3.bf16.msra.mxu0 %v2642_v28 }
 0xdc2   : > { %v1974_v32 = vpack.c.bf16 %v1854_v31, %v1851_v29  ;;  %v2559_v33 = vpop.f32.mrb[43].mxu1  ;;  %2576 = vmatprep.subr.bf16.mxu0 %v2691_v6 }
 0xdc4   : > { %2565 = vmatmul.mubr.msk.bf16.vlgmr.msra.gmra.mrb[44].mxu0 %vm450_vm1, %v2863_v36 }
 0xdc5   : > { %2578 = vmatprep.mubr.msk.bf16.mxu0 %vm2690_vm0, %v2691_v6 }
 0xdc7   : > { %v1967_v34 = vpop.f32.mrb[44].mxu1 }
 0xdc8   : > { %v2574_v35 = vpop.f32.mrb[45].mxu1 }
 0xdc9   : > { %v1970_v38 = vpop.f32.mrb[46].mxu1 }
 0xdca   : > { %v2048_v39 = vpack.c.bf16 %v1970_v38, %v1967_v34  ;;  %v2575_v41 = vpop.f32.mrb[47].mxu1 }
 0xdcc   : > { %2583 = vmatpush3.bf16.msra.mxu1 %v2048_v39 }
 0xe8f   : > { %v1791_v42 = vpop.f32.mrb[40].mxu0 }
 0xe90   : > { %v1798_v43 = vadd.f32 %v1791_v42, %v2998_v37  ;;  %v2550_v44 = vpop.f32.mrb[41].mxu0 }
 0xe91   : > { %v1794_v45 = vpop.f32.mrb[42].mxu0 }
 0xe92   : > { %v1799_v46 = vadd.f32 %v1794_v45, %v3000_v40  ;;  %v2551_v47 = vpop.f32.mrb[43].mxu0 }
 0xe97   : > { %v1909_v48 = vpop.f32.mrb[44].mxu0 }
 0xe98   : > { %v2566_v49 = vpop.f32.mrb[45].mxu0 }
 0xe99   : > { %v1912_v36 = vpop.f32.mrb[46].mxu0 }
 0xe9a   : > { %v1975_v50 = vpack.c.bf16 %v1912_v36, %v1909_v48  ;;  %v2567_v51 = vpop.f32.mrb[47].mxu0 }
 0xe9c   : > { %v1980_v52 = vsel %vm943_vm2, %v1975_v50, 0 }
 0xe9d   : > { %2577 = vmatpush3.bf16.xpose.msra.mxu0 %v1980_v52 }
 0xe9e   : > { %2588 = vmatprep.subr.bf16.mxu0 %v2691_v6 }
 0xea4   : > { %2579 = vmatmul.mubr.msk.bf16.vlgmr.msra.gmra.mrb[48].mxu0 %vm943_vm2, %v1974_v32 }
 0xea5   : > { %2590 = vmatprep.mubr.msk.bf16.mxu0 %vm2690_vm0, %v2691_v6  ;;  %2589 = vmatpush3.bf16.msra.mxu0 %v2100_v8 }
 0xf77   : > { %v2016_v37 = vpop.f32.mrb[48].mxu0 }
 0xf78   : > { %v2023_v53 = vmul.f32 0.35355338, %v2016_v37  ;;  %v2580_v54 = vpop.f32.mrb[49].mxu0 }
 0xf79   : > { %v2019_v40 = vpop.f32.mrb[50].mxu0 }
 0xf7a   : > { %v2024_v55 = vmul.f32 0.35355338, %v2019_v40  ;;  %v2581_v56 = vpop.f32.mrb[51].mxu0  ;;  %v2025_v57 = vsel %vm993_vm3, %v2023_v53, -inf }
 0xf7b   : > { %2026 = vmax.xlane.f32.xlu0 %v2025_v57 }
 0xf7c   : > { %v2028_v58 = vsel %vm993_vm3, %v2024_v55, -inf }
 0xf7d   : > { %2029 = vmax.xlane.f32.xlu1 %v2028_v58 }
0x1008   : > { %v2027_v59 = vpop.xlane.xlu0 %2026 }
0x1009   : > { %v2031_v60 = vsub.f32 %v2023_v53, %v2027_v59 }
0x100a   : > { %v2030_v62 = vpop.xlane.xlu1 %2029 }
0x100b   : > { %v2033_v63 = vmul.f32 1.442695, %v2031_v60  ;;  %v2032_v1 = vsub.f32 %v2024_v55, %v2030_v62 }
0x100d   : > { %2673 = vpow2.f32 %v2033_v63  ;;  %v2035_v2 = vmul.f32 1.442695, %v2032_v1 }
0x100f   : > { %2675 = vpow2.f32 %v2035_v2 }
0x1017   : > { %v2674_v6 = vpop.eup %2673 }
0x1018   : > { %v2037_v3 = vsel %vm993_vm3, %v2674_v6, 0.0 }
0x1019   : > { %v2676_v4 = vpop.eup %2675  ;;  %2038 = vadd.xlane.f32.xlu0 %v2037_v3 }
0x101a   : > { %v2040_v5 = vsel %vm993_vm3, %v2676_v4, 0.0 }
0x101b   : > { %2041 = vadd.xlane.f32.xlu1 %v2040_v5 }
0x10a6   : > { %v2039_v9 = vpop.xlane.xlu0 %2038 }
0x10a7   : > { %2677 = vrcp.f32 %v2039_v9 }
0x10a8   : > { %v2042_v10 = vpop.xlane.xlu1 %2041 }
0x10a9   : > { %2679 = vrcp.f32 %v2042_v10 }
0x10b1   : > { %v2678_v11 = vpop.eup %2677 }
0x10b2   : > { %v2045_v13 = vmul.f32 %v2678_v11, %v2674_v6 }
0x10b3   : > { %v2680_v12 = vpop.eup %2679 }
0x10b4   : > { %v2046_v14 = vmul.f32 %v2680_v12, %v2676_v4 }
0x10b6   : > { %v2047_v15 = vpack.c.bf16 %v2046_v14, %v2045_v13 }
0x10b8   : > { %2585 = vmatmul.mubr.msk.bf16.vlgmr.msra.gmra.mrb[48].mxu1 %vm993_vm3, %v2047_v15 }
0x118b   : > { %v2086_v16 = vpop.f32.mrb[48].mxu1 }
0x118c   : > { %v2586_v17 = vpop.f32.mrb[49].mxu1 }
0x118d   : > { %v2089_v18 = vpop.f32.mrb[50].mxu1 }
0x118e   : > { %v2093_v19 = vpack.c.bf16 %v2089_v18, %v2086_v16  ;;  %v2587_v20 = vpop.f32.mrb[51].mxu1 }
0x1190   : > { %2591 = vmatmul.mubr.msk.bf16.vlgmr.msra.gmra.mrb[52].mxu0 %vm943_vm2, %v2093_v19 }
0x1263   : > { %v2136_v22 = vpop.f32.mrb[52].mxu0 }
0x1264   : > { %v2143_v23 = vadd.f32 %v2136_v22, %v1798_v43  ;;  %v2592_v24 = vpop.f32.mrb[53].mxu0 }
0x1265   : > { %v2139_v25 = vpop.f32.mrb[54].mxu0 }
0x1266   : > { %v2151_v26 = vadd.f32 %v2318_v21, %v2143_v23  ;;  %v2144_v27 = vadd.f32 %v2139_v25, %v1799_v46  ;;  %v2593_v28 = vpop.f32.mrb[55].mxu0 }
0x1268   : > { %v2153_v29 = vadd.f32 %v2151_v26, %v2826_v61  ;;  %v2152_v30 = vadd.f32 %v2318_v21, %v2144_v27 }
0x126a   : > { %2155 = vst.msk [vmem:[%s440_s28] sm:$0xff] %vm450_vm1, %v2153_v29  ;;  %v2154_v31 = vadd.f32 %v2152_v30, %v2828_v0 }
0x126c   : > { %2156 = vst.msk [vmem:[%s440_s28 + $0x8] sm:$0xff] %vm450_vm1, %v2154_v31 }
0x126d PF: > { %s23_s25 = sadd.s32 1, %s2687_s25  }
0x126e   : > { %p20_p4 = scmp.ge.s32.totalorder %s23_s25, 4  }
0x1270   :  { %22 = sbr.rel (!%p20_p4) target bundleno = 1 (0x1), region = 114 }

// kernel: unet_mid_block_1d_cross_attn.10
= control target key start
LH: loop header
LB: loop body
LE: loop exit
PB: predicated region body
PF: predicated region fallthrough
CT: control target
= control target key end

     0   :  { %s2563_s30 = smov 0   ;;  %s2942_s0 = inlined_call_operand.vmem [shape: f32[2,16,32], index: 0, kind: input, shape index: {}]   ;;  %s2943_s1 = inlined_call_operand.vmem [shape: f32[1,32], index: 1, kind: input, shape index: {}]   ;;  %s2944_s2 = inlined_call_operand.vmem [shape: f32[1,32], index: 2, kind: input, shape index: {}]   ;;  %s2945_s3 = inlined_call_operand.vmem [shape: f32[2,8,64], index: 3, kind: input, shape index: {}]   ;;  %s2946_s4 = inlined_call_operand.vmem [shape: bf16[4,32,8], index: 4, kind: input, shape index: {}]   ;;  %s2947_s5 = inlined_call_operand.vmem [shape: bf16[4,64,8], index: 5, kind: input, shape index: {}]   ;;  %s2948_s6 = inlined_call_operand.vmem [shape: bf16[4,64,8], index: 6, kind: input, shape index: {}]   ;;  %s2949_s7 = inlined_call_operand.vmem [shape: bf16[4,8,32], index: 7, kind: input, shape index: {}]   ;;  %s2950_s8 = inlined_call_operand.vmem [shape: f32[1,32], index: 8, kind: input, shape index: {}]   ;;  %s2951_s9 = inlined_call_operand.vmem [shape: f32[2,16,32], index: 9, kind: output, shape index: {}]  }
   0x1 LB: > { %s1995_s10 = sadd.s32 4294967295, %s2509_s30   ;;  %p1999_p0 = scmp.ge.s32.totalorder %s2509_s30, 1  ;;  %s2509_s30 = sphi %s2563_s30, %s19_s30  }
   0x2   : > { %p296_p1 = scmp.lt.s32.totalorder %s2509_s30, 3 }
   0x4   : > { %p297_p2 = pnand %p1999_p0, %p296_p1 }
   0x5   : > { %p336_p3 = scmp.lt.s32.totalorder (!%p297_p2), %s1995_s10, 1  ;;  %vm355_vm0 = vcmask (!%p297_p2), 261120   ;;  %v2425_v14 = vld [vmem:[%s2947_s5] sm:$0xff] (!%p297_p2)   ;;  %v2511_v15 = vmov (!%p297_p2), 0.0   ;;  %v2426_v16 = vld [vmem:[%s2947_s5 + $0x8] sm:$0xff] (!%p297_p2)   ;;  %v2427_v17 = vld [vmem:[%s2947_s5 + $0x10] sm:$0xff] (!%p297_p2)  }
   0x6   : > { %300 = sbr.rel (%p297_p2) target bundleno = 4249 (0x1099), region = 56  ;;  %2223 = vmatprep.subr.bf16.mxu1 (!%p297_p2), %v2511_v15  ;;  %2215 = vmatprep.subr.bf16.mxu0 (!%p297_p2), %v2511_v15  ;;  %v2428_v19 = vld [vmem:[%s2947_s5 + $0x18] sm:$0xff] (!%p297_p2)   ;;  %vm2512_vm1 = vmmov (!%p297_p2), 0   ;;  %vm495_vm2 = vcmask (!%p297_p2), 523264   ;;  %v2429_v21 = vld [vmem:[%s2946_s4] sm:$0xff] (!%p297_p2)   ;;  %v2430_v22 = vld [vmem:[%s2946_s4 + $0x8] sm:$0xff] (!%p297_p2)  }
   0x7   : > { %2224 = vmatpush3.bf16.msra.mxu1 (!%p297_p2), %v2425_v14  ;;  %2231 = vmatprep.mubr.msk.bf16.mxu1 (!%p297_p2), %vm2512_vm1, %v2511_v15  ;;  %v2005_v31 = vld [vmem:[%s2943_s1] ss:$0 sm:$0xff] (!%p297_p2)  ;;  %vm613_vm3 = vcmask (!%p297_p2), 64512   ;;  %v2431_v49 = vld [vmem:[%s2946_s4 + $0x10] sm:$0xff] (!%p297_p2)   ;;  %v2432_v52 = vld [vmem:[%s2946_s4 + $0x18] sm:$0xff] (!%p297_p2)   ;;  %vm690_vm4 = vcmask (!%p297_p2), 1043456  }
   0x8   : > { %2225 = vmatprep.subr.bf16.mxu1 (!%p297_p2), %v2511_v15  ;;  %2219 = vmatprep.mubr.msk.bf16.mxu0 (!%p297_p2), %vm2512_vm1, %v2511_v15  ;;  %v2006_v35 = vld [vmem:[%s2944_s2] ss:$0 sm:$0xff] (!%p297_p2)  ;;  %v2434_v54 = vld [vmem:[%s2948_s6 + $0x8] sm:$0xff] (!%p297_p2)   ;;  %v2435_v55 = vld [vmem:[%s2948_s6 + $0x10] sm:$0xff] (!%p297_p2)  }
   0x9   : > { %2216 = vmatpush3.bf16.msra.mxu0 (!%p297_p2), %v2429_v21  ;;  %v2433_v53 = vld [vmem:[%s2948_s6] sm:$0xff] (!%p297_p2)   ;;  %v2436_v56 = vld [vmem:[%s2948_s6 + $0x18] sm:$0xff] (!%p297_p2)  }
   0xa   : > { %2217 = vmatprep.subr.bf16.mxu0 (!%p297_p2), %v2511_v15 }
   0xb   : > { %2226 = vmatpush3.bf16.msra.mxu1 (!%p297_p2), %v2426_v16 }
   0xc   : > { %2227 = vmatprep.subr.bf16.mxu1 (!%p297_p2), %v2511_v15 }
   0xd   : > { %s2953_s10 = smov (!%p336_p3, %s1995_s10), 1  ;;  %2218 = vmatpush3.bf16.msra.mxu0 %v2430_v22 }
   0xe   : > { %s2137_s11 = sshll.u32 %s2953_s10, 4  ;;  %s2002_s17 = sshll.u32 %s2953_s10, 3  ;;  %2235 = vmatprep.subr.bf16.mxu0 %v2511_v15 }
   0xf   : > { %s2579_s14 = scalar_lea.vmem %s2942_s0, %s2137_s11  ;;  %s344_s22 = scalar_lea.vmem %s2945_s3, %s2002_s17  ;;  %2228 = vmatpush3.bf16.msra.mxu1 %v2427_v17 }
  0x10   : > { %v351_v0 = vld [vmem:[%s2579_s14] sm:$0xff]  ;;  %v352_v1 = vld [vmem:[%s2579_s14 + $0x8] sm:$0xff]  ;;  %2229 = vmatprep.subr.bf16.mxu1 %v2511_v15  ;;  %s349_s12 = scalar_lea.vmem %s2951_s9, %s2137_s11 }
  0x11   : > { %v356_v2 = vsel %vm355_vm0, %v351_v0, 0.0  ;;  %v359_v3 = vsel %vm355_vm0, %v352_v1, 0.0  ;;  %v399_v18 = vld [vmem:[%s344_s22] sm:$0xff] }
  0x12   : > { %357 = vadd.xlane.f32.xlu0 %v356_v2  ;;  %v2608_v20 = vpack.c.bf16 %v399_v18, %v399_v18 }
  0x13   : > { %2230 = vmatpush3.bf16.msra.mxu1 %v2428_v19 }
  0x14   : > { %2247 = vmatprep.subr.bf16.mxu1 %v2511_v15 }
  0x16   : > { %360 = vadd.xlane.f32.xlu0 %v359_v3  ;;  %2232 = vmatmul.mubr.msk.bf16.vlgmr.msra.gmra.mrb[0].mxu1 %vm495_vm2, %v2608_v20 }
  0x17   : > { %2249 = vmatprep.mubr.msk.bf16.mxu1 %vm2512_vm1, %v2511_v15 }
  0x9f   : > { %v358_v4 = vpop.xlane.xlu0 %357 }
  0xa0   : > { %v363_v5 = vmul.f32 0.03125, %v358_v4 }
  0xa2   : > { %v365_v6 = vsub.f32 %v351_v0, %v363_v5 }
  0xa3   : > { %v361_v7 = vpop.xlane.xlu0 %360 }
  0xa4   : > { %v364_v8 = vmul.f32 0.03125, %v361_v7  ;;  %v367_v9 = vmul.f32 %v365_v6, %v365_v6 }
  0xa6   : > { %v366_v10 = vsub.f32 %v352_v1, %v364_v8  ;;  %v369_v11 = vsel %vm355_vm0, %v367_v9, 0.0 }
  0xa7   : > { %370 = vadd.xlane.f32.xlu1 %v369_v11 }
  0xa8   : > { %v368_v12 = vmul.f32 %v366_v10, %v366_v10 }
  0xaa   : > { %v372_v13 = vsel %vm355_vm0, %v368_v12, 0.0 }
  0xab   : > { %373 = vadd.xlane.f32.xlu1 %v372_v13 }
  0xe9   : > { %v533_v40 = vpop.f32.mrb[0].mxu1 }
  0xea   : > { %v612_v41 = vpack.c.bf16 %v533_v40, %v533_v40  ;;  %v2233_v42 = vpop.f32.mrb[1].mxu1 }
  0xeb   : > { %v536_v43 = vpop.f32.mrb[2].mxu1 }
  0xec   : > { %v618_v44 = vsel %vm613_vm3, %v612_v41, 0  ;;  %v2234_v45 = vpop.f32.mrb[3].mxu1 }
  0xed   : > { %2248 = vmatpush3.bf16.xpose.msra.mxu1 %v618_v44 }
  0xee   : > { %2259 = vmatprep.subr.bf16.mxu1 %v2511_v15 }
 0x134   : > { %v371_v23 = vpop.xlane.xlu1 %370 }
 0x135   : > { %v375_v24 = vmul.f32 0.03125, %v371_v23 }
 0x137   : > { %v377_v25 = vadd.f32 1e-05, %v375_v24 }
 0x138   : > { %v374_v26 = vpop.xlane.xlu1 %373 }
 0x139   : > { %2465 = vrsqrt.f32 %v377_v25  ;;  %v376_v27 = vmul.f32 0.03125, %v374_v26 }
 0x13b   : > { %v378_v28 = vadd.f32 1e-05, %v376_v27 }
 0x13d   : > { %2467 = vrsqrt.f32 %v378_v28 }
 0x143   : > { %v2466_v29 = vpop.eup %2465 }
 0x144   : > { %v381_v30 = vmul.f32 %v2466_v29, %v365_v6 }
 0x146   : > { %v389_v34 = vmul.f32 %v2005_v31, %v381_v30  ;;  %v2437_v30 = vld [vmem:[%s2947_s5 + $0x20] sm:$0xff]  }
 0x147   : > { %v2468_v32 = vpop.eup %2467 }
 0x148   : > { %v382_v33 = vmul.f32 %v2468_v32, %v366_v10  ;;  %v397_v37 = vadd.f32 %v2006_v35, %v389_v34  ;;  %v2438_v32 = vld [vmem:[%s2947_s5 + $0x28] sm:$0xff]   ;;  %v2440_v34 = vld [vmem:[%s2947_s5 + $0x38] sm:$0xff]  }
 0x14a   : > { %v390_v36 = vmul.f32 %v2005_v31, %v382_v33  ;;  %v2439_v33 = vld [vmem:[%s2947_s5 + $0x30] sm:$0xff]  }
 0x14c   : > { %v398_v38 = vadd.f32 %v2006_v35, %v390_v36 }
 0x14e   : > { %v2633_v39 = vpack.c.bf16 %v398_v38, %v397_v37 }
 0x150   : > { %2220 = vmatmul.mubr.msk.bf16.vlgmr.msra.gmra.mrb[0].mxu0 %vm355_vm0, %v2633_v39 }
 0x151   : > { %2243 = vmatprep.mubr.msk.bf16.mxu0 %vm2512_vm1, %v2511_v15  ;;  %2236 = vmatpush3.bf16.msra.mxu0 %v2433_v53 }
 0x152   : > { %2237 = vmatprep.subr.bf16.mxu0 %v2511_v15 }
 0x155   : > { %2238 = vmatpush3.bf16.msra.mxu0 %v2434_v54 }
 0x156   : > { %2239 = vmatprep.subr.bf16.mxu0 %v2511_v15 }
 0x159   : > { %2240 = vmatpush3.bf16.msra.mxu0 %v2435_v55 }
 0x15a   : > { %2241 = vmatprep.subr.bf16.mxu0 %v2511_v15 }
 0x15d   : > { %2242 = vmatpush3.bf16.msra.mxu0 %v2436_v56 }
 0x15e   : > { %2253 = vmatprep.subr.bf16.mxu0 %v2511_v15 }
 0x160   : > { %2244 = vmatmul.mubr.msk.bf16.vlgmr.msra.gmra.mrb[4].mxu0 %vm495_vm2, %v2608_v20 }
 0x161   : > { %2255 = vmatprep.mubr.msk.bf16.mxu0 %vm2512_vm1, %v2511_v15 }
 0x223   : > { %v456_v46 = vpop.f32.mrb[0].mxu0 }
 0x224   : > { %v2221_v47 = vpop.f32.mrb[1].mxu0 }
 0x225   : > { %v459_v48 = vpop.f32.mrb[2].mxu0  ;;  %v2441_v47 = vld [vmem:[%s2948_s6 + $0x20] sm:$0xff]  }
 0x226   : > { %v611_v50 = vpack.c.bf16 %v459_v48, %v456_v46  ;;  %v2222_v51 = vpop.f32.mrb[3].mxu0  ;;  %v2442_v48 = vld [vmem:[%s2948_s6 + $0x28] sm:$0xff]  }
 0x228   : > { %2250 = vmatmul.mubr.msk.bf16.vlgmr.msra.gmra.mrb[4].mxu1 %vm613_vm3, %v611_v50  ;;  %v2444_v50 = vld [vmem:[%s2948_s6 + $0x38] sm:$0xff]  }
 0x229   : > { %2260 = vmatpush3.bf16.msra.mxu1 %v2431_v49  ;;  %2263 = vmatprep.mubr.msk.bf16.mxu1 %vm2512_vm1, %v2511_v15  ;;  %v2443_v49 = vld [vmem:[%s2948_s6 + $0x30] sm:$0xff]  }
 0x22a   : > { %2261 = vmatprep.subr.bf16.mxu1 %v2511_v15 }
 0x22d   : > { %2262 = vmatpush3.bf16.msra.mxu1 %v2432_v52 }
 0x22e   : > { %2279 = vmatprep.subr.bf16.mxu1 %v2511_v15 }
 0x230   : > { %2264 = vmatmul.mubr.msk.bf16.vlgmr.msra.gmra.mrb[8].mxu1 %vm355_vm0, %v2633_v39 }
 0x231   : > { %2287 = vmatprep.mubr.msk.bf16.mxu1 %vm2512_vm1, %v2511_v15  ;;  %2280 = vmatpush3.bf16.msra.mxu1 %v2441_v47 }
 0x232   : > { %2281 = vmatprep.subr.bf16.mxu1 %v2511_v15 }
 0x233   : > { %v605_v17 = vpop.f32.mrb[4].mxu0 }
 0x234   : > { %v2245_v18 = vpop.f32.mrb[5].mxu0  ;;  %v686_v22 = vpack.c.bf16 %v605_v17, %v605_v17 }
 0x235   : > { %v608_v19 = vpop.f32.mrb[6].mxu0  ;;  %2282 = vmatpush3.bf16.msra.mxu1 %v2442_v48  ;;  %v736_v18 = vld [vmem:[%s2949_s7] sm:$0xf] }
 0x236   : > { %v2246_v21 = vpop.f32.mrb[7].mxu0  ;;  %v692_v23 = vsel %vm690_vm4, %v686_v22, 0  ;;  %2283 = vmatprep.subr.bf16.mxu1 %v2511_v15 }
 0x237   : > { %2254 = vmatpush3.bf16.msra.mxu0 %v692_v23  ;;  %v1117_v23 = vsel %vm690_vm4, %v736_v18, 0 }
 0x238   : > { %2267 = vmatprep.subr.bf16.mxu0 %v2511_v15 }
 0x239   : > { %2284 = vmatpush3.bf16.msra.mxu1 %v2443_v49 }
 0x23a   : > { %2285 = vmatprep.subr.bf16.mxu1 %v2511_v15 }
 0x23d   : > { %2286 = vmatpush3.bf16.msra.mxu1 %v2444_v50 }
 0x23e   : > { %2297 = vmatprep.subr.bf16.mxu1 %v2511_v15 }
 0x240   : > { %2288 = vmatmul.mubr.msk.bf16.vlgmr.msra.gmra.mrb[12].mxu1 %vm495_vm2, %v2608_v20 }
 0x241   : > { %2299 = vmatprep.mubr.msk.bf16.mxu1 %vm2512_vm1, %v2511_v15 }
 0x2fb   : > { %v654_v57 = vpop.f32.mrb[4].mxu1 }
 0x2fc   : > { %v661_v58 = vmul.f32 0.35355338, %v654_v57  ;;  %v2251_v59 = vpop.f32.mrb[5].mxu1 }
 0x2fd   : > { %v657_v60 = vpop.f32.mrb[6].mxu1 }
 0x2fe   : > { %v662_v61 = vmul.f32 0.35355338, %v657_v60  ;;  %v2252_v62 = vpop.f32.mrb[7].mxu1  ;;  %v663_v63 = vsel %vm613_vm3, %v661_v58, -inf }
 0x2ff   : > { %664 = vmax.xlane.f32.xlu0 %v663_v63 }
 0x300   : > { %v666_v0 = vsel %vm613_vm3, %v662_v61, -inf }
 0x301   : > { %667 = vmax.xlane.f32.xlu1 %v666_v0 }
 0x303   : > { %v2678_v1 = vpop.f32.mrb[8].mxu1 }
 0x304   : > { %v2265_v2 = vpop.f32.mrb[9].mxu1 }
 0x305   : > { %v2680_v3 = vpop.f32.mrb[10].mxu1 }
 0x306   : > { %v941_v4 = vpack.c.bf16 %v2680_v3, %v2678_v1  ;;  %v2266_v5 = vpop.f32.mrb[11].mxu1 }
 0x313   : > { %v935_v5 = vpop.f32.mrb[12].mxu1 }
 0x38c   : > { %v665_v6 = vpop.xlane.xlu0 %664 }
 0x38d   : > { %v669_v7 = vsub.f32 %v661_v58, %v665_v6  ;;  %v2289_v6 = vpop.f32.mrb[13].mxu1 }
 0x38e   : > { %v668_v8 = vpop.xlane.xlu1 %667 }
 0x38f   : > { %v671_v9 = vmul.f32 1.442695, %v669_v7  ;;  %v670_v10 = vsub.f32 %v662_v61, %v668_v8  ;;  %v938_v7 = vpop.f32.mrb[14].mxu1 }
 0x390   : > { %v2290_v8 = vpop.f32.mrb[15].mxu1 }
 0x391   : > { %2469 = vpow2.f32 %v671_v9  ;;  %v673_v11 = vmul.f32 1.442695, %v670_v10  ;;  %v1015_v9 = vpack.c.bf16 %v935_v5, %v935_v5 }
 0x393   : > { %2471 = vpow2.f32 %v673_v11  ;;  %v1020_v10 = vsel %vm690_vm4, %v1015_v9, 0  ;;  %v2057_v11 = vld [vmem:[%s2949_s7 + $0x4] sm:$0xf] }
 0x394   : > { %2298 = vmatpush3.bf16.msra.mxu1 %v1020_v10 }
 0x395   : > { %2309 = vmatprep.subr.bf16.mxu1 %v2511_v15 }
 0x39b   : > { %v2470_v12 = vpop.eup %2469 }
 0x39c   : > { %v675_v13 = vsel %vm613_vm3, %v2470_v12, 0.0 }
 0x39d   : > { %v2472_v14 = vpop.eup %2471  ;;  %676 = vadd.xlane.f32.xlu0 %v675_v13 }
 0x39e   : > { %v678_v16 = vsel %vm613_vm3, %v2472_v14, 0.0 }
 0x39f   : > { %679 = vadd.xlane.f32.xlu1 %v678_v16 }
 0x42a   : > { %v677_v24 = vpop.xlane.xlu0 %676 }
 0x42b   : > { %2473 = vrcp.f32 %v677_v24  ;;  %v2445_v24 = vld [vmem:[%s2947_s5 + $0x40] sm:$0xff]  }
 0x42c   : > { %v680_v25 = vpop.xlane.xlu1 %679 }
 0x42d   : > { %2475 = vrcp.f32 %v680_v25  ;;  %v2446_v25 = vld [vmem:[%s2947_s5 + $0x48] sm:$0xff]  }
 0x435   : > { %v2474_v26 = vpop.eup %2473 }
 0x436   : > { %v683_v28 = vmul.f32 %v2474_v26, %v2470_v12  ;;  %v1070_v12 = vsel %vm690_vm4, %v2057_v11, 0  ;;  %v2447_v26 = vld [vmem:[%s2947_s5 + $0x50] sm:$0xff]  }
 0x437   : > { %v2476_v27 = vpop.eup %2475 }
 0x438   : > { %v684_v29 = vmul.f32 %v2476_v27, %v2472_v14  ;;  %v2448_v27 = vld [vmem:[%s2947_s5 + $0x58] sm:$0xff]  }
 0x43a   : > { %v685_v31 = vpack.c.bf16 %v684_v29, %v683_v28 }
 0x43c   : > { %2256 = vmatmul.mubr.msk.bf16.vlgmr.msra.gmra.mrb[8].mxu0 %vm613_vm3, %v685_v31  ;;  %v2449_v31 = vld [vmem:[%s2946_s4 + $0x20] sm:$0xff]  }
 0x43d   : > { %2268 = vmatpush3.bf16.msra.mxu0 %v2437_v30  ;;  %2275 = vmatprep.mubr.msk.bf16.mxu0 %vm2512_vm1, %v2511_v15 }
 0x43e   : > { %2269 = vmatprep.subr.bf16.mxu0 %v2511_v15 }
 0x441   : > { %2270 = vmatpush3.bf16.msra.mxu0 %v2438_v32 }
 0x442   : > { %2271 = vmatprep.subr.bf16.mxu0 %v2511_v15 }
 0x445   : > { %2272 = vmatpush3.bf16.msra.mxu0 %v2439_v33 }
 0x446   : > { %2273 = vmatprep.subr.bf16.mxu0 %v2511_v15 }
 0x449   : > { %2274 = vmatpush3.bf16.msra.mxu0 %v2440_v34  ;;  %v2450_v34 = vld [vmem:[%s2946_s4 + $0x28] sm:$0xff]  }
 0x44a   : > { %2291 = vmatprep.subr.bf16.mxu0 %v2511_v15 }
 0x44c   : > { %2276 = vmatmul.mubr.msk.bf16.vlgmr.msra.gmra.mrb[12].mxu0 %vm495_vm2, %v2608_v20 }
 0x44d   : > { %2293 = vmatprep.mubr.msk.bf16.mxu0 %vm2512_vm1, %v2511_v15 }
 0x50f   : > { %v2711_v35 = vpop.f32.mrb[8].mxu0 }
 0x510   : > { %v2257_v36 = vpop.f32.mrb[9].mxu0 }
 0x511   : > { %v2713_v37 = vpop.f32.mrb[10].mxu0 }
 0x512   : > { %v735_v38 = vpack.c.bf16 %v2713_v37, %v2711_v35  ;;  %v2258_v40 = vpop.f32.mrb[11].mxu0 }
 0x51f   : > { %v862_v41 = vpop.f32.mrb[12].mxu0 }
 0x520   : > { %v942_v42 = vpack.c.bf16 %v862_v41, %v862_v41  ;;  %v2277_v43 = vpop.f32.mrb[13].mxu0 }
 0x521   : > { %v865_v44 = vpop.f32.mrb[14].mxu0 }
 0x522   : > { %v947_v45 = vsel %vm613_vm3, %v942_v42, 0  ;;  %v2278_v46 = vpop.f32.mrb[15].mxu0 }
 0x523   : > { %2292 = vmatpush3.bf16.xpose.msra.mxu0 %v947_v45 }
 0x524   : > { %2303 = vmatprep.subr.bf16.mxu0 %v2511_v15 }
 0x52a   : > { %2294 = vmatmul.mubr.msk.bf16.vlgmr.msra.gmra.mrb[16].mxu0 %vm613_vm3, %v941_v4 }
 0x52b   : > { %2305 = vmatprep.mubr.msk.bf16.mxu0 %vm2512_vm1, %v2511_v15  ;;  %2304 = vmatpush3.bf16.msra.mxu0 %v1070_v12 }
 0x52c   : > { %2315 = vmatprep.subr.bf16.mxu0 %v2511_v15 }
 0x5fd   : > { %v983_v51 = vpop.f32.mrb[16].mxu0 }
 0x5fe   : > { %v990_v52 = vmul.f32 0.35355338, %v983_v51  ;;  %v2295_v53 = vpop.f32.mrb[17].mxu0 }
 0x5ff   : > { %v986_v54 = vpop.f32.mrb[18].mxu0 }
 0x600   : > { %v991_v55 = vmul.f32 0.35355338, %v986_v54  ;;  %v2296_v56 = vpop.f32.mrb[19].mxu0  ;;  %v992_v57 = vsel %vm613_vm3, %v990_v52, -inf }
 0x601   : > { %993 = vmax.xlane.f32.xlu0 %v992_v57  ;;  %v2451_v57 = vld [vmem:[%s2948_s6 + $0x40] sm:$0xff]  }
 0x602   : > { %v995_v58 = vsel %vm613_vm3, %v991_v55, -inf }
 0x603   : > { %996 = vmax.xlane.f32.xlu1 %v995_v58  ;;  %v2452_v58 = vld [vmem:[%s2948_s6 + $0x48] sm:$0xff]  }
 0x68e   : > { %v994_v59 = vpop.xlane.xlu0 %993 }
 0x68f   : > { %v998_v60 = vsub.f32 %v990_v52, %v994_v59  ;;  %v2453_v59 = vld [vmem:[%s2948_s6 + $0x50] sm:$0xff]  }
 0x690   : > { %v997_v61 = vpop.xlane.xlu1 %996 }
 0x691   : > { %v1000_v62 = vmul.f32 1.442695, %v998_v60  ;;  %v999_v63 = vsub.f32 %v991_v55, %v997_v61  ;;  %v2454_v60 = vld [vmem:[%s2948_s6 + $0x58] sm:$0xff]  }
 0x693   : > { %2477 = vpow2.f32 %v1000_v62  ;;  %v1002_v0 = vmul.f32 1.442695, %v999_v63 }
 0x695   : > { %2479 = vpow2.f32 %v1002_v0 }
 0x69d   : > { %v2478_v1 = vpop.eup %2477 }
 0x69e   : > { %v1004_v2 = vsel %vm613_vm3, %v2478_v1, 0.0 }
 0x69f   : > { %v2480_v3 = vpop.eup %2479  ;;  %1005 = vadd.xlane.f32.xlu0 %v1004_v2 }
 0x6a0   : > { %v1007_v4 = vsel %vm613_vm3, %v2480_v3, 0.0 }
 0x6a1   : > { %1008 = vadd.xlane.f32.xlu1 %v1007_v4 }
 0x72c   : > { %v1006_v13 = vpop.xlane.xlu0 %1005 }
 0x72d   : > { %2481 = vrcp.f32 %v1006_v13 }
 0x72e   : > { %v1009_v14 = vpop.xlane.xlu1 %1008 }
 0x72f   : > { %2483 = vrcp.f32 %v1009_v14 }
 0x737   : > { %v2482_v16 = vpop.eup %2481 }
 0x738   : > { %v1012_v19 = vmul.f32 %v2482_v16, %v2478_v1 }
 0x739   : > { %v2484_v17 = vpop.eup %2483 }
 0x73a   : > { %v1013_v21 = vmul.f32 %v2484_v17, %v2480_v3 }
 0x73c   : > { %v1014_v22 = vpack.c.bf16 %v1013_v21, %v1012_v19 }
 0x73e   : > { %2300 = vmatmul.mubr.msk.bf16.vlgmr.msra.gmra.mrb[16].mxu1 %vm613_vm3, %v1014_v22 }
 0x73f   : > { %2310 = vmatpush3.bf16.msra.mxu1 %v1117_v23  ;;  %2311 = vmatprep.mubr.msk.bf16.mxu1 %vm2512_vm1, %v2511_v15  ;;  %v2095_v23 = vld [vmem:[%s2949_s7 + $0x8] sm:$0xf] }
 0x740   : > { %2323 = vmatprep.subr.bf16.mxu1 %v2511_v15 }
 0x746   : > { %2312 = vmatmul.mubr.msk.bf16.vlgmr.msra.gmra.mrb[20].mxu1 %vm613_vm3, %v735_v38 }
 0x747   : > { %2324 = vmatpush3.bf16.msra.mxu1 %v2445_v24  ;;  %2331 = vmatprep.mubr.msk.bf16.mxu1 %vm2512_vm1, %v2511_v15  ;;  %v1493_v24 = vsel %vm690_vm4, %v2095_v23, 0 }
 0x748   : > { %2325 = vmatprep.subr.bf16.mxu1 %v2511_v15 }
 0x74b   : > { %2326 = vmatpush3.bf16.msra.mxu1 %v2446_v25 }
 0x74c   : > { %2327 = vmatprep.subr.bf16.mxu1 %v2511_v15 }
 0x74f   : > { %2328 = vmatpush3.bf16.msra.mxu1 %v2447_v26 }
 0x750   : > { %2329 = vmatprep.subr.bf16.mxu1 %v2511_v15 }
 0x753   : > { %2330 = vmatpush3.bf16.msra.mxu1 %v2448_v27 }
 0x754   : > { %2347 = vmatprep.subr.bf16.mxu1 %v2511_v15 }
 0x756   : > { %2332 = vmatmul.mubr.msk.bf16.vlgmr.msra.gmra.mrb[24].mxu1 %vm495_vm2, %v2608_v20 }
 0x757   : > { %2349 = vmatprep.mubr.msk.bf16.mxu1 %vm2512_vm1, %v2511_v15 }
 0x811   : > { %v1056_v28 = vpop.f32.mrb[16].mxu1 }
 0x812   : > { %v2301_v29 = vpop.f32.mrb[17].mxu1 }
 0x813   : > { %v1059_v30 = vpop.f32.mrb[18].mxu1 }
 0x814   : > { %v1063_v32 = vpack.c.bf16 %v1059_v30, %v1056_v28  ;;  %v2302_v33 = vpop.f32.mrb[19].mxu1 }
 0x815   : > { %v2456_v33 = vld [vmem:[%s2946_s4 + $0x38] sm:$0xff]  }
 0x816   : > { %2306 = vmatmul.mubr.msk.bf16.vlgmr.msra.gmra.mrb[20].mxu0 %vm613_vm3, %v1063_v32 }
 0x817   : > { %2316 = vmatpush3.bf16.msra.mxu0 %v2449_v31  ;;  %2319 = vmatprep.mubr.msk.bf16.mxu0 %vm2512_vm1, %v2511_v15  ;;  %v2455_v31 = vld [vmem:[%s2946_s4 + $0x30] sm:$0xff]  }
 0x818   : > { %2317 = vmatprep.subr.bf16.mxu0 %v2511_v15 }
 0x819   : > { %v1153_v35 = vpop.f32.mrb[20].mxu1 }
 0x81a   : > { %v2313_v36 = vpop.f32.mrb[21].mxu1 }
 0x81b   : > { %v1156_v37 = vpop.f32.mrb[22].mxu1  ;;  %2318 = vmatpush3.bf16.msra.mxu0 %v2450_v34 }
 0x81c   : > { %v2314_v38 = vpop.f32.mrb[23].mxu1  ;;  %2335 = vmatprep.subr.bf16.mxu0 %v2511_v15 }
 0x81e   : > { %2320 = vmatmul.mubr.msk.bf16.vlgmr.msra.gmra.mrb[24].mxu0 %vm355_vm0, %v2633_v39 }
 0x81f   : > { %2343 = vmatprep.mubr.msk.bf16.mxu0 %vm2512_vm1, %v2511_v15  ;;  %2336 = vmatpush3.bf16.msra.mxu0 %v2451_v57 }
 0x820   : > { %2337 = vmatprep.subr.bf16.mxu0 %v2511_v15 }
 0x823   : > { %2338 = vmatpush3.bf16.msra.mxu0 %v2452_v58 }
 0x824   : > { %2339 = vmatprep.subr.bf16.mxu0 %v2511_v15 }
 0x827   : > { %2340 = vmatpush3.bf16.msra.mxu0 %v2453_v59 }
 0x828   : > { %2341 = vmatprep.subr.bf16.mxu0 %v2511_v15 }
 0x829   : > { %v1285_v40 = vpop.f32.mrb[24].mxu1 }
 0x82a   : > { %v1365_v41 = vpack.c.bf16 %v1285_v40, %v1285_v40  ;;  %v2333_v42 = vpop.f32.mrb[25].mxu1 }
 0x82b   : > { %v1288_v43 = vpop.f32.mrb[26].mxu1  ;;  %2342 = vmatpush3.bf16.msra.mxu0 %v2454_v60 }
 0x82c   : > { %v1370_v44 = vsel %vm613_vm3, %v1365_v41, 0  ;;  %v2334_v45 = vpop.f32.mrb[27].mxu1  ;;  %2353 = vmatprep.subr.bf16.mxu0 %v2511_v15  ;;  %v2458_v41 = vld [vmem:[%s2947_s5 + $0x68] sm:$0xff]  }
 0x82d   : > { %2348 = vmatpush3.bf16.xpose.msra.mxu1 %v1370_v44  ;;  %v2459_v44 = vld [vmem:[%s2947_s5 + $0x70] sm:$0xff]  }
 0x82e   : > { %2359 = vmatprep.subr.bf16.mxu1 %v2511_v15  ;;  %2344 = vmatmul.mubr.msk.bf16.vlgmr.msra.gmra.mrb[28].mxu0 %vm495_vm2, %v2608_v20 }
 0x82f   : > { %2355 = vmatprep.mubr.msk.bf16.mxu0 %vm2512_vm1, %v2511_v15 }
 0x8e9   : > { %v1106_v46 = vpop.f32.mrb[20].mxu0 }
 0x8ea   : > { %v2807_v47 = vadd.f32 %v1153_v35, %v1106_v46  ;;  %v2307_v48 = vpop.f32.mrb[21].mxu0 }
 0x8eb   : > { %v1109_v49 = vpop.f32.mrb[22].mxu0  ;;  %v2460_v48 = vld [vmem:[%s2947_s5 + $0x78] sm:$0xff]  }
 0x8ec   : > { %v2809_v50 = vadd.f32 %v1156_v37, %v1109_v49  ;;  %v2308_v51 = vpop.f32.mrb[23].mxu0  ;;  %v2457_v37 = vld [vmem:[%s2947_s5 + $0x60] sm:$0xff]  }
 0x8f1   : > { %v1211_v52 = vpop.f32.mrb[24].mxu0 }
 0x8f2   : > { %v2321_v53 = vpop.f32.mrb[25].mxu0 }
 0x8f3   : > { %v1214_v54 = vpop.f32.mrb[26].mxu0 }
 0x8f4   : > { %v1364_v55 = vpack.c.bf16 %v1214_v54, %v1211_v52  ;;  %v2322_v56 = vpop.f32.mrb[27].mxu0 }
 0x8f6   : > { %2350 = vmatmul.mubr.msk.bf16.vlgmr.msra.gmra.mrb[28].mxu1 %vm613_vm3, %v1364_v55 }
 0x8f7   : > { %2361 = vmatprep.mubr.msk.bf16.mxu1 %vm2512_vm1, %v2511_v15  ;;  %2360 = vmatpush3.bf16.msra.mxu1 %v1493_v24  ;;  %v2132_v24 = vld [vmem:[%s2949_s7 + $0xc] sm:$0xf] }
 0x8f8   : > { %2373 = vmatprep.subr.bf16.mxu1 %v2511_v15 }
 0x901   : > { %v1358_v16 = vpop.f32.mrb[28].mxu0 }
 0x902   : > { %v2345_v17 = vpop.f32.mrb[29].mxu0  ;;  %v1438_v21 = vpack.c.bf16 %v1358_v16, %v1358_v16 }
 0x903   : > { %v1361_v18 = vpop.f32.mrb[30].mxu0 }
 0x904   : > { %v2346_v19 = vpop.f32.mrb[31].mxu0  ;;  %v1443_v22 = vsel %vm690_vm4, %v1438_v21, 0 }
 0x905   : > { %2354 = vmatpush3.bf16.msra.mxu0 %v1443_v22 }
 0x906   : > { %2365 = vmatprep.subr.bf16.mxu0 %v2511_v15 }
 0x9c9   : > { %v1406_v61 = vpop.f32.mrb[28].mxu1 }
 0x9ca   : > { %v1413_v62 = vmul.f32 0.35355338, %v1406_v61  ;;  %v2351_v63 = vpop.f32.mrb[29].mxu1 }
 0x9cb   : > { %v1409_v0 = vpop.f32.mrb[30].mxu1  ;;  %v2464_v63 = vld [vmem:[%s2948_s6 + $0x78] sm:$0xff]  }
 0x9cc   : > { %v1414_v1 = vmul.f32 0.35355338, %v1409_v0  ;;  %v2352_v2 = vpop.f32.mrb[31].mxu1  ;;  %v1415_v3 = vsel %vm613_vm3, %v1413_v62, -inf }
 0x9cd   : > { %1416 = vmax.xlane.f32.xlu0 %v1415_v3 }
 0x9ce   : > { %v1418_v4 = vsel %vm613_vm3, %v1414_v1, -inf }
 0x9cf   : > { %1419 = vmax.xlane.f32.xlu1 %v1418_v4 }
 0xa5a   : > { %v1417_v5 = vpop.xlane.xlu0 %1416 }
 0xa5b   : > { %v1421_v6 = vsub.f32 %v1413_v62, %v1417_v5  ;;  %v2463_v62 = vld [vmem:[%s2948_s6 + $0x70] sm:$0xff]  }
 0xa5c   : > { %v1420_v7 = vpop.xlane.xlu1 %1419 }
 0xa5d   : > { %v1423_v8 = vmul.f32 1.442695, %v1421_v6  ;;  %v1422_v9 = vsub.f32 %v1414_v1, %v1420_v7 }
 0xa5f   : > { %2485 = vpow2.f32 %v1423_v8  ;;  %v1425_v10 = vmul.f32 1.442695, %v1422_v9 }
 0xa61   : > { %2487 = vpow2.f32 %v1425_v10 }
 0xa69   : > { %v2486_v11 = vpop.eup %2485 }
 0xa6a   : > { %v1427_v12 = vsel %vm613_vm3, %v2486_v11, 0.0 }
 0xa6b   : > { %v2488_v13 = vpop.eup %2487  ;;  %1428 = vadd.xlane.f32.xlu0 %v1427_v12 }
 0xa6c   : > { %v1430_v14 = vsel %vm613_vm3, %v2488_v13, 0.0 }
 0xa6d   : > { %1431 = vadd.xlane.f32.xlu1 %v1430_v14 }
 0xaf8   : > { %v1429_v25 = vpop.xlane.xlu0 %1428 }
 0xaf9   : > { %2489 = vrcp.f32 %v1429_v25  ;;  %v1871_v25 = vsel %vm690_vm4, %v2132_v24, 0 }
 0xafa   : > { %v1432_v26 = vpop.xlane.xlu1 %1431 }
 0xafb   : > { %2491 = vrcp.f32 %v1432_v26 }
 0xb03   : > { %v2490_v27 = vpop.eup %2489 }
 0xb04   : > { %v1435_v29 = vmul.f32 %v2490_v27, %v2486_v11 }
 0xb05   : > { %v2492_v28 = vpop.eup %2491 }
 0xb06   : > { %v1436_v30 = vmul.f32 %v2492_v28, %v2488_v13 }
 0xb08   : > { %v1437_v32 = vpack.c.bf16 %v1436_v30, %v1435_v29 }
 0xb0a   : > { %2356 = vmatmul.mubr.msk.bf16.vlgmr.msra.gmra.mrb[32].mxu0 %vm613_vm3, %v1437_v32 }
 0xb0b   : > { %2366 = vmatpush3.bf16.msra.mxu0 %v2455_v31  ;;  %2369 = vmatprep.mubr.msk.bf16.mxu0 %vm2512_vm1, %v2511_v15 }
 0xb0c   : > { %2367 = vmatprep.subr.bf16.mxu0 %v2511_v15 }
 0xb0f   : > { %2368 = vmatpush3.bf16.msra.mxu0 %v2456_v33 }
 0xb10   : > { %2385 = vmatprep.subr.bf16.mxu0 %v2511_v15 }
 0xb12   : > { %2370 = vmatmul.mubr.msk.bf16.vlgmr.msra.gmra.mrb[36].mxu0 %vm355_vm0, %v2633_v39 }
 0xb13   : > { %2393 = vmatprep.mubr.msk.bf16.mxu0 %vm2512_vm1, %v2511_v15 }
 0xbdd   : > { %v1479_v34 = vpop.f32.mrb[32].mxu0 }
 0xbde   : > { %v2357_v35 = vpop.f32.mrb[33].mxu0 }
 0xbdf   : > { %v1482_v36 = vpop.f32.mrb[34].mxu0 }
 0xbe0   : > { %v1486_v38 = vpack.c.bf16 %v1482_v36, %v1479_v34  ;;  %v2358_v40 = vpop.f32.mrb[35].mxu0 }
 0xbe2   : > { %2362 = vmatmul.mubr.msk.bf16.vlgmr.msra.gmra.mrb[32].mxu1 %vm613_vm3, %v1486_v38  ;;  %v2134_v38 = vld [vmem:[%s2950_s8] ss:$0 sm:$0xff] }
 0xbe3   : > { %2374 = vmatpush3.bf16.msra.mxu1 %v2457_v37  ;;  %2381 = vmatprep.mubr.msk.bf16.mxu1 %vm2512_vm1, %v2511_v15 }
 0xbe4   : > { %2375 = vmatprep.subr.bf16.mxu1 %v2511_v15 }
 0xbe5   : > { %v1589_v39 = vpop.f32.mrb[36].mxu0 }
 0xbe6   : > { %v2371_v42 = vpop.f32.mrb[37].mxu0 }
 0xbe7   : > { %2376 = vmatpush3.bf16.msra.mxu1 %v2458_v41  ;;  %v1592_v43 = vpop.f32.mrb[38].mxu0 }
 0xbe8   : > { %v1742_v45 = vpack.c.bf16 %v1592_v43, %v1589_v39  ;;  %v2372_v46 = vpop.f32.mrb[39].mxu0  ;;  %2377 = vmatprep.subr.bf16.mxu1 %v2511_v15 }
 0xbe9   : > { %v2501_v46 = vld [vmem:[%s2579_s14] sm:$0xff] }
 0xbeb   : > { %2378 = vmatpush3.bf16.msra.mxu1 %v2459_v44 }
 0xbec   : > { %2379 = vmatprep.subr.bf16.mxu1 %v2511_v15 }
 0xbef   : > { %2380 = vmatpush3.bf16.msra.mxu1 %v2460_v48 }
 0xbf0   : > { %2397 = vmatprep.subr.bf16.mxu1 %v2511_v15 }
 0xbf2   : > { %2382 = vmatmul.mubr.msk.bf16.vlgmr.msra.gmra.mrb[36].mxu1 %vm495_vm2, %v2608_v20 }
 0xbf3   : > { %2399 = vmatprep.mubr.msk.bf16.mxu1 %vm2512_vm1, %v2511_v15 }
 0xcb5   : > { %v1529_v49 = vpop.f32.mrb[32].mxu1 }
 0xcb6   : > { %v2884_v51 = vadd.f32 %v1529_v49, %v2807_v47  ;;  %v2363_v52 = vpop.f32.mrb[33].mxu1  ;;  %v2461_v47 = vld [vmem:[%s2948_s6 + $0x60] sm:$0xff]  }
 0xcb7   : > { %v1532_v53 = vpop.f32.mrb[34].mxu1  ;;  %2386 = vmatpush3.bf16.msra.mxu0 %v2461_v47  ;;  %v2502_v52 = vld [vmem:[%s2579_s14 + $0x8] sm:$0xff] }
 0xcb8   : > { %v2887_v54 = vadd.f32 %v1532_v53, %v2809_v50  ;;  %v2364_v55 = vpop.f32.mrb[35].mxu1  ;;  %v2462_v50 = vld [vmem:[%s2948_s6 + $0x68] sm:$0xff]   ;;  %2387 = vmatprep.subr.bf16.mxu0 %v2511_v15 }
 0xcbb   : > { %2388 = vmatpush3.bf16.msra.mxu0 %v2462_v50 }
 0xcbc   : > { %2389 = vmatprep.subr.bf16.mxu0 %v2511_v15 }
 0xcbf   : > { %2390 = vmatpush3.bf16.msra.mxu0 %v2463_v62 }
 0xcc0   : > { %2391 = vmatprep.subr.bf16.mxu0 %v2511_v15 }
 0xcc3   : > { %2392 = vmatpush3.bf16.msra.mxu0 %v2464_v63 }
 0xcc4   : > { %2403 = vmatprep.subr.bf16.mxu0 %v2511_v15 }
 0xcc5   : > { %v1663_v56 = vpop.f32.mrb[36].mxu1 }
 0xcc6   : > { %v1743_v57 = vpack.c.bf16 %v1663_v56, %v1663_v56  ;;  %v2383_v58 = vpop.f32.mrb[37].mxu1  ;;  %2394 = vmatmul.mubr.msk.bf16.vlgmr.msra.gmra.mrb[40].mxu0 %vm495_vm2, %v2608_v20 }
 0xcc7   : > { %v1666_v59 = vpop.f32.mrb[38].mxu1  ;;  %2405 = vmatprep.mubr.msk.bf16.mxu0 %vm2512_vm1, %v2511_v15 }
 0xcc8   : > { %v1748_v60 = vsel %vm613_vm3, %v1743_v57, 0  ;;  %v2384_v61 = vpop.f32.mrb[39].mxu1 }
 0xcc9   : > { %2398 = vmatpush3.bf16.xpose.msra.mxu1 %v1748_v60 }
 0xcca   : > { %2409 = vmatprep.subr.bf16.mxu1 %v2511_v15 }
 0xcd0   : > { %2400 = vmatmul.mubr.msk.bf16.vlgmr.msra.gmra.mrb[40].mxu1 %vm613_vm3, %v1742_v45 }
 0xcd1   : > { %2411 = vmatprep.mubr.msk.bf16.mxu1 %vm2512_vm1, %v2511_v15  ;;  %2410 = vmatpush3.bf16.msra.mxu1 %v1871_v25 }
 0xd99   : > { %v1736_v17 = vpop.f32.mrb[40].mxu0 }
 0xd9a   : > { %v2395_v18 = vpop.f32.mrb[41].mxu0  ;;  %v1816_v22 = vpack.c.bf16 %v1736_v17, %v1736_v17 }
 0xd9b   : > { %v1739_v19 = vpop.f32.mrb[42].mxu0 }
 0xd9c   : > { %v2396_v21 = vpop.f32.mrb[43].mxu0  ;;  %v1821_v23 = vsel %vm690_vm4, %v1816_v22, 0 }
 0xd9d   : > { %2404 = vmatpush3.bf16.msra.mxu0 %v1821_v23 }
 0xda3   : > { %v1784_v0 = vpop.f32.mrb[40].mxu1 }
 0xda4   : > { %v1791_v1 = vmul.f32 0.35355338, %v1784_v0  ;;  %v2401_v2 = vpop.f32.mrb[41].mxu1 }
 0xda5   : > { %v1787_v3 = vpop.f32.mrb[42].mxu1 }
 0xda6   : > { %v1792_v4 = vmul.f32 0.35355338, %v1787_v3  ;;  %v2402_v5 = vpop.f32.mrb[43].mxu1  ;;  %v1793_v6 = vsel %vm613_vm3, %v1791_v1, -inf }
 0xda7   : > { %1794 = vmax.xlane.f32.xlu0 %v1793_v6 }
 0xda8   : > { %v1796_v7 = vsel %vm613_vm3, %v1792_v4, -inf }
 0xda9   : > { %1797 = vmax.xlane.f32.xlu1 %v1796_v7 }
 0xe34   : > { %v1795_v8 = vpop.xlane.xlu0 %1794 }
 0xe35   : > { %v1799_v9 = vsub.f32 %v1791_v1, %v1795_v8 }
 0xe36   : > { %v1798_v10 = vpop.xlane.xlu1 %1797 }
 0xe37   : > { %v1801_v11 = vmul.f32 1.442695, %v1799_v9  ;;  %v1800_v20 = vsub.f32 %v1792_v4, %v1798_v10 }
 0xe39   : > { %2493 = vpow2.f32 %v1801_v11  ;;  %v1803_v12 = vmul.f32 1.442695, %v1800_v20 }
 0xe3b   : > { %2495 = vpow2.f32 %v1803_v12 }
 0xe43   : > { %v2494_v15 = vpop.eup %2493 }
 0xe44   : > { %v1805_v13 = vsel %vm613_vm3, %v2494_v15, 0.0 }
 0xe45   : > { %v2496_v14 = vpop.eup %2495  ;;  %1806 = vadd.xlane.f32.xlu0 %v1805_v13 }
 0xe46   : > { %v1808_v16 = vsel %vm613_vm3, %v2496_v14, 0.0 }
 0xe47   : > { %1809 = vadd.xlane.f32.xlu1 %v1808_v16 }
 0xed2   : > { %v1807_v26 = vpop.xlane.xlu0 %1806 }
 0xed3   : > { %2497 = vrcp.f32 %v1807_v26 }
 0xed4   : > { %v1810_v27 = vpop.xlane.xlu1 %1809 }
 0xed5   : > { %2499 = vrcp.f32 %v1810_v27 }
 0xedd   : > { %v2498_v28 = vpop.eup %2497 }
 0xede   : > { %v1813_v30 = vmul.f32 %v2498_v28, %v2494_v15 }
 0xedf   : > { %v2500_v29 = vpop.eup %2499 }
 0xee0   : > { %v1814_v31 = vmul.f32 %v2500_v29, %v2496_v14 }
 0xee2   : > { %v1815_v32 = vpack.c.bf16 %v1814_v31, %v1813_v30 }
 0xee4   : > { %2406 = vmatmul.mubr.msk.bf16.vlgmr.msra.gmra.mrb[44].mxu0 %vm613_vm3, %v1815_v32 }
 0xfb7   : > { %v1857_v33 = vpop.f32.mrb[44].mxu0 }
 0xfb8   : > { %v2407_v34 = vpop.f32.mrb[45].mxu0 }
 0xfb9   : > { %v1860_v35 = vpop.f32.mrb[46].mxu0 }
 0xfba   : > { %v1864_v36 = vpack.c.bf16 %v1860_v35, %v1857_v33  ;;  %v2408_v37 = vpop.f32.mrb[47].mxu0 }
 0xfbc   : > { %2412 = vmatmul.mubr.msk.bf16.vlgmr.msra.gmra.mrb[44].mxu1 %vm613_vm3, %v1864_v36 }
0x108f   : > { %v1907_v40 = vpop.f32.mrb[44].mxu1 }
0x1090   : > { %v1914_v41 = vadd.f32 %v1907_v40, %v2884_v51  ;;  %v2413_v39 = vpop.f32.mrb[45].mxu1 }
0x1091   : > { %v1910_v42 = vpop.f32.mrb[46].mxu1 }
0x1092   : > { %v1922_v43 = vadd.f32 %v2134_v38, %v1914_v41  ;;  %v1915_v44 = vadd.f32 %v1910_v42, %v2887_v54  ;;  %v2414_v45 = vpop.f32.mrb[47].mxu1 }
0x1094   : > { %v1924_v48 = vadd.f32 %v2501_v46, %v1922_v43  ;;  %v1923_v49 = vadd.f32 %v2134_v38, %v1915_v44 }
0x1096   : > { %1926 = vst.msk [vmem:[%s349_s12] sm:$0xff] %vm355_vm0, %v1924_v48  ;;  %v1925_v53 = vadd.f32 %v2502_v52, %v1923_v49 }
0x1098   : > { %1927 = vst.msk [vmem:[%s349_s12 + $0x8] sm:$0xff] %vm355_vm0, %v1925_v53 }
0x1099 PF: > { %s19_s30 = sadd.s32 1, %s2509_s30  }
0x109a   : > { %p16_p4 = scmp.ge.s32.totalorder %s19_s30, 4  }
0x109c   :  { %18 = sbr.rel (!%p16_p4) target bundleno = 1 (0x1), region = 101 }

// kernel: unet_mid_block_1d_cross_attn.13
= control target key start
LH: loop header
LB: loop body
LE: loop exit
PB: predicated region body
PF: predicated region fallthrough
CT: control target
= control target key end

     0   :  { %12 = vsyncpa [#allocation3], 0  ;;  %s1304_s0 = inlined_call_operand.vmem [shape: f32[2,16,32], index: 0, kind: input, shape index: {}]   ;;  %s1305_s1 = inlined_call_operand.vmem [shape: f32[1,32], index: 1, kind: input, shape index: {}]   ;;  %s1306_s2 = inlined_call_operand.vmem [shape: f32[1,32], index: 2, kind: input, shape index: {}]   ;;  %s1307_s3 = inlined_call_operand.vmem [shape: f32[32,32], index: 3, kind: input, shape index: {}]   ;;  %s1308_s4 = inlined_call_operand.vmem [shape: bf16[3,32,32], index: 4, kind: input, shape index: {}]   ;;  %s1309_s5 = inlined_call_operand.vmem [shape: f32[1,32], index: 5, kind: input, shape index: {}]   ;;  %s1310_s6 = inlined_call_operand.vmem [shape: f32[2,16,32], index: 6, kind: input, shape index: {}]   ;;  %s1311_s7 = inlined_call_operand.hbm [shape: f32[2,16,32], index: 7, kind: output, shape index: {}]  }
   0x1   :  { %14 = vsyncpa [#allocation3 + $0x1], 0  ;;  %s1121_s24 = smov 0   ;;  %s1123_s25 = smov 0  }
   0x2   :  { %s1125_s26 = smov 0   ;;  %s1127_s27 = smov 0  }
   0x3 LB: > { %s1142_s28 = sadd.s32 4294967295, %s1073_s27   ;;  %s833_s29 = sadd.s32 4294967294, %s1073_s27   ;;  %s1073_s27 = sphi %s1127_s27, %s1317_s27   ;;  %s1069_s26 = sphi %s1125_s26, %s1316_s26   ;;  %s1065_s25 = sphi %s1123_s25, %s1315_s25   ;;  %s1061_s24 = sphi %s1121_s24, %s1314_s24  }
   0x4   : > { %s1146_s30 = sadd.s32 1, %s1073_s27   ;;  %s184_s8 = sadd.s32 1, %s1069_s26 }
   0x5   : > { %s181_s9 = ssub.s32 %s1073_s27, %s1146_s30  ;;  %p194_p0 = scmp.ne.s32.totalorder %s1069_s26, %s1065_s25 }
   0x6   : > { %p182_p1 = scmp.eq.s32.totalorder %s181_s9, 0  ;;  %p195_p2 = scmp.eq.s32.totalorder %s1142_s28, 1 }
   0x7   : > { %p200_p3 = scmp.ne.s32.totalorder %s1065_s25, %s1061_s24  ;;  %p201_p4 = scmp.eq.s32.totalorder %s833_s29, 1 }
   0x8   : > { %s1157_s10 = scalar_select %p182_p1, %s1069_s26, %s184_s8  }
   0x9   : > { %p1159_p5 = por %p195_p2, %p194_p0  ;;  %p1163_p6 = por %p201_p4, %p200_p3 }
   0xa   : > { %p836_p7 = scmp.ge.s32.totalorder %s1073_s27, 1  ;;  %p250_p8 = scmp.lt.s32.totalorder %s1073_s27, 3 }
   0xc   : > { %p251_p9 = pnand %p836_p7, %p250_p8 }
   0xd   : > { %v300_v0 = vld [vmem:[%s1307_s3] sm:$0xff] (!%p251_p9)  ;;  %v301_v1 = vld [vmem:[%s1307_s3 + $0x8] sm:$0xff] (!%p251_p9)  ;;  %v302_v2 = vld [vmem:[%s1307_s3 + $0x10] sm:$0xff] (!%p251_p9)  ;;  %v1075_v3 = vmov (!%p251_p9), 0.0|0.0   ;;  %p287_p10 = scmp.lt.s32.totalorder (!%p251_p9), %s1142_s28, 1  ;;  %vm1076_vm0 = vmmov (!%p251_p9), 0   ;;  %v478_v42 = vlaneseq (!%p251_p9) }
   0xe   : > { %254 = sbr.rel (%p251_p9) target bundleno = 556 (0x22c), region = 48  ;;  %939 = vmatprep.subr.bf16.mxu0 (!%p251_p9), %v1075_v3  ;;  %v940_v4 = vpack.c.bf16 (!%p251_p9), %v301_v1, %v300_v0  ;;  %945 = vmatprep.subr.bf16.mxu1 (!%p251_p9), %v1075_v3  ;;  %v303_v5 = vld [vmem:[%s1307_s3 + $0x18] sm:$0xff] (!%p251_p9)  ;;  %v1077_v6 = vmov (!%p251_p9), 0.0   ;;  %vm306_vm1 = vcmask (!%p251_p9), 261120   ;;  %v995_v30 = vld [vmem:[%s1308_s4 + $0x10] sm:$0xff] (!%p251_p9)   ;;  %v997_v31 = vld [vmem:[%s1308_s4] sm:$0xff] (!%p251_p9)  }
   0xf   : > { %901 = vmatprep.mubr.msk.f32.mxu0 (!%p251_p9), %vm1076_vm0, %v1077_v6  ;;  %912 = vmatprep.mubr.msk.f32.mxu1 (!%p251_p9), %vm1076_vm0, %v1077_v6  ;;  %v943_v7 = vpack.c.bf16 (!%p251_p9), %v303_v5, %v302_v2  ;;  %v996_v32 = vld [vmem:[%s1308_s4 + $0x18] sm:$0xff] (!%p251_p9)   ;;  %v999_v33 = vld [vmem:[%s1308_s4 + $0x8] sm:$0xff] (!%p251_p9)   ;;  %v479_v45 = vshrl.u32 (!%p251_p9), %v478_v42, 7  ;;  %v844_v52 = vld [vmem:[%s1305_s1] ss:$0 sm:$0xff] (!%p251_p9)  ;;  %s284_s16 = sand.u32 (!%p251_p9), 1, %s1065_s25  }
  0x10   : > { %941 = vmatpush3.bf16.msra.mxu0 (!%p251_p9), %v940_v4  ;;  %947 = vmatpush3.bf16.msra.mxu1 (!%p251_p9), %v940_v4  ;;  %v845_v55 = vld [vmem:[%s1306_s2] ss:$0 sm:$0xff] (!%p251_p9)  ;;  %s837_s17 = sshll.u32 (!%p251_p9), %s284_s16, 4 }
  0x11   : > { %942 = vmatprep.subr.bf16.mxu0 (!%p251_p9), %v1075_v3  ;;  %948 = vmatprep.subr.bf16.mxu1 (!%p251_p9), %v1075_v3  ;;  %v480_v46 = vsub.s32 (!%p251_p9), 0, %v479_v45  ;;  %v525_v3 = vadd.s32 (!%p251_p9), 8, %v479_v45  ;;  %vm531_vm2 = vcmp.lt.s32.totalorder (!%p251_p9), %v479_v45, 1  ;;  %vm527_vm3 = vcmp.eq.s32.totalorder (!%p251_p9), %v479_v45, 0 }
  0x12   : > { %vm541_vm4 = vcmp.lt.s32.totalorder (!%p251_p9), %v479_v45, 7 }
  0x13   : > { %vm538_vm5 = vcmp.eq.s32.totalorder (!%p251_p9), %v525_v3, 15 }
  0x14   : > { %944 = vmatpush3.bf16.msra.mxu0 (!%p251_p9), %v943_v7  ;;  %950 = vmatpush3.bf16.msra.mxu1 (!%p251_p9), %v943_v7 }
  0x15   : > { %s1187_s21 = scalar_select %p287_p10, %s1142_s28, 1  ;;  %915 = vmatprep.subr.bf16.mxu0 %v1077_v6  ;;  %923 = vmatprep.subr.bf16.mxu1 %v1077_v6 }
  0x17   : > { %s871_s22 = sshll.u32 %s1187_s21, 4  ;;  %s286_s21 = scalar_lea.vmem [#allocation2], %s837_s17 }
  0x18   : > { %s291_s8 = scalar_lea.vmem %s1304_s0, %s871_s22  ;;  %s296_s20 = scalar_lea.vmem %s1310_s6, %s871_s22 }
  0x19   : > { %v298_v8 = vld [vmem:[%s291_s8] sm:$0xff]  ;;  %v299_v9 = vld [vmem:[%s291_s8 + $0x8] sm:$0xff]  ;;  %s873_s8 = sshll.u32 %s1142_s28, 8  ;;  %s759_s9 = sshll.u32 %s286_s21, 4  ;;  %s1257_s9 = int_to_ptr.vmem [resolvable:$true] %s759_s9 }
  0x1a   : > { %v307_v10 = vsel %vm306_vm1, %v298_v8, 0.0  ;;  %v308_v11 = vsel %vm306_vm1, %v299_v9, 0.0  ;;  %v316_v12 = vmul.f32 %v298_v8, %v298_v8  ;;  %v317_v13 = vmul.f32 %v299_v9, %v299_v9  ;;  %s1255_s14 = scalar_lea.hbm %s1311_s7, %s873_s8  ;;  %s1263_s28 = scalar_lea.sflag [#allocation3], %s284_s16 }
  0x1b   : > { %v309_v14 = vadd.f32 %v308_v11, %v307_v10  ;;  %s1011_s15 = scalar_lea.vmem %s1257_s9, 256  ;;  %s1078_s17 = smov [#allocation2]  }
  0x1c   : > { %v318_v15 = vsel %vm306_vm1, %v316_v12, 0.0  ;;  %v319_v16 = vsel %vm306_vm1, %v317_v13, 0.0  ;;  %p1012_p11 = scmp.ne.s32.totalorder %s1257_s9, %s1011_s15  ;;  %s1015_s18 = sshll.u32 %s1078_s17, 4  ;;  %s1016_s18 = int_to_ptr.vmem [resolvable:$false] %s1015_s18 }
  0x1d   : > { %v310_v17 = vrot.slane %v309_v14, 4  ;;  %v320_v18 = vadd.f32 %v319_v16, %v318_v15  ;;  %s1017_s19 = scalar_lea.vmem %s1016_s18, 512  ;;  %p1018_p0 = scmp.lt.s32.totalorder %s1257_s9, %s1016_s18 }
  0x1e   : > { %p1013_p12 = pnand %p1012_p11, %p1159_p5  ;;  %p1019_p1 = scmp.lt.s32.totalorder %s1017_s19, %s1011_s15 }
  0x1f   : > { %v311_v19 = vadd.f32 %v310_v17, %v309_v14  ;;  %v321_v20 = vrot.slane %v320_v18, 4 }
  0x20   : > { %p1014_p13 = pneg %p1013_p12  ;;  %p1020_p2 = por %p1019_p1, %p1018_p0 }
  0x21   : > { %v312_v21 = vrot.slane %v311_v19, 2  ;;  %v322_v22 = vadd.f32 %v321_v20, %v320_v18 }
  0x22   : > { %p1021_p3 = pnand %p1020_p2, %p1014_p13 }
  0x23   : > { %v313_v23 = vadd.f32 %v312_v21, %v311_v19  ;;  %v323_v24 = vrot.slane %v322_v22, 2  ;;  %v1000_v19 = vld [vmem:[%s1308_s4 + $0x28] sm:$0xff]  }
  0x25   : > { %v314_v25 = vrot.slane %v313_v23, 1  ;;  %v324_v26 = vadd.f32 %v323_v24, %v322_v22 }
  0x27   : > { %v315_v27 = vadd.f32 %v314_v25, %v313_v23  ;;  %v325_v28 = vrot.slane %v324_v26, 1 }
  0x29   : > { %902 = vmatmul.mubr.msk.f32.vlgmr.msra.gmra.mrb[0].mxu0 %vm306_vm1, %v315_v27  ;;  %v326_v29 = vadd.f32 %v325_v28, %v324_v26 }
  0x2a   : > { %919 = vmatprep.mubr.msk.bf16.mxu0 %vm1076_vm0, %v1077_v6  ;;  %916 = vmatpush3.bf16.msra.mxu0 %v995_v30 }
  0x2b   : > { %913 = vmatmul.mubr.msk.f32.vlgmr.msra.gmra.mrb[0].mxu1 %vm306_vm1, %v326_v29  ;;  %917 = vmatprep.subr.bf16.mxu0 %v1077_v6 }
  0x2c   : > { %927 = vmatprep.mubr.msk.bf16.mxu1 %vm1076_vm0, %v1077_v6  ;;  %924 = vmatpush3.bf16.msra.mxu1 %v997_v31 }
  0x2d   : > { %925 = vmatprep.subr.bf16.mxu1 %v1077_v6 }
  0x2e   : > { %918 = vmatpush3.bf16.msra.mxu0 %v996_v32  ;;  %v865_v32 = vld [vmem:[%s1309_s5] ss:$0 sm:$0xff] }
  0x2f   : > { %931 = vmatprep.subr.bf16.mxu0 %v1077_v6 }
  0x30   : > { %926 = vmatpush3.bf16.msra.mxu1 %v999_v33 }
  0xfc   : > { %v396_v34 = vpop.f32.mrb[0].mxu0 }
  0xfd   : > { %v400_v35 = vmul.f32 0.015625, %v396_v34  ;;  %v903_v36 = vpop.f32.mrb[1].mxu0 }
  0xfe   : > { %v470_v37 = vpop.f32.mrb[0].mxu1  ;;  %v739_v36 = vld [vmem:[%s296_s20] sm:$0xff] }
  0xff   : > { %v475_v38 = vmul.f32 %v400_v35, %v400_v35  ;;  %v474_v39 = vmul.f32 0.015625, %v470_v37  ;;  %v914_v40 = vpop.f32.mrb[1].mxu1  ;;  %v481_v47 = vrot.slane %v400_v35, %v480_v46 }
 0x101   : > { %v476_v41 = vsub.f32 %v474_v39, %v475_v38  ;;  %v482_v49 = vsub.f32 %v298_v8, %v481_v47  ;;  %v483_v50 = vsub.f32 %v299_v9, %v481_v47  ;;  %v998_v8 = vld [vmem:[%s1308_s4 + $0x20] sm:$0xff]  }
 0x103   : > { %v477_v43 = vmax.f32 %v476_v41, 0.0  ;;  %v740_v41 = vld [vmem:[%s296_s20 + $0x8] sm:$0xff] }
 0x105   : > { %v484_v44 = vadd.f32 1e-06, %v477_v43 }
 0x107   : > { %1001 = vrsqrt.f32 %v484_v44 }
 0x111   : > { %v1002_v48 = vpop.eup %1001 }
 0x112   : > { %v489_v51 = vrot.slane %v1002_v48, %v480_v46 }
 0x114   : > { %v490_v53 = vmul.f32 %v489_v51, %v482_v49  ;;  %v491_v54 = vmul.f32 %v489_v51, %v483_v50 }
 0x116   : > { %v498_v56 = vmul.f32 %v844_v52, %v490_v53  ;;  %v499_v57 = vmul.f32 %v844_v52, %v491_v54 }
 0x118   : > { %v506_v58 = vadd.f32 %v845_v55, %v498_v56  ;;  %v507_v59 = vadd.f32 %v845_v55, %v499_v57 }
 0x11a   : > { %v846_v60 = vmul.f32 -1.442695, %v506_v58  ;;  %v847_v61 = vmul.f32 -1.442695, %v507_v59 }
 0x11c   : > { %1003 = vpow2.f32 %v846_v60 }
 0x11d   : > { %1005 = vpow2.f32 %v847_v61 }
 0x126   : > { %v1004_v62 = vpop.eup %1003 }
 0x127   : > { %v1006_v63 = vpop.eup %1005  ;;  %v514_v0 = vadd.f32 1.0, %v1004_v62 }
 0x128   : > { %v515_v1 = vadd.f32 1.0, %v1006_v63 }
 0x129   : > { %1007 = vrcp.f32 %v514_v0 }
 0x12a   : > { %1009 = vrcp.f32 %v515_v1 }
 0x133   : > { %v1008_v2 = vpop.eup %1007 }
 0x134   : > { %v1010_v4 = vpop.eup %1009  ;;  %v520_v5 = vmul.f32 %v1008_v2, %v506_v58 }
 0x135   : > { %v521_v7 = vmul.f32 %v1010_v4, %v507_v59 }
 0x136   : > { %v529_v9 = vrot.slane %v520_v5, 7  ;;  %v539_v10 = vrot.slane %v520_v5, 1 }
 0x137   : > { %v526_v11 = vpack.c.bf16 %v521_v7, %v520_v5  ;;  %v530_v12 = vrot.slane %v521_v7, 7  ;;  %v540_v13 = vrot.slane %v521_v7, 1 }
 0x139   : > { %920 = vmatmul.mubr.msk.bf16.vlgmr.msra.gmra.mrb[4].mxu0 %vm306_vm1, %v526_v11  ;;  %v532_v14 = vsel %vm531_vm2, %v529_v9, %v530_v12  ;;  %v533_v15 = vsel %vm531_vm2, %v530_v12, %v529_v9  ;;  %v542_v16 = vsel %vm541_vm4, %v539_v10, %v540_v13  ;;  %v543_v17 = vsel %vm541_vm4, %v540_v13, %v539_v10 }
 0x13a   : > { %932 = vmatpush3.bf16.msra.mxu0 %v998_v8  ;;  %v534_v18 = vsel %vm527_vm3, 0.0, %v533_v15  ;;  %935 = vmatprep.mubr.msk.bf16.mxu0 %vm1076_vm0, %v1077_v6  ;;  %v545_v20 = vsel %vm538_vm5, 0.0, %v543_v17 }
 0x13b   : > { %933 = vmatprep.subr.bf16.mxu0 %v1077_v6  ;;  %v536_v21 = vpack.c.bf16 %v532_v14, %v534_v18  ;;  %v546_v22 = vpack.c.bf16 %v545_v20, %v542_v16 }
 0x13d   : > { %928 = vmatmul.mubr.msk.bf16.vlgmr.msra.gmra.mrb[4].mxu1 %vm306_vm1, %v536_v21 }
 0x13e   : > { %934 = vmatpush3.bf16.msra.mxu0 %v1000_v19 }
 0x141   : > { %936 = vmatmul.mubr.msk.bf16.vlgmr.msra.gmra.mrb[8].mxu0 %vm306_vm1, %v546_v22 }
 0x20c   : > { %v605_v23 = vpop.f32.mrb[4].mxu0 }
 0x20d   : > { %v921_v24 = vpop.f32.mrb[5].mxu0 }
 0x20e   : > { %v608_v25 = vpop.f32.mrb[6].mxu0 }
 0x20f   : > { %v922_v26 = vpop.f32.mrb[7].mxu0 }
 0x210   : > { %v661_v27 = vpop.f32.mrb[4].mxu1 }
 0x211   : > { %v662_v28 = vadd.f32 %v661_v27, %v605_v23  ;;  %v929_v29 = vpop.f32.mrb[5].mxu1 }
 0x212   : > { %v664_v6 = vpop.f32.mrb[6].mxu1 }
 0x213   : > { %v665_v30 = vadd.f32 %v664_v6, %v608_v25  ;;  %v930_v31 = vpop.f32.mrb[7].mxu1 }
 0x214   : > { %v722_v33 = vpop.f32.mrb[8].mxu0 }
 0x215   : > { %v729_v34 = vadd.f32 %v722_v33, %v662_v28  ;;  %v937_v35 = vpop.f32.mrb[9].mxu0 }
 0x216   : > { %v725_v37 = vpop.f32.mrb[10].mxu0 }
 0x217   : > { %v737_v38 = vadd.f32 %v865_v32, %v729_v34  ;;  %v730_v39 = vadd.f32 %v725_v37, %v665_v30  ;;  %v938_v40 = vpop.f32.mrb[11].mxu0 }
 0x219   : > { %v741_v42 = vadd.f32 %v739_v36, %v737_v38  ;;  %v738_v43 = vadd.f32 %v865_v32, %v730_v39 }
 0x21b   : > { %743 = vst.msk [vmem:[%s286_s21] sm:$0xff] %vm306_vm1, %v741_v42  ;;  %v742_v44 = vadd.f32 %v740_v41, %v738_v43 }
 0x21d   : > { %744 = vst.msk [vmem:[%s286_s21 + $0x8] sm:$0xff] %vm306_vm1, %v742_v44 }
 0x21e   : > { %1024 = shalt.err (!%p1021_p3)
}
 0x21f   : > { %s1025_s16 = scalar_lea.hbm %s1255_s14, 256  ;;  %s1029_s29 = scalar_lea.hbm %s1311_s7, 512 }
 0x220   : > { %p1026_p4 = scmp.ne.s32.totalorder %s1255_s14, %s1025_s16  ;;  %p1030_p9 = scmp.lt.u32.totalorder %s1255_s14, %s1311_s7 }
 0x221   : > { %p1031_p10 = scmp.lt.u32.totalorder %s1029_s29, %s1025_s16  ;;  %p1033_p12 = scmp.lt.u32.totalorder %s1025_s16, %s1255_s14 }
 0x222   : > { %p1027_p7 = pnand %p1026_p4, %p1159_p5 }
 0x223   : > { %p1032_p11 = por %p1031_p10, %p1030_p9 }
 0x224   : > { %p1028_p8 = pneg %p1027_p7 }
 0x225   : > { %p1034_p13 = por %p1033_p12, %p1032_p11 }
 0x227   : > { %p1035_p0 = pnand %p1034_p13, %p1028_p8 }
 0x229   : > { %1038 = shalt.err (!%p1035_p0)
}
 0x22a   : > { %s1079_s22 = smov 128   ;;  %s1080_s13 = smov 8  }
 0x22b   : > { %951 = dma.vmem_to_hbm [thread:$0]  (%p1159_p5), %s1257_s9, 256, %s1255_s14, %s1263_s28, %s1079_s22, %s1079_s22, %s1080_s13  }
 0x22c PF: > { %p957_p1 = scmp.ge.s32.totalorder %s1073_s27, 2  ;;  %s774_s15 = sand.u32 1, %s1061_s24  }
 0x22d   : > { %s775_s17 = scalar_lea.sflag [#allocation3], %s774_s15 }
 0x22e   : > { %p954_p2 = pnand %p957_p1, %p1163_p6 }
 0x230   : > { %1056 = dma.done.wait (!%p954_p2), %s775_s17, 256  }
 0x231   : > { %1058 = vsyncadd (!%p954_p2), %s775_s17, 4294967040  ;;  %p17_p3 = scmp.ge.s32.totalorder %s1146_s30, 4   ;;  %s1314_s24 = smov %s1065_s25 }
 0x232   : > { %s1315_s25 = smov %s1069_s26  ;;  %s1316_s26 = smov %s1157_s10 }
 0x233   : > { %s1317_s27 = smov %s1146_s30  ;;  %19 = sbr.rel (!%p17_p3) target bundleno = 3 (0x3), region = 88 }
 0x23a   :  { %780 = vsyncpa [#allocation3], 1 }
 0x23b   :  { %782 = vsyncpa [#allocation3 + $0x1], 1 }

// kernel: unet_mid_block_1d_cross_attn.11
= control target key start
LH: loop header
LB: loop body
LE: loop exit
PB: predicated region body
PF: predicated region fallthrough
CT: control target
= control target key end

     0   :  { %s1099_s21 = smov 0   ;;  %s1225_s0 = inlined_call_operand.vmem [shape: f32[2,16,32], index: 0, kind: input, shape index: {}]   ;;  %s1226_s1 = inlined_call_operand.vmem [shape: f32[1,32], index: 1, kind: input, shape index: {}]   ;;  %s1227_s2 = inlined_call_operand.vmem [shape: f32[1,32], index: 2, kind: input, shape index: {}]   ;;  %s1228_s3 = inlined_call_operand.vmem [shape: bf16[32,128], index: 3, kind: input, shape index: {}]   ;;  %s1229_s4 = inlined_call_operand.vmem [shape: f32[1,128], index: 4, kind: input, shape index: {}]   ;;  %s1230_s5 = inlined_call_operand.vmem [shape: bf16[32,128], index: 5, kind: input, shape index: {}]   ;;  %s1231_s6 = inlined_call_operand.vmem [shape: f32[1,128], index: 6, kind: input, shape index: {}]   ;;  %s1232_s7 = inlined_call_operand.vmem [shape: bf16[128,32], index: 7, kind: input, shape index: {}]   ;;  %s1233_s8 = inlined_call_operand.vmem [shape: f32[1,32], index: 8, kind: input, shape index: {}]   ;;  %s1234_s9 = inlined_call_operand.vmem [shape: bf16[32,32], index: 9, kind: input, shape index: {}]   ;;  %s1235_s10 = inlined_call_operand.vmem [shape: f32[1,32], index: 10, kind: input, shape index: {}]   ;;  %s1236_s11 = inlined_call_operand.vmem [shape: f32[2,16,32], index: 11, kind: input, shape index: {}]   ;;  %s1237_s12 = inlined_call_operand.vmem [shape: f32[2,16,32], index: 12, kind: output, shape index: {}]  }
   0x1 LB: > { %s891_s22 = sadd.s32 4294967295, %s1030_s21   ;;  %p895_p0 = scmp.ge.s32.totalorder %s1030_s21, 1  ;;  %s1030_s21 = sphi %s1099_s21, %s22_s21  }
   0x2   : > { %p372_p1 = scmp.lt.s32.totalorder %s1030_s21, 3 }
   0x4   : > { %p373_p2 = pnand %p895_p0, %p372_p1 }
   0x5   : > { %p419_p3 = scmp.lt.s32.totalorder (!%p373_p2), %s891_s22, 1  ;;  %vm439_vm0 = vcmask (!%p373_p2), 261120   ;;  %v1002_v14 = vld [vmem:[%s1228_s3] sm:$0xff] (!%p373_p2)   ;;  %v1032_v15 = vmov (!%p373_p2), 0.0   ;;  %v1003_v16 = vld [vmem:[%s1228_s3 + $0x8] sm:$0xff] (!%p373_p2)   ;;  %vm1033_vm1 = vmmov (!%p373_p2), 0  }
   0x6   : > { %376 = sbr.rel (%p373_p2) target bundleno = 1030 (0x406), region = 68  ;;  %948 = vmatprep.subr.bf16.mxu1 (!%p373_p2), %v1032_v15  ;;  %964 = vmatprep.subr.bf16.mxu0 (!%p373_p2), %v1032_v15  ;;  %v902_v25 = vld [vmem:[%s1226_s1] ss:$0 sm:$0xff] (!%p373_p2)  ;;  %v1005_v35 = vld [vmem:[%s1230_s5 + $0x8] sm:$0xff] (!%p373_p2)   ;;  %v1008_v38 = vld [vmem:[%s1232_s7 + $0x10] sm:$0xff] (!%p373_p2)  }
   0x7   : > { %949 = vmatpush3.bf16.msra.mxu1 (!%p373_p2), %v1002_v14  ;;  %952 = vmatprep.mubr.msk.bf16.mxu1 (!%p373_p2), %vm1033_vm1, %v1032_v15  ;;  %v903_v29 = vld [vmem:[%s1227_s2] ss:$0 sm:$0xff] (!%p373_p2)  ;;  %v1007_v37 = vld [vmem:[%s1232_s7 + $0x8] sm:$0xff] (!%p373_p2)   ;;  %v1009_v39 = vld [vmem:[%s1232_s7 + $0x18] sm:$0xff] (!%p373_p2)  }
   0x8   : > { %950 = vmatprep.subr.bf16.mxu1 (!%p373_p2), %v1032_v15  ;;  %980 = vmatprep.mubr.msk.bf16.mxu0 (!%p373_p2), %vm1033_vm1, %v1032_v15  ;;  %v1004_v33 = vld [vmem:[%s1230_s5] sm:$0xff] (!%p373_p2)   ;;  %v1011_v41 = vld [vmem:[%s1232_s7 + $0x28] sm:$0xff] (!%p373_p2)   ;;  %v1012_v42 = vld [vmem:[%s1232_s7 + $0x30] sm:$0xff] (!%p373_p2)  }
   0x9   : > { %v1006_v36 = vld [vmem:[%s1232_s7] sm:$0xff] (!%p373_p2)   ;;  %v1013_v43 = vld [vmem:[%s1232_s7 + $0x38] sm:$0xff] (!%p373_p2)  }
   0xa   : > { %965 = vmatpush3.bf16.msra.mxu0 (!%p373_p2), %v1006_v36  ;;  %v1010_v40 = vld [vmem:[%s1232_s7 + $0x20] sm:$0xff] (!%p373_p2)  }
   0xb   : > { %951 = vmatpush3.bf16.msra.mxu1 (!%p373_p2), %v1003_v16  ;;  %966 = vmatprep.subr.bf16.mxu0 (!%p373_p2), %v1032_v15  ;;  %v908_v48 = vld [vmem:[%s1231_s6] ss:$0 sm:$0xff] (!%p373_p2) }
   0xc   : > { %956 = vmatprep.subr.bf16.mxu1 (!%p373_p2), %v1032_v15 }
   0xd   : > { %s1239_s22 = smov (!%p419_p3, %s891_s22), 1 }
   0xe   : > { %s1107_s23 = sshll.u32 %s1239_s22, 4  ;;  %967 = vmatpush3.bf16.msra.mxu0 %v1007_v37 }
   0xf   : > { %s423_s26 = scalar_lea.vmem %s1225_s0, %s1107_s23  ;;  %968 = vmatprep.subr.bf16.mxu0 %v1032_v15  ;;  %s428_s17 = scalar_lea.vmem %s1236_s11, %s1107_s23 }
  0x10   : > { %v1113_v0 = vld [vmem:[%s423_s26] sm:$0xff]  ;;  %v1115_v1 = vld [vmem:[%s423_s26 + $0x8] sm:$0xff]  ;;  %s433_s24 = scalar_lea.vmem %s1237_s12, %s1107_s23 }
  0x11   : > { %v440_v2 = vsel %vm439_vm0, %v1113_v0, 0.0  ;;  %v443_v3 = vsel %vm439_vm0, %v1115_v1, 0.0 }
  0x12   : > { %441 = vadd.xlane.f32.xlu0 %v440_v2  ;;  %969 = vmatpush3.bf16.msra.mxu0 %v1008_v38 }
  0x13   : > { %970 = vmatprep.subr.bf16.mxu0 %v1032_v15 }
  0x16   : > { %444 = vadd.xlane.f32.xlu0 %v443_v3  ;;  %971 = vmatpush3.bf16.msra.mxu0 %v1009_v39 }
  0x17   : > { %972 = vmatprep.subr.bf16.mxu0 %v1032_v15 }
  0x1a   : > { %973 = vmatpush3.bf16.msra.mxu0 %v1010_v40 }
  0x1b   : > { %974 = vmatprep.subr.bf16.mxu0 %v1032_v15 }
  0x1e   : > { %975 = vmatpush3.bf16.msra.mxu0 %v1011_v41 }
  0x1f   : > { %976 = vmatprep.subr.bf16.mxu0 %v1032_v15 }
  0x22   : > { %977 = vmatpush3.bf16.msra.mxu0 %v1012_v42 }
  0x23   : > { %978 = vmatprep.subr.bf16.mxu0 %v1032_v15 }
  0x26   : > { %979 = vmatpush3.bf16.msra.mxu0 %v1013_v43 }
  0x9f   : > { %v442_v4 = vpop.xlane.xlu0 %441 }
  0xa0   : > { %v447_v5 = vmul.f32 0.03125, %v442_v4 }
  0xa2   : > { %v449_v6 = vsub.f32 %v1113_v0, %v447_v5 }
  0xa3   : > { %v445_v7 = vpop.xlane.xlu0 %444 }
  0xa4   : > { %v448_v8 = vmul.f32 0.03125, %v445_v7  ;;  %v451_v9 = vmul.f32 %v449_v6, %v449_v6 }
  0xa6   : > { %v450_v10 = vsub.f32 %v1115_v1, %v448_v8  ;;  %v453_v11 = vsel %vm439_vm0, %v451_v9, 0.0 }
  0xa7   : > { %454 = vadd.xlane.f32.xlu1 %v453_v11 }
  0xa8   : > { %v452_v12 = vmul.f32 %v450_v10, %v450_v10 }
  0xaa   : > { %v456_v13 = vsel %vm439_vm0, %v452_v12, 0.0 }
  0xab   : > { %457 = vadd.xlane.f32.xlu1 %v456_v13 }
 0x134   : > { %v455_v17 = vpop.xlane.xlu1 %454 }
 0x135   : > { %v459_v18 = vmul.f32 0.03125, %v455_v17 }
 0x137   : > { %v461_v19 = vadd.f32 1e-05, %v459_v18  ;;  %v1014_v18 = vld [vmem:[%s1234_s9] sm:$0xff]  }
 0x138   : > { %v458_v20 = vpop.xlane.xlu1 %457 }
 0x139   : > { %1016 = vrsqrt.f32 %v461_v19  ;;  %v460_v21 = vmul.f32 0.03125, %v458_v20  ;;  %v1015_v19 = vld [vmem:[%s1234_s9 + $0x8] sm:$0xff]   ;;  %v912_v20 = vld [vmem:[%s1233_s8] ss:$0 sm:$0xff] }
 0x13b   : > { %v462_v22 = vadd.f32 1e-05, %v460_v21 }
 0x13d   : > { %1018 = vrsqrt.f32 %v462_v22 }
 0x143   : > { %v1017_v23 = vpop.eup %1016 }
 0x144   : > { %v465_v24 = vmul.f32 %v1017_v23, %v449_v6  ;;  %v904_v6 = vld [vmem:[%s1229_s4] ss:$0 sm:$0xff] }
 0x146   : > { %v473_v28 = vmul.f32 %v902_v25, %v465_v24 }
 0x147   : > { %v1019_v26 = vpop.eup %1018 }
 0x148   : > { %v466_v27 = vmul.f32 %v1019_v26, %v450_v10  ;;  %v481_v31 = vadd.f32 %v903_v29, %v473_v28 }
 0x14a   : > { %v474_v30 = vmul.f32 %v902_v25, %v466_v27 }
 0x14c   : > { %v482_v32 = vadd.f32 %v903_v29, %v474_v30  ;;  %v921_v29 = vld [vmem:[%s1235_s10] ss:$0 sm:$0xff] }
 0x14e   : > { %v483_v34 = vpack.c.bf16 %v482_v32, %v481_v31  ;;  %v818_v31 = vld [vmem:[%s428_s17] sm:$0xff] }
 0x150   : > { %953 = vmatmul.mubr.msk.bf16.vlgmr.msra.gmra.mrb[0].mxu1 %vm439_vm0, %v483_v34 }
 0x151   : > { %957 = vmatpush3.bf16.msra.mxu1 %v1004_v33  ;;  %960 = vmatprep.mubr.msk.bf16.mxu1 %vm1033_vm1, %v1032_v15 }
 0x152   : > { %958 = vmatprep.subr.bf16.mxu1 %v1032_v15 }
 0x155   : > { %959 = vmatpush3.bf16.msra.mxu1 %v1005_v35 }
 0x156   : > { %984 = vmatprep.subr.bf16.mxu1 %v1032_v15 }
 0x158   : > { %961 = vmatmul.mubr.msk.bf16.vlgmr.msra.gmra.mrb[4].mxu1 %vm439_vm0, %v483_v34 }
 0x159   : > { %988 = vmatprep.mubr.msk.bf16.mxu1 %vm1033_vm1, %v1032_v15  ;;  %985 = vmatpush3.bf16.msra.mxu1 %v1014_v18 }
 0x15a   : > { %986 = vmatprep.subr.bf16.mxu1 %v1032_v15 }
 0x15d   : > { %987 = vmatpush3.bf16.msra.mxu1 %v1015_v19 }
 0x223   : > { %v544_v44 = vpop.f32.mrb[0].mxu1 }
 0x224   : > { %v954_v45 = vpop.f32.mrb[1].mxu1  ;;  %v545_v9 = vadd.f32 %v904_v6, %v544_v44 }
 0x225   : > { %v547_v46 = vpop.f32.mrb[2].mxu1 }
 0x226   : > { %v955_v47 = vpop.f32.mrb[3].mxu1  ;;  %v548_v12 = vadd.f32 %v904_v6, %v547_v46 }
 0x22b   : > { %v608_v49 = vpop.f32.mrb[4].mxu1 }
 0x22c   : > { %v609_v50 = vadd.f32 %v908_v48, %v608_v49  ;;  %v962_v51 = vpop.f32.mrb[5].mxu1 }
 0x22d   : > { %v611_v52 = vpop.f32.mrb[6].mxu1 }
 0x22e   : > { %v615_v53 = vmul.f32 %v609_v50, %v609_v50  ;;  %v612_v54 = vadd.f32 %v908_v48, %v611_v52  ;;  %v963_v55 = vpop.f32.mrb[7].mxu1 }
 0x230   : > { %v617_v56 = vmul.f32 %v615_v53, %v609_v50  ;;  %v616_v57 = vmul.f32 %v612_v54, %v612_v54 }
 0x232   : > { %v619_v58 = vmul.f32 0.044715, %v617_v56  ;;  %v618_v59 = vmul.f32 %v616_v57, %v612_v54 }
 0x234   : > { %v621_v60 = vadd.f32 %v619_v58, %v609_v50  ;;  %v620_v61 = vmul.f32 0.044715, %v618_v59 }
 0x236   : > { %v623_v62 = vmul.f32 0.7978846, %v621_v60  ;;  %v622_v63 = vadd.f32 %v620_v61, %v612_v54 }
 0x238   : > { %1020 = vtanh.f32 %v623_v62  ;;  %v624_v2 = vmul.f32 0.7978846, %v622_v63 }
 0x23a   : > { %1022 = vtanh.f32 %v624_v2 }
 0x242   : > { %v1021_v3 = vpop.eup %1020 }
 0x243   : > { %v627_v4 = vadd.f32 1.0, %v1021_v3 }
 0x244   : > { %v1023_v5 = vpop.eup %1022 }
 0x245   : > { %v628_v7 = vadd.f32 1.0, %v1023_v5  ;;  %v629_v8 = vmul.f32 0.5, %v627_v4 }
 0x247   : > { %v630_v10 = vmul.f32 0.5, %v628_v7  ;;  %v631_v11 = vmul.f32 %v629_v8, %v609_v50 }
 0x249   : > { %v632_v13 = vmul.f32 %v630_v10, %v612_v54  ;;  %v633_v14 = vmul.f32 %v631_v11, %v545_v9 }
 0x24b   : > { %v634_v16 = vmul.f32 %v632_v13, %v548_v12 }
 0x24d   : > { %v635_v17 = vpack.c.bf16 %v634_v16, %v633_v14 }
 0x24f   : > { %981 = vmatmul.mubr.bf16.vlgmr.msra.gmra.mrb[0].mxu0 %v635_v17 }
 0x322   : > { %v741_v21 = vpop.f32.mrb[0].mxu0 }
 0x323   : > { %v742_v22 = vadd.f32 %v912_v20, %v741_v21  ;;  %v982_v23 = vpop.f32.mrb[1].mxu0 }
 0x324   : > { %v744_v24 = vpop.f32.mrb[2].mxu0 }
 0x325   : > { %v745_v25 = vadd.f32 %v912_v20, %v744_v24  ;;  %v983_v26 = vpop.f32.mrb[3].mxu0  ;;  %v748_v27 = vadd.f32 %v742_v22, %v1113_v0 }
 0x327   : > { %v749_v15 = vadd.f32 %v745_v25, %v1115_v1  ;;  %v819_v1 = vld [vmem:[%s428_s17 + $0x8] sm:$0xff] }
 0x329   : > { %v750_v28 = vpack.c.bf16 %v749_v15, %v748_v27 }
 0x32b   : > { %989 = vmatmul.mubr.msk.bf16.vlgmr.msra.gmra.mrb[8].mxu1 %vm439_vm0, %v750_v28 }
 0x3fe   : > { %v811_v30 = vpop.f32.mrb[8].mxu1 }
 0x3ff   : > { %v812_v32 = vadd.f32 %v921_v29, %v811_v30  ;;  %v990_v33 = vpop.f32.mrb[9].mxu1 }
 0x400   : > { %v814_v0 = vpop.f32.mrb[10].mxu1 }
 0x401   : > { %v820_v34 = vadd.f32 %v818_v31, %v812_v32  ;;  %v815_v35 = vadd.f32 %v921_v29, %v814_v0  ;;  %v991_v36 = vpop.f32.mrb[11].mxu1 }
 0x403   : > { %822 = vst.msk [vmem:[%s433_s24] sm:$0xff] %vm439_vm0, %v820_v34  ;;  %v821_v37 = vadd.f32 %v819_v1, %v815_v35 }
 0x405   : > { %823 = vst.msk [vmem:[%s433_s24 + $0x8] sm:$0xff] %vm439_vm0, %v821_v37 }
 0x406 PF: > { %s22_s21 = sadd.s32 1, %s1030_s21  }
 0x407   : > { %p19_p4 = scmp.ge.s32.totalorder %s22_s21, 4  }
 0x409   :  { %21 = sbr.rel (!%p19_p4) target bundleno = 1 (0x1), region = 101 }

</bundles_post_ra>
